<compile_context>
chip_gen: v6e
topology: v6e:2x2x1
jax: 0.10.0
libtpu: 0.0.40
codegen_flags: <defaults>
</compile_context>

<pallas_src>
from math import pi, sqrt, log

import jax
import jax.numpy as jnp
from jax.experimental import pallas as pl
from jax.experimental.pallas import tpu as pltpu

_LN_EPS = 1e-5        # nn.LayerNorm default eps
_COV_SCALE = 1e-3     # scaling_factor in the module
_DIAG_EPS = 1e-5      # diag_eps in the module

_PARAM_NAMES = (
    "norm_g", "norm_b",
    "wq", "bq", "wk", "bk", "wv", "bv", "wo", "bo",
    "norm1_g", "norm1_b",
    "w1", "b1", "w2", "b2", "w3", "b3",
    "norm2_g", "norm2_b",
    "w_mu", "b_mu", "w_cov", "b_cov",
)


def _layernorm(x, g, b):
    mu = jnp.mean(x, axis=-1, keepdims=True)
    xc = x - mu
    var = jnp.mean(xc * xc, axis=-1, keepdims=True)
    return xc * jax.lax.rsqrt(var + _LN_EPS) * g + b


def _new_gelu(x):
    c = sqrt(2.0 / pi)
    return 0.5 * x * (1.0 + jnp.tanh(c * (x + 0.044715 * x * x * x)))


def _softplus(z):
    # numerically stable softplus = max(z,0) + log(1 + exp(-|z|))
    return jnp.maximum(z, 0.0) + jnp.log(1.0 + jnp.exp(-jnp.abs(z)))


def _policy_forward_math(x, eps, p):
    """Pure-jnp forward; used inside the Pallas kernel AND as the plain-JAX reference."""
    S, D = x.shape
    A = eps.shape[-1]

    # --- LayerNorm(input) ---
    x0 = _layernorm(x, p["norm_g"], p["norm_b"])

    # --- MultiHeadAttention(d_model=D, num_heads=D) => d_k = 1, scale = 1 ---
    q = jnp.dot(x0, p["wq"], preferred_element_type=jnp.float32) + p["bq"]
    k = jnp.dot(x0, p["wk"], preferred_element_type=jnp.float32) + p["bk"]
    v = jnp.dot(x0, p["wv"], preferred_element_type=jnp.float32) + p["bv"]
    kT = k.T                                           # [D, S]
    vT = v.T                                           # [D, S]
    # scores[s, d, t] = q[s, d] * k[t, d] / sqrt(d_k=1)
    scores = q[:, :, None] * kT[None, :, :]            # [S, D, S]
    m = jnp.max(scores, axis=-1, keepdims=True)
    e = jnp.exp(scores - m)
    probs = e / jnp.sum(e, axis=-1, keepdims=True)
    ctx = jnp.sum(probs * vT[None, :, :], axis=-1)     # [S, D]
    attn_out = jnp.dot(ctx, p["wo"], preferred_element_type=jnp.float32) + p["bo"]

    # TODO(synk): nn.Dropout(0.1) is stochastic train-time only; inference forward = identity.
    x1 = _layernorm(x0 + attn_out, p["norm1_g"], p["norm1_b"])

    # --- feed-forward ---
    h = _new_gelu(jnp.dot(x1, p["w1"], preferred_element_type=jnp.float32) + p["b1"])
    h = _new_gelu(jnp.dot(h, p["w2"], preferred_element_type=jnp.float32) + p["b2"])
    ff_out = jnp.dot(h, p["w3"], preferred_element_type=jnp.float32) + p["b3"]
    x2 = _layernorm(x1 + ff_out, p["norm2_g"], p["norm2_b"])

    # --- policy head ---
    loc = jnp.tanh(jnp.dot(x2, p["w_mu"], preferred_element_type=jnp.float32) + p["b_mu"])   # [S, A]
    cov_flat = jnp.dot(x2, p["w_cov"], preferred_element_type=jnp.float32) + p["b_cov"]      # [S, A*A]

    def col(arr, j):
        return arr[:, j:j + 1]                         # [S, 1]

    # Sigma = 1e-3 * C @ C^T + 1e-5 * I  (lower triangle only, as [S,1] columns)
    sigma = [[None] * A for _ in range(A)]
    for i in range(A):
        for j in range(i + 1):
            acc = col(cov_flat, i * A) * col(cov_flat, j * A)
            for kk in range(1, A):
                acc = acc + col(cov_flat, i * A + kk) * col(cov_flat, j * A + kk)
            s_ij = _COV_SCALE * acc
            if i == j:
                s_ij = s_ij + _DIAG_EPS
            sigma[i][j] = s_ij

    # Unrolled Cholesky, vectorized over the sequence axis
    L = [[None] * A for _ in range(A)]
    for i in range(A):
        for j in range(i + 1):
            s_ij = sigma[i][j]
            for kk in range(j):
                s_ij = s_ij - L[i][kk] * L[j][kk]
            if i == j:
                L[i][j] = jnp.sqrt(s_ij)
            else:
                L[i][j] = s_ij / L[j][j]

    # Reparameterized sample: action = loc + L @ eps   (== MultivariateNormal.rsample)
    act_cols = []
    for i in range(A):
        a_i = col(loc, i)
        for kk in range(i + 1):
            a_i = a_i + L[i][kk] * col(eps, kk)
        act_cols.append(a_i)
    action = jnp.concatenate(act_cols, axis=1)          # [S, A]

    # MVN log-density at the sampled point: Mahalanobis term reduces to |eps|^2
    maha = jnp.sum(eps * eps, axis=-1, keepdims=True)    # [S, 1]
    logdet = 2.0 * jnp.log(L[0][0])
    for i in range(1, A):
        logdet = logdet + 2.0 * jnp.log(L[i][i])
    log_prob = -0.5 * (A * log(2.0 * pi) + maha) - 0.5 * logdet      # [S, 1]

    # tanh-squash correction:  -= sum(2*(log2 - a - softplus(-2a)))
    corr = 2.0 * (log(2.0) - action - _softplus(-2.0 * action))
    log_prob = log_prob - jnp.sum(corr, axis=-1, keepdims=True)
    return log_prob, action


def _ppo_policy_kernel(*refs):
    in_refs, (logp_ref, act_ref) = refs[:-2], refs[-2:]
    x = in_refs[0][...]
    eps = in_refs[1][...]
    p = {name: r[...] for name, r in zip(_PARAM_NAMES, in_refs[2:])}
    log_prob, action = _policy_forward_math(x, eps, p)
    logp_ref[...] = log_prob.astype(logp_ref.dtype)
    act_ref[...] = action.astype(act_ref.dtype)


@jax.jit
def ppo_policy_forward(x, eps, params):
    """x: f32 [S, D]; eps: f32 [S, A] (N(0,I) noise); params: dict of weights.

    Returns (log_prob [S, 1], action [S, A])."""
    S, _ = x.shape
    A = eps.shape[-1]
    args = (x, eps) + tuple(params[n] for n in _PARAM_NAMES)
    n_in = len(args)
    vmem = pl.BlockSpec(memory_space=pltpu.MemorySpace.VMEM)
    return pl.pallas_call(
        _ppo_policy_kernel,
        out_shape=(
            jax.ShapeDtypeStruct((S, 1), jnp.float32),   # log_prob
            jax.ShapeDtypeStruct((S, A), jnp.float32),   # action
        ),
        in_specs=[vmem] * n_in,
        out_specs=(vmem, vmem),
    )(*args)


if __name__ == "__main__":
    # Module config: input_dim=32, hidden_size=64, action_dim=4, seq_len=8
    S, D, H, A = 8, 32, 64, 4

    key = jax.random.PRNGKey(0)
    ks = jax.random.split(key, 12)

    def lin(k, fan_in, fan_out):
        kw, kb = jax.random.split(k)
        lim = 1.0 / sqrt(fan_in)
        w = jax.random.uniform(kw, (fan_in, fan_out), jnp.float32, -lim, lim)
        b = jax.random.uniform(kb, (1, fan_out), jnp.float32, -lim, lim)
        return w, b

    params = {
        "norm_g": jnp.ones((1, D), jnp.float32),
        "norm_b": jnp.zeros((1, D), jnp.float32),
        "norm1_g": jnp.ones((1, D), jnp.float32),
        "norm1_b": jnp.zeros((1, D), jnp.float32),
        "norm2_g": jnp.ones((1, D), jnp.float32),
        "norm2_b": jnp.zeros((1, D), jnp.float32),
    }
    params["wq"], params["bq"] = lin(ks[0], D, D)
    params["wk"], params["bk"] = lin(ks[1], D, D)
    params["wv"], params["bv"] = lin(ks[2], D, D)
    params["wo"], params["bo"] = lin(ks[3], D, D)
    params["w1"], params["b1"] = lin(ks[4], D, H)
    params["w2"], params["b2"] = lin(ks[5], H, H)
    params["w3"], params["b3"] = lin(ks[6], H, D)
    params["w_mu"], params["b_mu"] = lin(ks[7], D, A)
    params["w_cov"], params["b_cov"] = lin(ks[8], D, A * A)

    x = jax.random.normal(ks[9], (S, D), jnp.float32)
    eps = jax.random.normal(ks[10], (S, A), jnp.float32)   # noise consumed by rsample

    log_prob, action = ppo_policy_forward(x, eps, params)
    log_prob = jax.block_until_ready(log_prob)
    action = jax.block_until_ready(action)

    # plain-JAX reference (same math, no Pallas)
    ref_lp, ref_act = _policy_forward_math(x, eps, params)

    assert log_prob.shape == (S, 1) and action.shape == (S, A)
    assert jnp.allclose(action, ref_act, atol=2e-3, rtol=2e-3), "action mismatch vs reference"
    assert jnp.allclose(log_prob, ref_lp, atol=2e-3, rtol=2e-3), "log_prob mismatch vs reference"

    print("KERNEL_OK")
</pallas_src>

<mosaic_0001>
module attributes {stable_mosaic.version = 11 : i64} {
  func.func @_ppo_policy_kernel(%arg0: memref<8x32xf32, #tpu.memory_space<vmem>>, %arg1: memref<8x4xf32, #tpu.memory_space<vmem>>, %arg2: memref<1x32xf32, #tpu.memory_space<vmem>>, %arg3: memref<1x32xf32, #tpu.memory_space<vmem>>, %arg4: memref<32x32xf32, #tpu.memory_space<vmem>>, %arg5: memref<1x32xf32, #tpu.memory_space<vmem>>, %arg6: memref<32x32xf32, #tpu.memory_space<vmem>>, %arg7: memref<1x32xf32, #tpu.memory_space<vmem>>, %arg8: memref<32x32xf32, #tpu.memory_space<vmem>>, %arg9: memref<1x32xf32, #tpu.memory_space<vmem>>, %arg10: memref<32x32xf32, #tpu.memory_space<vmem>>, %arg11: memref<1x32xf32, #tpu.memory_space<vmem>>, %arg12: memref<1x32xf32, #tpu.memory_space<vmem>>, %arg13: memref<1x32xf32, #tpu.memory_space<vmem>>, %arg14: memref<32x64xf32, #tpu.memory_space<vmem>>, %arg15: memref<1x64xf32, #tpu.memory_space<vmem>>, %arg16: memref<64x64xf32, #tpu.memory_space<vmem>>, %arg17: memref<1x64xf32, #tpu.memory_space<vmem>>, %arg18: memref<64x32xf32, #tpu.memory_space<vmem>>, %arg19: memref<1x32xf32, #tpu.memory_space<vmem>>, %arg20: memref<1x32xf32, #tpu.memory_space<vmem>>, %arg21: memref<1x32xf32, #tpu.memory_space<vmem>>, %arg22: memref<32x4xf32, #tpu.memory_space<vmem>>, %arg23: memref<1x4xf32, #tpu.memory_space<vmem>>, %arg24: memref<32x16xf32, #tpu.memory_space<vmem>>, %arg25: memref<1x16xf32, #tpu.memory_space<vmem>>, %arg26: memref<8x1xf32, #tpu.memory_space<vmem>>, %arg27: memref<8x4xf32, #tpu.memory_space<vmem>>) attributes {dimension_semantics = [], scalar_prefetch = 0 : i64, scratch_operands = 0 : i64, tpu.core_type = #tpu.core_type<tc>} {
    %c0 = arith.constant 0 : index
    %c0_0 = arith.constant 0 : index
    %0 = vector.load %arg0[%c0, %c0_0] : memref<8x32xf32, #tpu.memory_space<vmem>>, vector<8x32xf32>
    %c0_1 = arith.constant 0 : index
    %c0_2 = arith.constant 0 : index
    %1 = vector.load %arg1[%c0_1, %c0_2] : memref<8x4xf32, #tpu.memory_space<vmem>>, vector<8x4xf32>
    %c0_3 = arith.constant 0 : index
    %c0_4 = arith.constant 0 : index
    %2 = vector.load %arg2[%c0_3, %c0_4] : memref<1x32xf32, #tpu.memory_space<vmem>>, vector<1x32xf32>
    %c0_5 = arith.constant 0 : index
    %c0_6 = arith.constant 0 : index
    %3 = vector.load %arg3[%c0_5, %c0_6] : memref<1x32xf32, #tpu.memory_space<vmem>>, vector<1x32xf32>
    %c0_7 = arith.constant 0 : index
    %c0_8 = arith.constant 0 : index
    %4 = vector.load %arg4[%c0_7, %c0_8] : memref<32x32xf32, #tpu.memory_space<vmem>>, vector<32x32xf32>
    %c0_9 = arith.constant 0 : index
    %c0_10 = arith.constant 0 : index
    %5 = vector.load %arg5[%c0_9, %c0_10] : memref<1x32xf32, #tpu.memory_space<vmem>>, vector<1x32xf32>
    %c0_11 = arith.constant 0 : index
    %c0_12 = arith.constant 0 : index
    %6 = vector.load %arg6[%c0_11, %c0_12] : memref<32x32xf32, #tpu.memory_space<vmem>>, vector<32x32xf32>
    %c0_13 = arith.constant 0 : index
    %c0_14 = arith.constant 0 : index
    %7 = vector.load %arg7[%c0_13, %c0_14] : memref<1x32xf32, #tpu.memory_space<vmem>>, vector<1x32xf32>
    %c0_15 = arith.constant 0 : index
    %c0_16 = arith.constant 0 : index
    %8 = vector.load %arg8[%c0_15, %c0_16] : memref<32x32xf32, #tpu.memory_space<vmem>>, vector<32x32xf32>
    %c0_17 = arith.constant 0 : index
    %c0_18 = arith.constant 0 : index
    %9 = vector.load %arg9[%c0_17, %c0_18] : memref<1x32xf32, #tpu.memory_space<vmem>>, vector<1x32xf32>
    %c0_19 = arith.constant 0 : index
    %c0_20 = arith.constant 0 : index
    %10 = vector.load %arg10[%c0_19, %c0_20] : memref<32x32xf32, #tpu.memory_space<vmem>>, vector<32x32xf32>
    %c0_21 = arith.constant 0 : index
    %c0_22 = arith.constant 0 : index
    %11 = vector.load %arg11[%c0_21, %c0_22] : memref<1x32xf32, #tpu.memory_space<vmem>>, vector<1x32xf32>
    %c0_23 = arith.constant 0 : index
    %c0_24 = arith.constant 0 : index
    %12 = vector.load %arg12[%c0_23, %c0_24] : memref<1x32xf32, #tpu.memory_space<vmem>>, vector<1x32xf32>
    %c0_25 = arith.constant 0 : index
    %c0_26 = arith.constant 0 : index
    %13 = vector.load %arg13[%c0_25, %c0_26] : memref<1x32xf32, #tpu.memory_space<vmem>>, vector<1x32xf32>
    %c0_27 = arith.constant 0 : index
    %c0_28 = arith.constant 0 : index
    %14 = vector.load %arg14[%c0_27, %c0_28] : memref<32x64xf32, #tpu.memory_space<vmem>>, vector<32x64xf32>
    %c0_29 = arith.constant 0 : index
    %c0_30 = arith.constant 0 : index
    %15 = vector.load %arg15[%c0_29, %c0_30] : memref<1x64xf32, #tpu.memory_space<vmem>>, vector<1x64xf32>
    %c0_31 = arith.constant 0 : index
    %c0_32 = arith.constant 0 : index
    %16 = vector.load %arg16[%c0_31, %c0_32] : memref<64x64xf32, #tpu.memory_space<vmem>>, vector<64x64xf32>
    %c0_33 = arith.constant 0 : index
    %c0_34 = arith.constant 0 : index
    %17 = vector.load %arg17[%c0_33, %c0_34] : memref<1x64xf32, #tpu.memory_space<vmem>>, vector<1x64xf32>
    %c0_35 = arith.constant 0 : index
    %c0_36 = arith.constant 0 : index
    %18 = vector.load %arg18[%c0_35, %c0_36] : memref<64x32xf32, #tpu.memory_space<vmem>>, vector<64x32xf32>
    %c0_37 = arith.constant 0 : index
    %c0_38 = arith.constant 0 : index
    %19 = vector.load %arg19[%c0_37, %c0_38] : memref<1x32xf32, #tpu.memory_space<vmem>>, vector<1x32xf32>
    %c0_39 = arith.constant 0 : index
    %c0_40 = arith.constant 0 : index
    %20 = vector.load %arg20[%c0_39, %c0_40] : memref<1x32xf32, #tpu.memory_space<vmem>>, vector<1x32xf32>
    %c0_41 = arith.constant 0 : index
    %c0_42 = arith.constant 0 : index
    %21 = vector.load %arg21[%c0_41, %c0_42] : memref<1x32xf32, #tpu.memory_space<vmem>>, vector<1x32xf32>
    %c0_43 = arith.constant 0 : index
    %c0_44 = arith.constant 0 : index
    %22 = vector.load %arg22[%c0_43, %c0_44] : memref<32x4xf32, #tpu.memory_space<vmem>>, vector<32x4xf32>
    %c0_45 = arith.constant 0 : index
    %c0_46 = arith.constant 0 : index
    %23 = vector.load %arg23[%c0_45, %c0_46] : memref<1x4xf32, #tpu.memory_space<vmem>>, vector<1x4xf32>
    %c0_47 = arith.constant 0 : index
    %c0_48 = arith.constant 0 : index
    %24 = vector.load %arg24[%c0_47, %c0_48] : memref<32x16xf32, #tpu.memory_space<vmem>>, vector<32x16xf32>
    %c0_49 = arith.constant 0 : index
    %c0_50 = arith.constant 0 : index
    %25 = vector.load %arg25[%c0_49, %c0_50] : memref<1x16xf32, #tpu.memory_space<vmem>>, vector<1x16xf32>
    %cst = arith.constant dense<0.000000e+00> : vector<8xf32>
    %26 = vector.multi_reduction <add>, %0, %cst [1] : vector<8x32xf32> to vector<8xf32>
    %27 = vector.shape_cast %26 : vector<8xf32> to vector<8x1xf32>
    %cst_51 = arith.constant 3.200000e+01 : f32
    %28 = vector.broadcast %cst_51 : f32 to vector<8x1xf32>
    %29 = arith.divf %27, %28 : vector<8x1xf32>
    %30 = vector.broadcast %29 : vector<8x1xf32> to vector<8x32xf32>
    %31 = arith.subf %0, %30 : vector<8x32xf32>
    %32 = arith.mulf %31, %31 : vector<8x32xf32>
    %cst_52 = arith.constant dense<0.000000e+00> : vector<8xf32>
    %33 = vector.multi_reduction <add>, %32, %cst_52 [1] : vector<8x32xf32> to vector<8xf32>
    %34 = vector.shape_cast %33 : vector<8xf32> to vector<8x1xf32>
    %cst_53 = arith.constant 3.200000e+01 : f32
    %35 = vector.broadcast %cst_53 : f32 to vector<8x1xf32>
    %36 = arith.divf %34, %35 : vector<8x1xf32>
    %cst_54 = arith.constant 9.99999974E-6 : f32
    %37 = vector.broadcast %cst_54 : f32 to vector<8x1xf32>
    %38 = arith.addf %36, %37 : vector<8x1xf32>
    %39 = math.rsqrt %38 : vector<8x1xf32>
    %40 = vector.broadcast %39 : vector<8x1xf32> to vector<8x32xf32>
    %41 = arith.mulf %31, %40 : vector<8x32xf32>
    %42 = vector.broadcast %2 : vector<1x32xf32> to vector<8x32xf32>
    %43 = arith.mulf %41, %42 : vector<8x32xf32>
    %44 = vector.broadcast %3 : vector<1x32xf32> to vector<8x32xf32>
    %45 = arith.addf %43, %44 : vector<8x32xf32>
    %cst_55 = arith.constant dense<0.000000e+00> : vector<8x32xf32>
    %46 = tpu.matmul %45, %4, %cst_55 {dimension_numbers = #tpu.dot_dimension_numbers<[1], [0], [0], [1], [0, 0, 1, 1], [], []>} : vector<8x32xf32>, vector<32x32xf32>, vector<8x32xf32> -> vector<8x32xf32>
    %47 = vector.broadcast %5 : vector<1x32xf32> to vector<8x32xf32>
    %48 = arith.addf %46, %47 : vector<8x32xf32>
    %cst_56 = arith.constant dense<0.000000e+00> : vector<8x32xf32>
    %49 = tpu.matmul %45, %6, %cst_56 {dimension_numbers = #tpu.dot_dimension_numbers<[1], [0], [0], [1], [0, 0, 1, 1], [], []>} : vector<8x32xf32>, vector<32x32xf32>, vector<8x32xf32> -> vector<8x32xf32>
    %50 = vector.broadcast %7 : vector<1x32xf32> to vector<8x32xf32>
    %51 = arith.addf %49, %50 : vector<8x32xf32>
    %cst_57 = arith.constant dense<0.000000e+00> : vector<8x32xf32>
    %52 = tpu.matmul %45, %8, %cst_57 {dimension_numbers = #tpu.dot_dimension_numbers<[1], [0], [0], [1], [0, 0, 1, 1], [], []>} : vector<8x32xf32>, vector<32x32xf32>, vector<8x32xf32> -> vector<8x32xf32>
    %53 = vector.broadcast %9 : vector<1x32xf32> to vector<8x32xf32>
    %54 = arith.addf %52, %53 : vector<8x32xf32>
    %55 = tpu.transpose %51, [1, 0] : vector<8x32xf32> -> vector<32x8xf32>
    %56 = tpu.transpose %54, [1, 0] : vector<8x32xf32> -> vector<32x8xf32>
    %57 = vector.shape_cast %48 : vector<8x32xf32> to vector<8x32x1xf32>
    %58 = vector.shape_cast %55 : vector<32x8xf32> to vector<1x32x8xf32>
    %59 = vector.broadcast %57 : vector<8x32x1xf32> to vector<8x32x8xf32>
    %60 = vector.broadcast %58 : vector<1x32x8xf32> to vector<8x32x8xf32>
    %61 = arith.mulf %59, %60 : vector<8x32x8xf32>
    %cst_58 = arith.constant dense<0xFF800000> : vector<8x32xf32>
    %62 = vector.multi_reduction <maximumf>, %61, %cst_58 [2] : vector<8x32x8xf32> to vector<8x32xf32>
    %63 = vector.shape_cast %62 : vector<8x32xf32> to vector<8x32x1xf32>
    %64 = vector.broadcast %63 : vector<8x32x1xf32> to vector<8x32x8xf32>
    %65 = arith.subf %61, %64 : vector<8x32x8xf32>
    %66 = math.exp %65 : vector<8x32x8xf32>
    %cst_59 = arith.constant dense<0.000000e+00> : vector<8x32xf32>
    %67 = vector.multi_reduction <add>, %66, %cst_59 [2] : vector<8x32x8xf32> to vector<8x32xf32>
    %68 = vector.shape_cast %67 : vector<8x32xf32> to vector<8x32x1xf32>
    %69 = vector.broadcast %68 : vector<8x32x1xf32> to vector<8x32x8xf32>
    %70 = arith.divf %66, %69 : vector<8x32x8xf32>
    %71 = vector.shape_cast %56 : vector<32x8xf32> to vector<1x32x8xf32>
    %72 = vector.broadcast %71 : vector<1x32x8xf32> to vector<8x32x8xf32>
    %73 = arith.mulf %70, %72 : vector<8x32x8xf32>
    %cst_60 = arith.constant dense<0.000000e+00> : vector<8x32xf32>
    %74 = vector.multi_reduction <add>, %73, %cst_60 [2] : vector<8x32x8xf32> to vector<8x32xf32>
    %cst_61 = arith.constant dense<0.000000e+00> : vector<8x32xf32>
    %75 = tpu.matmul %74, %10, %cst_61 {dimension_numbers = #tpu.dot_dimension_numbers<[1], [0], [0], [1], [0, 0, 1, 1], [], []>} : vector<8x32xf32>, vector<32x32xf32>, vector<8x32xf32> -> vector<8x32xf32>
    %76 = vector.broadcast %11 : vector<1x32xf32> to vector<8x32xf32>
    %77 = arith.addf %75, %76 : vector<8x32xf32>
    %78 = arith.addf %45, %77 : vector<8x32xf32>
    %cst_62 = arith.constant dense<0.000000e+00> : vector<8xf32>
    %79 = vector.multi_reduction <add>, %78, %cst_62 [1] : vector<8x32xf32> to vector<8xf32>
    %80 = vector.shape_cast %79 : vector<8xf32> to vector<8x1xf32>
    %cst_63 = arith.constant 3.200000e+01 : f32
    %81 = vector.broadcast %cst_63 : f32 to vector<8x1xf32>
    %82 = arith.divf %80, %81 : vector<8x1xf32>
    %83 = vector.broadcast %82 : vector<8x1xf32> to vector<8x32xf32>
    %84 = arith.subf %78, %83 : vector<8x32xf32>
    %85 = arith.mulf %84, %84 : vector<8x32xf32>
    %cst_64 = arith.constant dense<0.000000e+00> : vector<8xf32>
    %86 = vector.multi_reduction <add>, %85, %cst_64 [1] : vector<8x32xf32> to vector<8xf32>
    %87 = vector.shape_cast %86 : vector<8xf32> to vector<8x1xf32>
    %cst_65 = arith.constant 3.200000e+01 : f32
    %88 = vector.broadcast %cst_65 : f32 to vector<8x1xf32>
    %89 = arith.divf %87, %88 : vector<8x1xf32>
    %cst_66 = arith.constant 9.99999974E-6 : f32
    %90 = vector.broadcast %cst_66 : f32 to vector<8x1xf32>
    %91 = arith.addf %89, %90 : vector<8x1xf32>
    %92 = math.rsqrt %91 : vector<8x1xf32>
    %93 = vector.broadcast %92 : vector<8x1xf32> to vector<8x32xf32>
    %94 = arith.mulf %84, %93 : vector<8x32xf32>
    %95 = vector.broadcast %12 : vector<1x32xf32> to vector<8x32xf32>
    %96 = arith.mulf %94, %95 : vector<8x32xf32>
    %97 = vector.broadcast %13 : vector<1x32xf32> to vector<8x32xf32>
    %98 = arith.addf %96, %97 : vector<8x32xf32>
    %cst_67 = arith.constant dense<0.000000e+00> : vector<8x64xf32>
    %99 = tpu.matmul %98, %14, %cst_67 {dimension_numbers = #tpu.dot_dimension_numbers<[1], [0], [0], [1], [0, 0, 1, 1], [], []>} : vector<8x32xf32>, vector<32x64xf32>, vector<8x64xf32> -> vector<8x64xf32>
    %100 = vector.broadcast %15 : vector<1x64xf32> to vector<8x64xf32>
    %101 = arith.addf %99, %100 : vector<8x64xf32>
    %cst_68 = arith.constant 5.000000e-01 : f32
    %102 = vector.broadcast %cst_68 : f32 to vector<8x64xf32>
    %103 = arith.mulf %102, %101 : vector<8x64xf32>
    %cst_69 = arith.constant 4.471500e-02 : f32
    %104 = vector.broadcast %cst_69 : f32 to vector<8x64xf32>
    %105 = arith.mulf %104, %101 : vector<8x64xf32>
    %106 = arith.mulf %105, %101 : vector<8x64xf32>
    %107 = arith.mulf %106, %101 : vector<8x64xf32>
    %108 = arith.addf %101, %107 : vector<8x64xf32>
    %cst_70 = arith.constant 0.797884583 : f32
    %109 = vector.broadcast %cst_70 : f32 to vector<8x64xf32>
    %110 = arith.mulf %109, %108 : vector<8x64xf32>
    %111 = math.tanh %110 : vector<8x64xf32>
    %cst_71 = arith.constant 1.000000e+00 : f32
    %112 = vector.broadcast %cst_71 : f32 to vector<8x64xf32>
    %113 = arith.addf %112, %111 : vector<8x64xf32>
    %114 = arith.mulf %103, %113 : vector<8x64xf32>
    %cst_72 = arith.constant dense<0.000000e+00> : vector<8x64xf32>
    %115 = tpu.matmul %114, %16, %cst_72 {dimension_numbers = #tpu.dot_dimension_numbers<[1], [0], [0], [1], [0, 0, 1, 1], [], []>} : vector<8x64xf32>, vector<64x64xf32>, vector<8x64xf32> -> vector<8x64xf32>
    %116 = vector.broadcast %17 : vector<1x64xf32> to vector<8x64xf32>
    %117 = arith.addf %115, %116 : vector<8x64xf32>
    %cst_73 = arith.constant 5.000000e-01 : f32
    %118 = vector.broadcast %cst_73 : f32 to vector<8x64xf32>
    %119 = arith.mulf %118, %117 : vector<8x64xf32>
    %cst_74 = arith.constant 4.471500e-02 : f32
    %120 = vector.broadcast %cst_74 : f32 to vector<8x64xf32>
    %121 = arith.mulf %120, %117 : vector<8x64xf32>
    %122 = arith.mulf %121, %117 : vector<8x64xf32>
    %123 = arith.mulf %122, %117 : vector<8x64xf32>
    %124 = arith.addf %117, %123 : vector<8x64xf32>
    %cst_75 = arith.constant 0.797884583 : f32
    %125 = vector.broadcast %cst_75 : f32 to vector<8x64xf32>
    %126 = arith.mulf %125, %124 : vector<8x64xf32>
    %127 = math.tanh %126 : vector<8x64xf32>
    %cst_76 = arith.constant 1.000000e+00 : f32
    %128 = vector.broadcast %cst_76 : f32 to vector<8x64xf32>
    %129 = arith.addf %128, %127 : vector<8x64xf32>
    %130 = arith.mulf %119, %129 : vector<8x64xf32>
    %cst_77 = arith.constant dense<0.000000e+00> : vector<8x32xf32>
    %131 = tpu.matmul %130, %18, %cst_77 {dimension_numbers = #tpu.dot_dimension_numbers<[1], [0], [0], [1], [0, 0, 1, 1], [], []>} : vector<8x64xf32>, vector<64x32xf32>, vector<8x32xf32> -> vector<8x32xf32>
    %132 = vector.broadcast %19 : vector<1x32xf32> to vector<8x32xf32>
    %133 = arith.addf %131, %132 : vector<8x32xf32>
    %134 = arith.addf %98, %133 : vector<8x32xf32>
    %cst_78 = arith.constant dense<0.000000e+00> : vector<8xf32>
    %135 = vector.multi_reduction <add>, %134, %cst_78 [1] : vector<8x32xf32> to vector<8xf32>
    %136 = vector.shape_cast %135 : vector<8xf32> to vector<8x1xf32>
    %cst_79 = arith.constant 3.200000e+01 : f32
    %137 = vector.broadcast %cst_79 : f32 to vector<8x1xf32>
    %138 = arith.divf %136, %137 : vector<8x1xf32>
    %139 = vector.broadcast %138 : vector<8x1xf32> to vector<8x32xf32>
    %140 = arith.subf %134, %139 : vector<8x32xf32>
    %141 = arith.mulf %140, %140 : vector<8x32xf32>
    %cst_80 = arith.constant dense<0.000000e+00> : vector<8xf32>
    %142 = vector.multi_reduction <add>, %141, %cst_80 [1] : vector<8x32xf32> to vector<8xf32>
    %143 = vector.shape_cast %142 : vector<8xf32> to vector<8x1xf32>
    %cst_81 = arith.constant 3.200000e+01 : f32
    %144 = vector.broadcast %cst_81 : f32 to vector<8x1xf32>
    %145 = arith.divf %143, %144 : vector<8x1xf32>
    %cst_82 = arith.constant 9.99999974E-6 : f32
    %146 = vector.broadcast %cst_82 : f32 to vector<8x1xf32>
    %147 = arith.addf %145, %146 : vector<8x1xf32>
    %148 = math.rsqrt %147 : vector<8x1xf32>
    %149 = vector.broadcast %148 : vector<8x1xf32> to vector<8x32xf32>
    %150 = arith.mulf %140, %149 : vector<8x32xf32>
    %151 = vector.broadcast %20 : vector<1x32xf32> to vector<8x32xf32>
    %152 = arith.mulf %150, %151 : vector<8x32xf32>
    %153 = vector.broadcast %21 : vector<1x32xf32> to vector<8x32xf32>
    %154 = arith.addf %152, %153 : vector<8x32xf32>
    %cst_83 = arith.constant dense<0.000000e+00> : vector<8x4xf32>
    %155 = tpu.matmul %154, %22, %cst_83 {dimension_numbers = #tpu.dot_dimension_numbers<[1], [0], [0], [1], [0, 0, 1, 1], [], []>} : vector<8x32xf32>, vector<32x4xf32>, vector<8x4xf32> -> vector<8x4xf32>
    %156 = vector.broadcast %23 : vector<1x4xf32> to vector<8x4xf32>
    %157 = arith.addf %155, %156 : vector<8x4xf32>
    %158 = math.tanh %157 : vector<8x4xf32>
    %cst_84 = arith.constant dense<0.000000e+00> : vector<8x16xf32>
    %159 = tpu.matmul %154, %24, %cst_84 {dimension_numbers = #tpu.dot_dimension_numbers<[1], [0], [0], [1], [0, 0, 1, 1], [], []>} : vector<8x32xf32>, vector<32x16xf32>, vector<8x16xf32> -> vector<8x16xf32>
    %160 = vector.broadcast %25 : vector<1x16xf32> to vector<8x16xf32>
    %161 = arith.addf %159, %160 : vector<8x16xf32>
    %162 = vector.extract_strided_slice %161 {offsets = [0, 0], sizes = [8, 1], strides = [1, 1]} : vector<8x16xf32> to vector<8x1xf32>
    %163 = vector.extract_strided_slice %161 {offsets = [0, 0], sizes = [8, 1], strides = [1, 1]} : vector<8x16xf32> to vector<8x1xf32>
    %164 = arith.mulf %162, %163 : vector<8x1xf32>
    %165 = vector.extract_strided_slice %161 {offsets = [0, 1], sizes = [8, 1], strides = [1, 1]} : vector<8x16xf32> to vector<8x1xf32>
    %166 = vector.extract_strided_slice %161 {offsets = [0, 1], sizes = [8, 1], strides = [1, 1]} : vector<8x16xf32> to vector<8x1xf32>
    %167 = arith.mulf %165, %166 : vector<8x1xf32>
    %168 = arith.addf %164, %167 : vector<8x1xf32>
    %169 = vector.extract_strided_slice %161 {offsets = [0, 2], sizes = [8, 1], strides = [1, 1]} : vector<8x16xf32> to vector<8x1xf32>
    %170 = vector.extract_strided_slice %161 {offsets = [0, 2], sizes = [8, 1], strides = [1, 1]} : vector<8x16xf32> to vector<8x1xf32>
    %171 = arith.mulf %169, %170 : vector<8x1xf32>
    %172 = arith.addf %168, %171 : vector<8x1xf32>
    %173 = vector.extract_strided_slice %161 {offsets = [0, 3], sizes = [8, 1], strides = [1, 1]} : vector<8x16xf32> to vector<8x1xf32>
    %174 = vector.extract_strided_slice %161 {offsets = [0, 3], sizes = [8, 1], strides = [1, 1]} : vector<8x16xf32> to vector<8x1xf32>
    %175 = arith.mulf %173, %174 : vector<8x1xf32>
    %176 = arith.addf %172, %175 : vector<8x1xf32>
    %cst_85 = arith.constant 1.000000e-03 : f32
    %177 = vector.broadcast %cst_85 : f32 to vector<8x1xf32>
    %178 = arith.mulf %177, %176 : vector<8x1xf32>
    %cst_86 = arith.constant 9.99999974E-6 : f32
    %179 = vector.broadcast %cst_86 : f32 to vector<8x1xf32>
    %180 = arith.addf %178, %179 : vector<8x1xf32>
    %181 = vector.extract_strided_slice %161 {offsets = [0, 4], sizes = [8, 1], strides = [1, 1]} : vector<8x16xf32> to vector<8x1xf32>
    %182 = vector.extract_strided_slice %161 {offsets = [0, 0], sizes = [8, 1], strides = [1, 1]} : vector<8x16xf32> to vector<8x1xf32>
    %183 = arith.mulf %181, %182 : vector<8x1xf32>
    %184 = vector.extract_strided_slice %161 {offsets = [0, 5], sizes = [8, 1], strides = [1, 1]} : vector<8x16xf32> to vector<8x1xf32>
    %185 = vector.extract_strided_slice %161 {offsets = [0, 1], sizes = [8, 1], strides = [1, 1]} : vector<8x16xf32> to vector<8x1xf32>
    %186 = arith.mulf %184, %185 : vector<8x1xf32>
    %187 = arith.addf %183, %186 : vector<8x1xf32>
    %188 = vector.extract_strided_slice %161 {offsets = [0, 6], sizes = [8, 1], strides = [1, 1]} : vector<8x16xf32> to vector<8x1xf32>
    %189 = vector.extract_strided_slice %161 {offsets = [0, 2], sizes = [8, 1], strides = [1, 1]} : vector<8x16xf32> to vector<8x1xf32>
    %190 = arith.mulf %188, %189 : vector<8x1xf32>
    %191 = arith.addf %187, %190 : vector<8x1xf32>
    %192 = vector.extract_strided_slice %161 {offsets = [0, 7], sizes = [8, 1], strides = [1, 1]} : vector<8x16xf32> to vector<8x1xf32>
    %193 = vector.extract_strided_slice %161 {offsets = [0, 3], sizes = [8, 1], strides = [1, 1]} : vector<8x16xf32> to vector<8x1xf32>
    %194 = arith.mulf %192, %193 : vector<8x1xf32>
    %195 = arith.addf %191, %194 : vector<8x1xf32>
    %cst_87 = arith.constant 1.000000e-03 : f32
    %196 = vector.broadcast %cst_87 : f32 to vector<8x1xf32>
    %197 = arith.mulf %196, %195 : vector<8x1xf32>
    %198 = vector.extract_strided_slice %161 {offsets = [0, 4], sizes = [8, 1], strides = [1, 1]} : vector<8x16xf32> to vector<8x1xf32>
    %199 = vector.extract_strided_slice %161 {offsets = [0, 4], sizes = [8, 1], strides = [1, 1]} : vector<8x16xf32> to vector<8x1xf32>
    %200 = arith.mulf %198, %199 : vector<8x1xf32>
    %201 = vector.extract_strided_slice %161 {offsets = [0, 5], sizes = [8, 1], strides = [1, 1]} : vector<8x16xf32> to vector<8x1xf32>
    %202 = vector.extract_strided_slice %161 {offsets = [0, 5], sizes = [8, 1], strides = [1, 1]} : vector<8x16xf32> to vector<8x1xf32>
    %203 = arith.mulf %201, %202 : vector<8x1xf32>
    %204 = arith.addf %200, %203 : vector<8x1xf32>
    %205 = vector.extract_strided_slice %161 {offsets = [0, 6], sizes = [8, 1], strides = [1, 1]} : vector<8x16xf32> to vector<8x1xf32>
    %206 = vector.extract_strided_slice %161 {offsets = [0, 6], sizes = [8, 1], strides = [1, 1]} : vector<8x16xf32> to vector<8x1xf32>
    %207 = arith.mulf %205, %206 : vector<8x1xf32>
    %208 = arith.addf %204, %207 : vector<8x1xf32>
    %209 = vector.extract_strided_slice %161 {offsets = [0, 7], sizes = [8, 1], strides = [1, 1]} : vector<8x16xf32> to vector<8x1xf32>
    %210 = vector.extract_strided_slice %161 {offsets = [0, 7], sizes = [8, 1], strides = [1, 1]} : vector<8x16xf32> to vector<8x1xf32>
    %211 = arith.mulf %209, %210 : vector<8x1xf32>
    %212 = arith.addf %208, %211 : vector<8x1xf32>
    %cst_88 = arith.constant 1.000000e-03 : f32
    %213 = vector.broadcast %cst_88 : f32 to vector<8x1xf32>
    %214 = arith.mulf %213, %212 : vector<8x1xf32>
    %cst_89 = arith.constant 9.99999974E-6 : f32
    %215 = vector.broadcast %cst_89 : f32 to vector<8x1xf32>
    %216 = arith.addf %214, %215 : vector<8x1xf32>
    %217 = vector.extract_strided_slice %161 {offsets = [0, 8], sizes = [8, 1], strides = [1, 1]} : vector<8x16xf32> to vector<8x1xf32>
    %218 = vector.extract_strided_slice %161 {offsets = [0, 0], sizes = [8, 1], strides = [1, 1]} : vector<8x16xf32> to vector<8x1xf32>
    %219 = arith.mulf %217, %218 : vector<8x1xf32>
    %220 = vector.extract_strided_slice %161 {offsets = [0, 9], sizes = [8, 1], strides = [1, 1]} : vector<8x16xf32> to vector<8x1xf32>
    %221 = vector.extract_strided_slice %161 {offsets = [0, 1], sizes = [8, 1], strides = [1, 1]} : vector<8x16xf32> to vector<8x1xf32>
    %222 = arith.mulf %220, %221 : vector<8x1xf32>
    %223 = arith.addf %219, %222 : vector<8x1xf32>
    %224 = vector.extract_strided_slice %161 {offsets = [0, 10], sizes = [8, 1], strides = [1, 1]} : vector<8x16xf32> to vector<8x1xf32>
    %225 = vector.extract_strided_slice %161 {offsets = [0, 2], sizes = [8, 1], strides = [1, 1]} : vector<8x16xf32> to vector<8x1xf32>
    %226 = arith.mulf %224, %225 : vector<8x1xf32>
    %227 = arith.addf %223, %226 : vector<8x1xf32>
    %228 = vector.extract_strided_slice %161 {offsets = [0, 11], sizes = [8, 1], strides = [1, 1]} : vector<8x16xf32> to vector<8x1xf32>
    %229 = vector.extract_strided_slice %161 {offsets = [0, 3], sizes = [8, 1], strides = [1, 1]} : vector<8x16xf32> to vector<8x1xf32>
    %230 = arith.mulf %228, %229 : vector<8x1xf32>
    %231 = arith.addf %227, %230 : vector<8x1xf32>
    %cst_90 = arith.constant 1.000000e-03 : f32
    %232 = vector.broadcast %cst_90 : f32 to vector<8x1xf32>
    %233 = arith.mulf %232, %231 : vector<8x1xf32>
    %234 = vector.extract_strided_slice %161 {offsets = [0, 8], sizes = [8, 1], strides = [1, 1]} : vector<8x16xf32> to vector<8x1xf32>
    %235 = vector.extract_strided_slice %161 {offsets = [0, 4], sizes = [8, 1], strides = [1, 1]} : vector<8x16xf32> to vector<8x1xf32>
    %236 = arith.mulf %234, %235 : vector<8x1xf32>
    %237 = vector.extract_strided_slice %161 {offsets = [0, 9], sizes = [8, 1], strides = [1, 1]} : vector<8x16xf32> to vector<8x1xf32>
    %238 = vector.extract_strided_slice %161 {offsets = [0, 5], sizes = [8, 1], strides = [1, 1]} : vector<8x16xf32> to vector<8x1xf32>
    %239 = arith.mulf %237, %238 : vector<8x1xf32>
    %240 = arith.addf %236, %239 : vector<8x1xf32>
    %241 = vector.extract_strided_slice %161 {offsets = [0, 10], sizes = [8, 1], strides = [1, 1]} : vector<8x16xf32> to vector<8x1xf32>
    %242 = vector.extract_strided_slice %161 {offsets = [0, 6], sizes = [8, 1], strides = [1, 1]} : vector<8x16xf32> to vector<8x1xf32>
    %243 = arith.mulf %241, %242 : vector<8x1xf32>
    %244 = arith.addf %240, %243 : vector<8x1xf32>
    %245 = vector.extract_strided_slice %161 {offsets = [0, 11], sizes = [8, 1], strides = [1, 1]} : vector<8x16xf32> to vector<8x1xf32>
    %246 = vector.extract_strided_slice %161 {offsets = [0, 7], sizes = [8, 1], strides = [1, 1]} : vector<8x16xf32> to vector<8x1xf32>
    %247 = arith.mulf %245, %246 : vector<8x1xf32>
    %248 = arith.addf %244, %247 : vector<8x1xf32>
    %cst_91 = arith.constant 1.000000e-03 : f32
    %249 = vector.broadcast %cst_91 : f32 to vector<8x1xf32>
    %250 = arith.mulf %249, %248 : vector<8x1xf32>
    %251 = vector.extract_strided_slice %161 {offsets = [0, 8], sizes = [8, 1], strides = [1, 1]} : vector<8x16xf32> to vector<8x1xf32>
    %252 = vector.extract_strided_slice %161 {offsets = [0, 8], sizes = [8, 1], strides = [1, 1]} : vector<8x16xf32> to vector<8x1xf32>
    %253 = arith.mulf %251, %252 : vector<8x1xf32>
    %254 = vector.extract_strided_slice %161 {offsets = [0, 9], sizes = [8, 1], strides = [1, 1]} : vector<8x16xf32> to vector<8x1xf32>
    %255 = vector.extract_strided_slice %161 {offsets = [0, 9], sizes = [8, 1], strides = [1, 1]} : vector<8x16xf32> to vector<8x1xf32>
    %256 = arith.mulf %254, %255 : vector<8x1xf32>
    %257 = arith.addf %253, %256 : vector<8x1xf32>
    %258 = vector.extract_strided_slice %161 {offsets = [0, 10], sizes = [8, 1], strides = [1, 1]} : vector<8x16xf32> to vector<8x1xf32>
    %259 = vector.extract_strided_slice %161 {offsets = [0, 10], sizes = [8, 1], strides = [1, 1]} : vector<8x16xf32> to vector<8x1xf32>
    %260 = arith.mulf %258, %259 : vector<8x1xf32>
    %261 = arith.addf %257, %260 : vector<8x1xf32>
    %262 = vector.extract_strided_slice %161 {offsets = [0, 11], sizes = [8, 1], strides = [1, 1]} : vector<8x16xf32> to vector<8x1xf32>
    %263 = vector.extract_strided_slice %161 {offsets = [0, 11], sizes = [8, 1], strides = [1, 1]} : vector<8x16xf32> to vector<8x1xf32>
    %264 = arith.mulf %262, %263 : vector<8x1xf32>
    %265 = arith.addf %261, %264 : vector<8x1xf32>
    %cst_92 = arith.constant 1.000000e-03 : f32
    %266 = vector.broadcast %cst_92 : f32 to vector<8x1xf32>
    %267 = arith.mulf %266, %265 : vector<8x1xf32>
    %cst_93 = arith.constant 9.99999974E-6 : f32
    %268 = vector.broadcast %cst_93 : f32 to vector<8x1xf32>
    %269 = arith.addf %267, %268 : vector<8x1xf32>
    %270 = vector.extract_strided_slice %161 {offsets = [0, 12], sizes = [8, 1], strides = [1, 1]} : vector<8x16xf32> to vector<8x1xf32>
    %271 = vector.extract_strided_slice %161 {offsets = [0, 0], sizes = [8, 1], strides = [1, 1]} : vector<8x16xf32> to vector<8x1xf32>
    %272 = arith.mulf %270, %271 : vector<8x1xf32>
    %273 = vector.extract_strided_slice %161 {offsets = [0, 13], sizes = [8, 1], strides = [1, 1]} : vector<8x16xf32> to vector<8x1xf32>
    %274 = vector.extract_strided_slice %161 {offsets = [0, 1], sizes = [8, 1], strides = [1, 1]} : vector<8x16xf32> to vector<8x1xf32>
    %275 = arith.mulf %273, %274 : vector<8x1xf32>
    %276 = arith.addf %272, %275 : vector<8x1xf32>
    %277 = vector.extract_strided_slice %161 {offsets = [0, 14], sizes = [8, 1], strides = [1, 1]} : vector<8x16xf32> to vector<8x1xf32>
    %278 = vector.extract_strided_slice %161 {offsets = [0, 2], sizes = [8, 1], strides = [1, 1]} : vector<8x16xf32> to vector<8x1xf32>
    %279 = arith.mulf %277, %278 : vector<8x1xf32>
    %280 = arith.addf %276, %279 : vector<8x1xf32>
    %281 = vector.extract_strided_slice %161 {offsets = [0, 15], sizes = [8, 1], strides = [1, 1]} : vector<8x16xf32> to vector<8x1xf32>
    %282 = vector.extract_strided_slice %161 {offsets = [0, 3], sizes = [8, 1], strides = [1, 1]} : vector<8x16xf32> to vector<8x1xf32>
    %283 = arith.mulf %281, %282 : vector<8x1xf32>
    %284 = arith.addf %280, %283 : vector<8x1xf32>
    %cst_94 = arith.constant 1.000000e-03 : f32
    %285 = vector.broadcast %cst_94 : f32 to vector<8x1xf32>
    %286 = arith.mulf %285, %284 : vector<8x1xf32>
    %287 = vector.extract_strided_slice %161 {offsets = [0, 12], sizes = [8, 1], strides = [1, 1]} : vector<8x16xf32> to vector<8x1xf32>
    %288 = vector.extract_strided_slice %161 {offsets = [0, 4], sizes = [8, 1], strides = [1, 1]} : vector<8x16xf32> to vector<8x1xf32>
    %289 = arith.mulf %287, %288 : vector<8x1xf32>
    %290 = vector.extract_strided_slice %161 {offsets = [0, 13], sizes = [8, 1], strides = [1, 1]} : vector<8x16xf32> to vector<8x1xf32>
    %291 = vector.extract_strided_slice %161 {offsets = [0, 5], sizes = [8, 1], strides = [1, 1]} : vector<8x16xf32> to vector<8x1xf32>
    %292 = arith.mulf %290, %291 : vector<8x1xf32>
    %293 = arith.addf %289, %292 : vector<8x1xf32>
    %294 = vector.extract_strided_slice %161 {offsets = [0, 14], sizes = [8, 1], strides = [1, 1]} : vector<8x16xf32> to vector<8x1xf32>
    %295 = vector.extract_strided_slice %161 {offsets = [0, 6], sizes = [8, 1], strides = [1, 1]} : vector<8x16xf32> to vector<8x1xf32>
    %296 = arith.mulf %294, %295 : vector<8x1xf32>
    %297 = arith.addf %293, %296 : vector<8x1xf32>
    %298 = vector.extract_strided_slice %161 {offsets = [0, 15], sizes = [8, 1], strides = [1, 1]} : vector<8x16xf32> to vector<8x1xf32>
    %299 = vector.extract_strided_slice %161 {offsets = [0, 7], sizes = [8, 1], strides = [1, 1]} : vector<8x16xf32> to vector<8x1xf32>
    %300 = arith.mulf %298, %299 : vector<8x1xf32>
    %301 = arith.addf %297, %300 : vector<8x1xf32>
    %cst_95 = arith.constant 1.000000e-03 : f32
    %302 = vector.broadcast %cst_95 : f32 to vector<8x1xf32>
    %303 = arith.mulf %302, %301 : vector<8x1xf32>
    %304 = vector.extract_strided_slice %161 {offsets = [0, 12], sizes = [8, 1], strides = [1, 1]} : vector<8x16xf32> to vector<8x1xf32>
    %305 = vector.extract_strided_slice %161 {offsets = [0, 8], sizes = [8, 1], strides = [1, 1]} : vector<8x16xf32> to vector<8x1xf32>
    %306 = arith.mulf %304, %305 : vector<8x1xf32>
    %307 = vector.extract_strided_slice %161 {offsets = [0, 13], sizes = [8, 1], strides = [1, 1]} : vector<8x16xf32> to vector<8x1xf32>
    %308 = vector.extract_strided_slice %161 {offsets = [0, 9], sizes = [8, 1], strides = [1, 1]} : vector<8x16xf32> to vector<8x1xf32>
    %309 = arith.mulf %307, %308 : vector<8x1xf32>
    %310 = arith.addf %306, %309 : vector<8x1xf32>
    %311 = vector.extract_strided_slice %161 {offsets = [0, 14], sizes = [8, 1], strides = [1, 1]} : vector<8x16xf32> to vector<8x1xf32>
    %312 = vector.extract_strided_slice %161 {offsets = [0, 10], sizes = [8, 1], strides = [1, 1]} : vector<8x16xf32> to vector<8x1xf32>
    %313 = arith.mulf %311, %312 : vector<8x1xf32>
    %314 = arith.addf %310, %313 : vector<8x1xf32>
    %315 = vector.extract_strided_slice %161 {offsets = [0, 15], sizes = [8, 1], strides = [1, 1]} : vector<8x16xf32> to vector<8x1xf32>
    %316 = vector.extract_strided_slice %161 {offsets = [0, 11], sizes = [8, 1], strides = [1, 1]} : vector<8x16xf32> to vector<8x1xf32>
    %317 = arith.mulf %315, %316 : vector<8x1xf32>
    %318 = arith.addf %314, %317 : vector<8x1xf32>
    %cst_96 = arith.constant 1.000000e-03 : f32
    %319 = vector.broadcast %cst_96 : f32 to vector<8x1xf32>
    %320 = arith.mulf %319, %318 : vector<8x1xf32>
    %321 = vector.extract_strided_slice %161 {offsets = [0, 12], sizes = [8, 1], strides = [1, 1]} : vector<8x16xf32> to vector<8x1xf32>
    %322 = vector.extract_strided_slice %161 {offsets = [0, 12], sizes = [8, 1], strides = [1, 1]} : vector<8x16xf32> to vector<8x1xf32>
    %323 = arith.mulf %321, %322 : vector<8x1xf32>
    %324 = vector.extract_strided_slice %161 {offsets = [0, 13], sizes = [8, 1], strides = [1, 1]} : vector<8x16xf32> to vector<8x1xf32>
    %325 = vector.extract_strided_slice %161 {offsets = [0, 13], sizes = [8, 1], strides = [1, 1]} : vector<8x16xf32> to vector<8x1xf32>
    %326 = arith.mulf %324, %325 : vector<8x1xf32>
    %327 = arith.addf %323, %326 : vector<8x1xf32>
    %328 = vector.extract_strided_slice %161 {offsets = [0, 14], sizes = [8, 1], strides = [1, 1]} : vector<8x16xf32> to vector<8x1xf32>
    %329 = vector.extract_strided_slice %161 {offsets = [0, 14], sizes = [8, 1], strides = [1, 1]} : vector<8x16xf32> to vector<8x1xf32>
    %330 = arith.mulf %328, %329 : vector<8x1xf32>
    %331 = arith.addf %327, %330 : vector<8x1xf32>
    %332 = vector.extract_strided_slice %161 {offsets = [0, 15], sizes = [8, 1], strides = [1, 1]} : vector<8x16xf32> to vector<8x1xf32>
    %333 = vector.extract_strided_slice %161 {offsets = [0, 15], sizes = [8, 1], strides = [1, 1]} : vector<8x16xf32> to vector<8x1xf32>
    %334 = arith.mulf %332, %333 : vector<8x1xf32>
    %335 = arith.addf %331, %334 : vector<8x1xf32>
    %cst_97 = arith.constant 1.000000e-03 : f32
    %336 = vector.broadcast %cst_97 : f32 to vector<8x1xf32>
    %337 = arith.mulf %336, %335 : vector<8x1xf32>
    %cst_98 = arith.constant 9.99999974E-6 : f32
    %338 = vector.broadcast %cst_98 : f32 to vector<8x1xf32>
    %339 = arith.addf %337, %338 : vector<8x1xf32>
    %340 = math.sqrt %180 : vector<8x1xf32>
    %341 = arith.divf %197, %340 : vector<8x1xf32>
    %342 = arith.mulf %341, %341 : vector<8x1xf32>
    %343 = arith.subf %216, %342 : vector<8x1xf32>
    %344 = math.sqrt %343 : vector<8x1xf32>
    %345 = arith.divf %233, %340 : vector<8x1xf32>
    %346 = arith.mulf %345, %341 : vector<8x1xf32>
    %347 = arith.subf %250, %346 : vector<8x1xf32>
    %348 = arith.divf %347, %344 : vector<8x1xf32>
    %349 = arith.mulf %345, %345 : vector<8x1xf32>
    %350 = arith.subf %269, %349 : vector<8x1xf32>
    %351 = arith.mulf %348, %348 : vector<8x1xf32>
    %352 = arith.subf %350, %351 : vector<8x1xf32>
    %353 = math.sqrt %352 : vector<8x1xf32>
    %354 = arith.divf %286, %340 : vector<8x1xf32>
    %355 = arith.mulf %354, %341 : vector<8x1xf32>
    %356 = arith.subf %303, %355 : vector<8x1xf32>
    %357 = arith.divf %356, %344 : vector<8x1xf32>
    %358 = arith.mulf %354, %345 : vector<8x1xf32>
    %359 = arith.subf %320, %358 : vector<8x1xf32>
    %360 = arith.mulf %357, %348 : vector<8x1xf32>
    %361 = arith.subf %359, %360 : vector<8x1xf32>
    %362 = arith.divf %361, %353 : vector<8x1xf32>
    %363 = arith.mulf %354, %354 : vector<8x1xf32>
    %364 = arith.subf %339, %363 : vector<8x1xf32>
    %365 = arith.mulf %357, %357 : vector<8x1xf32>
    %366 = arith.subf %364, %365 : vector<8x1xf32>
    %367 = arith.mulf %362, %362 : vector<8x1xf32>
    %368 = arith.subf %366, %367 : vector<8x1xf32>
    %369 = math.sqrt %368 : vector<8x1xf32>
    %370 = vector.extract_strided_slice %158 {offsets = [0, 0], sizes = [8, 1], strides = [1, 1]} : vector<8x4xf32> to vector<8x1xf32>
    %371 = vector.extract_strided_slice %1 {offsets = [0, 0], sizes = [8, 1], strides = [1, 1]} : vector<8x4xf32> to vector<8x1xf32>
    %372 = arith.mulf %340, %371 : vector<8x1xf32>
    %373 = arith.addf %370, %372 : vector<8x1xf32>
    %374 = vector.extract_strided_slice %158 {offsets = [0, 1], sizes = [8, 1], strides = [1, 1]} : vector<8x4xf32> to vector<8x1xf32>
    %375 = vector.extract_strided_slice %1 {offsets = [0, 0], sizes = [8, 1], strides = [1, 1]} : vector<8x4xf32> to vector<8x1xf32>
    %376 = arith.mulf %341, %375 : vector<8x1xf32>
    %377 = arith.addf %374, %376 : vector<8x1xf32>
    %378 = vector.extract_strided_slice %1 {offsets = [0, 1], sizes = [8, 1], strides = [1, 1]} : vector<8x4xf32> to vector<8x1xf32>
    %379 = arith.mulf %344, %378 : vector<8x1xf32>
    %380 = arith.addf %377, %379 : vector<8x1xf32>
    %381 = vector.extract_strided_slice %158 {offsets = [0, 2], sizes = [8, 1], strides = [1, 1]} : vector<8x4xf32> to vector<8x1xf32>
    %382 = vector.extract_strided_slice %1 {offsets = [0, 0], sizes = [8, 1], strides = [1, 1]} : vector<8x4xf32> to vector<8x1xf32>
    %383 = arith.mulf %345, %382 : vector<8x1xf32>
    %384 = arith.addf %381, %383 : vector<8x1xf32>
    %385 = vector.extract_strided_slice %1 {offsets = [0, 1], sizes = [8, 1], strides = [1, 1]} : vector<8x4xf32> to vector<8x1xf32>
    %386 = arith.mulf %348, %385 : vector<8x1xf32>
    %387 = arith.addf %384, %386 : vector<8x1xf32>
    %388 = vector.extract_strided_slice %1 {offsets = [0, 2], sizes = [8, 1], strides = [1, 1]} : vector<8x4xf32> to vector<8x1xf32>
    %389 = arith.mulf %353, %388 : vector<8x1xf32>
    %390 = arith.addf %387, %389 : vector<8x1xf32>
    %391 = vector.extract_strided_slice %158 {offsets = [0, 3], sizes = [8, 1], strides = [1, 1]} : vector<8x4xf32> to vector<8x1xf32>
    %392 = vector.extract_strided_slice %1 {offsets = [0, 0], sizes = [8, 1], strides = [1, 1]} : vector<8x4xf32> to vector<8x1xf32>
    %393 = arith.mulf %354, %392 : vector<8x1xf32>
    %394 = arith.addf %391, %393 : vector<8x1xf32>
    %395 = vector.extract_strided_slice %1 {offsets = [0, 1], sizes = [8, 1], strides = [1, 1]} : vector<8x4xf32> to vector<8x1xf32>
    %396 = arith.mulf %357, %395 : vector<8x1xf32>
    %397 = arith.addf %394, %396 : vector<8x1xf32>
    %398 = vector.extract_strided_slice %1 {offsets = [0, 2], sizes = [8, 1], strides = [1, 1]} : vector<8x4xf32> to vector<8x1xf32>
    %399 = arith.mulf %362, %398 : vector<8x1xf32>
    %400 = arith.addf %397, %399 : vector<8x1xf32>
    %401 = vector.extract_strided_slice %1 {offsets = [0, 3], sizes = [8, 1], strides = [1, 1]} : vector<8x4xf32> to vector<8x1xf32>
    %402 = arith.mulf %369, %401 : vector<8x1xf32>
    %403 = arith.addf %400, %402 : vector<8x1xf32>
    %404 = tpu.concatenate %373, %380, %390, %403 in 1 : vector<8x1xf32>, vector<8x1xf32>, vector<8x1xf32>, vector<8x1xf32> -> vector<8x4xf32>
    %405 = arith.mulf %1, %1 : vector<8x4xf32>
    %cst_99 = arith.constant dense<0.000000e+00> : vector<8xf32>
    %406 = vector.multi_reduction <add>, %405, %cst_99 [1] : vector<8x4xf32> to vector<8xf32>
    %407 = vector.shape_cast %406 : vector<8xf32> to vector<8x1xf32>
    %408 = math.log %340 : vector<8x1xf32>
    %cst_100 = arith.constant 2.000000e+00 : f32
    %409 = vector.broadcast %cst_100 : f32 to vector<8x1xf32>
    %410 = arith.mulf %409, %408 : vector<8x1xf32>
    %411 = math.log %344 : vector<8x1xf32>
    %cst_101 = arith.constant 2.000000e+00 : f32
    %412 = vector.broadcast %cst_101 : f32 to vector<8x1xf32>
    %413 = arith.mulf %412, %411 : vector<8x1xf32>
    %414 = arith.addf %410, %413 : vector<8x1xf32>
    %415 = math.log %353 : vector<8x1xf32>
    %cst_102 = arith.constant 2.000000e+00 : f32
    %416 = vector.broadcast %cst_102 : f32 to vector<8x1xf32>
    %417 = arith.mulf %416, %415 : vector<8x1xf32>
    %418 = arith.addf %414, %417 : vector<8x1xf32>
    %419 = math.log %369 : vector<8x1xf32>
    %cst_103 = arith.constant 2.000000e+00 : f32
    %420 = vector.broadcast %cst_103 : f32 to vector<8x1xf32>
    %421 = arith.mulf %420, %419 : vector<8x1xf32>
    %422 = arith.addf %418, %421 : vector<8x1xf32>
    %cst_104 = arith.constant 7.35150814 : f32
    %423 = vector.broadcast %cst_104 : f32 to vector<8x1xf32>
    %424 = arith.addf %423, %407 : vector<8x1xf32>
    %cst_105 = arith.constant -5.000000e-01 : f32
    %425 = vector.broadcast %cst_105 : f32 to vector<8x1xf32>
    %426 = arith.mulf %425, %424 : vector<8x1xf32>
    %cst_106 = arith.constant 5.000000e-01 : f32
    %427 = vector.broadcast %cst_106 : f32 to vector<8x1xf32>
    %428 = arith.mulf %427, %422 : vector<8x1xf32>
    %429 = arith.subf %426, %428 : vector<8x1xf32>
    %cst_107 = arith.constant 0.693147182 : f32
    %430 = vector.broadcast %cst_107 : f32 to vector<8x4xf32>
    %431 = arith.subf %430, %404 : vector<8x4xf32>
    %cst_108 = arith.constant -2.000000e+00 : f32
    %432 = vector.broadcast %cst_108 : f32 to vector<8x4xf32>
    %433 = arith.mulf %432, %404 : vector<8x4xf32>
    %cst_109 = arith.constant 0.000000e+00 : f32
    %434 = vector.broadcast %cst_109 : f32 to vector<8x4xf32>
    %435 = arith.maximumf %433, %434 : vector<8x4xf32>
    %436 = math.absf %433 : vector<8x4xf32>
    %cst_110 = arith.constant 0.000000e+00 : f32
    %437 = vector.broadcast %cst_110 : f32 to vector<8x4xf32>
    %438 = arith.subf %437, %436 : vector<8x4xf32>
    %439 = math.exp %438 : vector<8x4xf32>
    %cst_111 = arith.constant 1.000000e+00 : f32
    %440 = vector.broadcast %cst_111 : f32 to vector<8x4xf32>
    %441 = arith.addf %440, %439 : vector<8x4xf32>
    %442 = math.log %441 : vector<8x4xf32>
    %443 = arith.addf %435, %442 : vector<8x4xf32>
    %444 = arith.subf %431, %443 : vector<8x4xf32>
    %cst_112 = arith.constant 2.000000e+00 : f32
    %445 = vector.broadcast %cst_112 : f32 to vector<8x4xf32>
    %446 = arith.mulf %445, %444 : vector<8x4xf32>
    %cst_113 = arith.constant dense<0.000000e+00> : vector<8xf32>
    %447 = vector.multi_reduction <add>, %446, %cst_113 [1] : vector<8x4xf32> to vector<8xf32>
    %448 = vector.shape_cast %447 : vector<8xf32> to vector<8x1xf32>
    %449 = arith.subf %429, %448 : vector<8x1xf32>
    %c0_114 = arith.constant 0 : index
    %c0_115 = arith.constant 0 : index
    %450 = vector.load %arg26[%c0_114, %c0_115] : memref<8x1xf32, #tpu.memory_space<vmem>>, vector<8x1xf32>
    tpu.vector_store %arg26[%c0_114, %c0_115], %449 {strides = array<i32>} : memref<8x1xf32, #tpu.memory_space<vmem>>, vector<8x1xf32>,
    %c0_116 = arith.constant 0 : index
    %c0_117 = arith.constant 0 : index
    %451 = vector.load %arg27[%c0_116, %c0_117] : memref<8x4xf32, #tpu.memory_space<vmem>>, vector<8x4xf32>
    tpu.vector_store %arg27[%c0_116, %c0_117], %404 {strides = array<i32>} : memref<8x4xf32, #tpu.memory_space<vmem>>, vector<8x4xf32>,
    return
  }
}

</mosaic_0001>

<bundles_post_ra>
// kernel: ppo_policy_forward.1
= control target key start
LH: loop header
LB: loop body
LE: loop exit
PB: predicated region body
PF: predicated region fallthrough
CT: control target
= control target key end

     0   :  { %s4319_s0 = inlined_call_operand.hbm [shape: f32[8,32], index: 0, kind: input, shape index: {}]   ;;  %s4320_s1 = inlined_call_operand.vmem [shape: f32[8,4], index: 1, kind: input, shape index: {}]   ;;  %s4321_s2 = inlined_call_operand.hbm [shape: f32[1,32], index: 2, kind: input, shape index: {}]   ;;  %s4322_s3 = inlined_call_operand.hbm [shape: f32[1,32], index: 3, kind: input, shape index: {}]   ;;  %s4323_s4 = inlined_call_operand.vmem [shape: f32[32,32], index: 4, kind: input, shape index: {}]   ;;  %s4324_s5 = inlined_call_operand.hbm [shape: f32[1,32], index: 5, kind: input, shape index: {}]   ;;  %s4325_s6 = inlined_call_operand.vmem [shape: f32[32,32], index: 6, kind: input, shape index: {}]   ;;  %s4326_s7 = inlined_call_operand.hbm [shape: f32[1,32], index: 7, kind: input, shape index: {}]   ;;  %s4327_s8 = inlined_call_operand.vmem [shape: f32[32,32], index: 8, kind: input, shape index: {}]   ;;  %s4328_s9 = inlined_call_operand.hbm [shape: f32[1,32], index: 9, kind: input, shape index: {}]   ;;  %s4329_s10 = inlined_call_operand.vmem [shape: f32[32,32], index: 10, kind: input, shape index: {}]   ;;  %s4330_s11 = inlined_call_operand.hbm [shape: f32[1,32], index: 11, kind: input, shape index: {}]   ;;  %s4331_s12 = inlined_call_operand.hbm [shape: f32[1,32], index: 12, kind: input, shape index: {}]   ;;  %s4332_s13 = inlined_call_operand.hbm [shape: f32[1,32], index: 13, kind: input, shape index: {}]   ;;  %s4333_s14 = inlined_call_operand.hbm [shape: f32[32,64], index: 14, kind: input, shape index: {}]   ;;  %s4334_s15 = inlined_call_operand.hbm [shape: f32[1,64], index: 15, kind: input, shape index: {}]   ;;  %s4335_s16 = inlined_call_operand.vmem [shape: f32[64,64], index: 16, kind: input, shape index: {}]   ;;  %s4336_s17 = inlined_call_operand.hbm [shape: f32[1,64], index: 17, kind: input, shape index: {}]   ;;  %s4337_s18 = inlined_call_operand.vmem [shape: f32[64,32], index: 18, kind: input, shape index: {}]   ;;  %s4338_s19 = inlined_call_operand.hbm [shape: f32[1,32], index: 19, kind: input, shape index: {}]   ;;  %s4339_s20 = inlined_call_operand.hbm [shape: f32[1,32], index: 20, kind: input, shape index: {}]   ;;  %s4340_s21 = inlined_call_operand.hbm [shape: f32[1,32], index: 21, kind: input, shape index: {}]   ;;  %s4341_s22 = inlined_call_operand.vmem [shape: f32[32,4], index: 22, kind: input, shape index: {}]   ;;  %s4342_s23 = inlined_call_operand.hbm [shape: f32[1,4], index: 23, kind: input, shape index: {}]   ;;  %s4343_s24 = inlined_call_operand.vmem [shape: f32[32,16], index: 24, kind: input, shape index: {}]   ;;  %s4344_s25 = inlined_call_operand.hbm [shape: f32[1,16], index: 25, kind: input, shape index: {}]   ;;  %s4345_s26 = inlined_call_operand.vmem [shape: f32[8,1], index: 26, kind: output, shape index: {0}]   ;;  %s4346_s27 = inlined_call_operand.vmem [shape: f32[8,4], index: 27, kind: output, shape index: {1}]  }
   0x1   :  { %4351 = sst [smem:[#allocation37_spill]] %s4319_s0 }
   0x2   :  { %4352 = sst [smem:[#allocation38_spill]] %s4320_s1 }
   0x3   :  { %4353 = sst [smem:[#allocation39_spill]] %s4321_s2 }
   0x4   :  { %4354 = sst [smem:[#allocation40_spill]] %s4322_s3 }
   0x5   :  { %4355 = sst [smem:[#allocation41_spill]] %s4323_s4 }
   0x6   :  { %4356 = sst [smem:[#allocation42_spill]] %s4324_s5 }
   0x7   :  { %4357 = sst [smem:[#allocation43_spill]] %s4325_s6 }
   0x8   :  { %4358 = sst [smem:[#allocation44_spill]] %s4326_s7 }
   0x9   :  { %4359 = sst [smem:[#allocation45_spill]] %s4327_s8 }
   0xa   :  { %4360 = sst [smem:[#allocation46_spill]] %s4328_s9 }
   0xb   :  { %4361 = sst [smem:[#allocation47_spill]] %s4329_s10 }
   0xc   :  { %4362 = sst [smem:[#allocation48_spill]] %s4330_s11 }
   0xd   :  { %33 = vsyncpa [#allocation3], 0 }
   0xe   :  { %34 = vsyncpa [#allocation5], 0 }
   0xf   :  { %35 = vsyncpa [#allocation8], 0 }
  0x10   :  { %36 = vsyncpa [#allocation11], 0 }
  0x11   :  { %37 = vsyncpa [#allocation14], 0 }
  0x12   :  { %38 = vsyncpa [#allocation17], 0 }
  0x13   :  { %39 = vsyncpa [#allocation20], 0 }
  0x14   :  { %40 = vsyncpa [#allocation23], 0 }
  0x15   :  { %41 = vsyncpa [#allocation26], 0  ;;  %s3173_s7 = smov [#allocation4]   ;;  %s3174_s8 = smov [#allocation7]  }
  0x16   :  { %s60_s4 = sshll.u32 %s3173_s7, 4  ;;  %s82_s30 = sshll.u32 %s3174_s8, 4  ;;  %s61_s4 = int_to_ptr.vmem [resolvable:$true] %s60_s4  ;;  %s83_s30 = int_to_ptr.vmem [resolvable:$true] %s82_s30 }
  0x17   :  { %s2823_s9 = scalar_lea.vmem %s61_s4, 16  ;;  %s2827_s5 = scalar_lea.vmem %s61_s4, 32 }
  0x18   :  { %p2824_p0 = scmp.ne.s32.totalorder %s61_s4, %s2823_s9  ;;  %p2828_p1 = scmp.lt.s32.totalorder %s61_s4, %s61_s4 }
  0x19   :  { %p2829_p2 = scmp.lt.s32.totalorder %s2827_s5, %s2823_s9 }
  0x1b   :  { %p2830_p3 = por %p2829_p2, %p2828_p1 }
  0x1d   :  { %p2831_p4 = pnand %p2830_p3, %p2824_p0 }
  0x1f   :  { %2834 = shalt.err (!%p2831_p4)
}
  0x20   :  { %s4363_s10 = sld [smem:[#allocation39_spill]]  ;;  %s2843_s29 = scalar_lea.vmem %s83_s30, 16 }
  0x21   :  { %p2844_p5 = scmp.ne.s32.totalorder %s83_s30, %s2843_s29  ;;  %s2847_s1 = scalar_lea.vmem %s83_s30, 32 }
  0x22   :  { %p2848_p6 = scmp.lt.s32.totalorder %s83_s30, %s83_s30  ;;  %p2849_p7 = scmp.lt.s32.totalorder %s2847_s1, %s2843_s29 }
  0x24   :  { %p2850_p8 = por %p2849_p7, %p2848_p6 }
  0x26   :  { %63 = dma.hbm_to_vmem [thread:$0]  %s4363_s10, 16, %s61_s4, [#allocation5]  }
  0x27   :  { %p2851_p9 = pnand %p2850_p8, %p2844_p5 }
  0x29   :  { %2854 = shalt.err (!%p2851_p9)
}
  0x2a   :  { %s4364_s2 = sld [smem:[#allocation42_spill]]  ;;  %s3175_s3 = smov [#allocation10]  }
  0x2b   :  { %s106_s7 = sshll.u32 %s3175_s3, 4  ;;  %s3176_s8 = smov [#allocation13]   ;;  %s107_s7 = int_to_ptr.vmem [resolvable:$true] %s106_s7 }
  0x2c   :  { %s128_s9 = sshll.u32 %s3176_s8, 4  ;;  %s2863_s5 = scalar_lea.vmem %s107_s7, 16  ;;  %s129_s9 = int_to_ptr.vmem [resolvable:$true] %s128_s9 }
  0x2d   :  { %p2864_p10 = scmp.ne.s32.totalorder %s107_s7, %s2863_s5  ;;  %s2867_s4 = scalar_lea.vmem %s107_s7, 32 }
  0x2e   :  { %p2868_p11 = scmp.lt.s32.totalorder %s107_s7, %s107_s7  ;;  %p2869_p12 = scmp.lt.s32.totalorder %s2867_s4, %s2863_s5 }
  0x30   :  { %85 = dma.hbm_to_vmem [thread:$0]  %s4364_s2, 16, %s83_s30, [#allocation8]  }
  0x31   :  { %p2870_p13 = por %p2869_p12, %p2868_p11 }
  0x33   :  { %p2871_p0 = pnand %p2870_p13, %p2864_p10 }
  0x35   :  { %2874 = shalt.err (!%p2871_p0)
}
  0x36   :  { %s4365_s10 = sld [smem:[#allocation46_spill]]  ;;  %s2883_s29 = scalar_lea.vmem %s129_s9, 16 }
  0x37   :  { %p2884_p1 = scmp.ne.s32.totalorder %s129_s9, %s2883_s29  ;;  %s2887_s30 = scalar_lea.vmem %s129_s9, 32 }
  0x38   :  { %p2888_p2 = scmp.lt.s32.totalorder %s129_s9, %s129_s9  ;;  %p2889_p3 = scmp.lt.s32.totalorder %s2887_s30, %s2883_s29 }
  0x3a   :  { %p2890_p4 = por %p2889_p3, %p2888_p2 }
  0x3c   :  { %109 = dma.hbm_to_vmem [thread:$0]  %s4365_s10, 16, %s107_s7, [#allocation11]  }
  0x3d   :  { %p2891_p5 = pnand %p2890_p4, %p2884_p1 }
  0x3f   :  { %2894 = shalt.err (!%p2891_p5)
}
  0x40   :  { %131 = dma.hbm_to_vmem [thread:$0]  %s4331_s12, 16, %s129_s9, [#allocation14]  }
  0x41   :  { %s3177_s11 = smov [#allocation16]  }
  0x42   :  { %s147_s2 = sshll.u32 %s3177_s11, 4  ;;  %s148_s2 = int_to_ptr.vmem [resolvable:$true] %s147_s2 }
  0x43   :  { %s2903_s3 = scalar_lea.vmem %s148_s2, 512  ;;  %p2908_p7 = scmp.lt.s32.totalorder %s148_s2, %s148_s2 }
  0x44   :  { %p2904_p6 = scmp.ne.s32.totalorder %s148_s2, %s2903_s3  ;;  %p2909_p8 = scmp.lt.s32.totalorder %s2903_s3, %s2903_s3 }
  0x46   :  { %p2910_p9 = por %p2909_p8, %p2908_p7 }
  0x48   :  { %p2911_p10 = pnand %p2910_p9, %p2904_p6 }
  0x4a   :  { %2914 = shalt.err (!%p2911_p10)
}
  0x4b   :  { %s3178_s7 = smov 128   ;;  %s3179_s8 = smov 8  }
  0x4c   :  { %153 = dma.hbm_to_vmem [thread:$0]  %s4333_s14, 512, %s148_s2, [#allocation17], %s3178_s7, %s3178_s7, %s3179_s8  }
  0x4d   :  { %s3180_s28 = smov [#allocation19]   ;;  %s3181_s12 = smov [#allocation22]  }
  0x4e   :  { %s172_s0 = sshll.u32 %s3180_s28, 4  ;;  %s194_s9 = sshll.u32 %s3181_s12, 4  ;;  %s173_s0 = int_to_ptr.vmem [resolvable:$true] %s172_s0  ;;  %s195_s9 = int_to_ptr.vmem [resolvable:$true] %s194_s9 }
  0x4f   :  { %s2923_s10 = scalar_lea.vmem %s173_s0, 16  ;;  %s2927_s29 = scalar_lea.vmem %s173_s0, 32 }
  0x50   :  { %p2924_p11 = scmp.ne.s32.totalorder %s173_s0, %s2923_s10  ;;  %p2928_p12 = scmp.lt.s32.totalorder %s173_s0, %s173_s0 }
  0x51   :  { %p2929_p13 = scmp.lt.s32.totalorder %s2927_s29, %s2923_s10 }
  0x53   :  { %p2930_p0 = por %p2929_p13, %p2928_p12 }
  0x55   :  { %p2931_p1 = pnand %p2930_p0, %p2924_p11 }
  0x57   :  { %2934 = shalt.err (!%p2931_p1)
}
  0x58   :  { %175 = dma.hbm_to_vmem [thread:$0]  %s4336_s17, 16, %s173_s0, [#allocation20]  }
  0x59   :  { %s2943_s6 = scalar_lea.vmem %s195_s9, 16  ;;  %s2947_s14 = scalar_lea.vmem %s195_s9, 32 }
  0x5a   :  { %p2944_p2 = scmp.ne.s32.totalorder %s195_s9, %s2943_s6  ;;  %p2948_p3 = scmp.lt.s32.totalorder %s195_s9, %s195_s9 }
  0x5b   :  { %p2949_p4 = scmp.lt.s32.totalorder %s2947_s14, %s2943_s6 }
  0x5d   :  { %p2950_p5 = por %p2949_p4, %p2948_p3 }
  0x5f   :  { %p2951_p6 = pnand %p2950_p5, %p2944_p2 }
  0x61   :  { %2954 = shalt.err (!%p2951_p6)
}
  0x62   :  { %197 = dma.hbm_to_vmem [thread:$0]  %s4339_s20, 16, %s195_s9, [#allocation23]  }
  0x63   :  { %s3182_s3 = smov [#allocation25]   ;;  %s3183_s5 = smov [#allocation2]  }
  0x64   :  { %s216_s7 = sshll.u32 %s3182_s3, 4  ;;  %s48_s4 = sshll.u32 %s3183_s5, 4  ;;  %s217_s7 = int_to_ptr.vmem [resolvable:$true] %s216_s7  ;;  %s49_s4 = int_to_ptr.vmem [resolvable:$true] %s48_s4 }
  0x65   :  { %s2963_s28 = scalar_lea.vmem %s217_s7, 16  ;;  %s2967_s17 = scalar_lea.vmem %s217_s7, 32 }
  0x66   :  { %p2964_p7 = scmp.ne.s32.totalorder %s217_s7, %s2963_s28  ;;  %p2968_p8 = scmp.lt.s32.totalorder %s217_s7, %s217_s7 }
  0x67   :  { %p2969_p9 = scmp.lt.s32.totalorder %s2967_s17, %s2963_s28 }
  0x69   :  { %p2970_p10 = por %p2969_p9, %p2968_p8 }
  0x6b   :  { %p2971_p11 = pnand %p2970_p10, %p2964_p7 }
  0x6d   :  { %2974 = shalt.err (!%p2971_p11)
}
  0x6e   :  { %219 = dma.hbm_to_vmem [thread:$0]  %s4342_s23, 16, %s217_s7, [#allocation26]  }
  0x6f   :  { %s2983_s10 = scalar_lea.vmem %s49_s4, 128  ;;  %p2988_p13 = scmp.lt.s32.totalorder %s49_s4, %s49_s4 }
  0x70   :  { %p2984_p12 = scmp.ne.s32.totalorder %s49_s4, %s2983_s10  ;;  %p2989_p0 = scmp.lt.s32.totalorder %s2983_s10, %s2983_s10 }
  0x72   :  { %p2990_p1 = por %p2989_p0, %p2988_p13 }
  0x74   :  { %p2991_p2 = pnand %p2990_p1, %p2984_p12 }
  0x76   :  { %2994 = shalt.err (!%p2991_p2)
}
  0x77   :  { %s4366_s29 = sld [smem:[#allocation37_spill]]  ;;  %s3184_s30 = smov [#allocation6]  }
  0x78   :  { %s70_s1 = sshll.u32 %s3184_s30, 4  ;;  %s3185_s6 = smov [#allocation9]   ;;  %s71_s1 = int_to_ptr.vmem [resolvable:$true] %s70_s1 }
  0x79   :  { %s94_s14 = sshll.u32 %s3185_s6, 4  ;;  %s3003_s11 = scalar_lea.vmem %s71_s1, 16  ;;  %s95_s14 = int_to_ptr.vmem [resolvable:$true] %s94_s14 }
  0x7a   :  { %p3004_p3 = scmp.ne.s32.totalorder %s71_s1, %s3003_s11  ;;  %s3007_s23 = scalar_lea.vmem %s71_s1, 32 }
  0x7b   :  { %p3008_p4 = scmp.lt.s32.totalorder %s71_s1, %s71_s1  ;;  %p3009_p5 = scmp.lt.s32.totalorder %s3007_s23, %s3003_s11 }
  0x7d   :  { %51 = dma.hbm_to_vmem [thread:$0]  %s4366_s29, 128, %s49_s4, [#allocation3]  }
  0x7e   :  { %p3010_p6 = por %p3009_p5, %p3008_p4 }
  0x80   :  { %p3011_p7 = pnand %p3010_p6, %p3004_p3 }
  0x82   :  { %3014 = shalt.err (!%p3011_p7)
}
  0x83   :  { %s4367_s7 = sld [smem:[#allocation40_spill]]  ;;  %s3023_s5 = scalar_lea.vmem %s95_s14, 16 }
  0x84   :  { %p3024_p8 = scmp.ne.s32.totalorder %s95_s14, %s3023_s5  ;;  %s3027_s4 = scalar_lea.vmem %s95_s14, 32 }
  0x85   :  { %p3028_p9 = scmp.lt.s32.totalorder %s95_s14, %s95_s14  ;;  %p3029_p10 = scmp.lt.s32.totalorder %s3027_s4, %s3023_s5 }
  0x87   :  { %p3030_p11 = por %p3029_p10, %p3028_p9 }
  0x89   :  { %73 = dma.hbm_to_vmem [thread:$0]  %s4367_s7, 16, %s71_s1, [#allocation5]  }
  0x8a   :  { %p3031_p12 = pnand %p3030_p11, %p3024_p8 }
  0x8c   :  { %3034 = shalt.err (!%p3031_p12)
}
  0x8d   :  { %s4368_s0 = sld [smem:[#allocation44_spill]]  ;;  %s3186_s12 = smov [#allocation12]  }
  0x8e   :  { %s118_s10 = sshll.u32 %s3186_s12, 4  ;;  %s3187_s20 = smov [#allocation15]   ;;  %s119_s10 = int_to_ptr.vmem [resolvable:$true] %s118_s10 }
  0x8f   :  { %s138_s9 = sshll.u32 %s3187_s20, 4  ;;  %s3043_s29 = scalar_lea.vmem %s119_s10, 16  ;;  %s139_s9 = int_to_ptr.vmem [resolvable:$true] %s138_s9 }
  0x90   :  { %p3044_p13 = scmp.ne.s32.totalorder %s119_s10, %s3043_s29  ;;  %s3047_s30 = scalar_lea.vmem %s119_s10, 32 }
  0x91   :  { %p3048_p0 = scmp.lt.s32.totalorder %s119_s10, %s119_s10  ;;  %p3049_p1 = scmp.lt.s32.totalorder %s3047_s30, %s3043_s29 }
  0x93   :  { %97 = dma.hbm_to_vmem [thread:$0]  %s4368_s0, 16, %s95_s14, [#allocation8]  }
  0x94   :  { %p3050_p2 = por %p3049_p1, %p3048_p0 }
  0x96   :  { %p3051_p3 = pnand %p3050_p2, %p3044_p13 }
  0x98   :  { %3054 = shalt.err (!%p3051_p3)
}
  0x99   :  { %s4369_s11 = sld [smem:[#allocation48_spill]]  ;;  %s3063_s23 = scalar_lea.vmem %s139_s9, 16 }
  0x9a   :  { %p3064_p4 = scmp.ne.s32.totalorder %s139_s9, %s3063_s23  ;;  %s3067_s14 = scalar_lea.vmem %s139_s9, 32 }
  0x9b   :  { %p3068_p5 = scmp.lt.s32.totalorder %s139_s9, %s139_s9  ;;  %p3069_p6 = scmp.lt.s32.totalorder %s3067_s14, %s3063_s23 }
  0x9d   :  { %p3070_p7 = por %p3069_p6, %p3068_p5 }
  0x9f   :  { %121 = dma.hbm_to_vmem [thread:$0]  %s4369_s11, 16, %s119_s10, [#allocation11]  }
  0xa0   :  { %p3071_p8 = pnand %p3070_p7, %p3064_p4 }
  0xa2   :  { %3074 = shalt.err (!%p3071_p8)
}
  0xa3   :  { %141 = dma.hbm_to_vmem [thread:$0]  %s4332_s13, 16, %s139_s9, [#allocation14]  }
  0xa4   :  { %s3188_s7 = smov [#allocation18]   ;;  %s3189_s4 = smov [#allocation21]  }
  0xa5   :  { %s160_s5 = sshll.u32 %s3188_s7, 4  ;;  %s184_s28 = sshll.u32 %s3189_s4, 4  ;;  %s161_s5 = int_to_ptr.vmem [resolvable:$true] %s160_s5  ;;  %s185_s28 = int_to_ptr.vmem [resolvable:$true] %s184_s28 }
  0xa6   :  { %s3083_s17 = scalar_lea.vmem %s161_s5, 16  ;;  %s3087_s0 = scalar_lea.vmem %s161_s5, 32 }
  0xa7   :  { %p3084_p9 = scmp.ne.s32.totalorder %s161_s5, %s3083_s17  ;;  %p3088_p10 = scmp.lt.s32.totalorder %s161_s5, %s161_s5 }
  0xa8   :  { %p3089_p11 = scmp.lt.s32.totalorder %s3087_s0, %s3083_s17 }
  0xaa   :  { %p3090_p12 = por %p3089_p11, %p3088_p10 }
  0xac   :  { %p3091_p13 = pnand %p3090_p12, %p3084_p9 }
  0xae   :  { %3094 = shalt.err (!%p3091_p13)
}
  0xaf   :  { %163 = dma.hbm_to_vmem [thread:$0]  %s4334_s15, 16, %s161_s5, [#allocation17]  }
  0xb0   :  { %s3103_s20 = scalar_lea.vmem %s185_s28, 16  ;;  %s3107_s13 = scalar_lea.vmem %s185_s28, 32 }
  0xb1   :  { %p3104_p0 = scmp.ne.s32.totalorder %s185_s28, %s3103_s20  ;;  %p3108_p1 = scmp.lt.s32.totalorder %s185_s28, %s185_s28 }
  0xb2   :  { %p3109_p2 = scmp.lt.s32.totalorder %s3107_s13, %s3103_s20 }
  0xb4   :  { %p3110_p3 = por %p3109_p2, %p3108_p1 }
  0xb6   :  { %p3111_p4 = pnand %p3110_p3, %p3104_p0 }
  0xb8   :  { %3114 = shalt.err (!%p3111_p4)
}
  0xb9   :  { %187 = dma.hbm_to_vmem [thread:$0]  %s4338_s19, 16, %s185_s28, [#allocation20]  }
  0xba   :  { %s3190_s30 = smov [#allocation24]   ;;  %s3191_s6 = smov [#allocation27]  }
  0xbb   :  { %s204_s1 = sshll.u32 %s3190_s30, 4  ;;  %s228_s11 = sshll.u32 %s3191_s6, 4  ;;  %s205_s1 = int_to_ptr.vmem [resolvable:$true] %s204_s1  ;;  %s229_s11 = int_to_ptr.vmem [resolvable:$true] %s228_s11 }
  0xbc   :  { %s3123_s23 = scalar_lea.vmem %s205_s1, 16  ;;  %s3127_s15 = scalar_lea.vmem %s205_s1, 32 }
  0xbd   :  { %p3124_p5 = scmp.ne.s32.totalorder %s205_s1, %s3123_s23  ;;  %p3128_p6 = scmp.lt.s32.totalorder %s205_s1, %s205_s1 }
  0xbe   :  { %p3129_p7 = scmp.lt.s32.totalorder %s3127_s15, %s3123_s23 }
  0xc0   :  { %p3130_p8 = por %p3129_p7, %p3128_p6 }
  0xc2   :  { %p3131_p9 = pnand %p3130_p8, %p3124_p5 }
  0xc4   :  { %3134 = shalt.err (!%p3131_p9)
}
  0xc5   :  { %207 = dma.hbm_to_vmem [thread:$0]  %s4340_s21, 16, %s205_s1, [#allocation23]  }
  0xc6   :  { %s3143_s3 = scalar_lea.vmem %s229_s11, 16  ;;  %s3147_s19 = scalar_lea.vmem %s229_s11, 32 }
  0xc7   :  { %p3144_p10 = scmp.ne.s32.totalorder %s229_s11, %s3143_s3  ;;  %p3148_p11 = scmp.lt.s32.totalorder %s229_s11, %s229_s11 }
  0xc8   :  { %p3149_p12 = scmp.lt.s32.totalorder %s3147_s19, %s3143_s3 }
  0xca   :  { %p3150_p13 = por %p3149_p12, %p3148_p11 }
  0xcc   :  { %p3151_p0 = pnand %p3150_p13, %p3144_p10 }
  0xce   :  { %3154 = shalt.err (!%p3151_p0)
}
  0xcf   :  { %231 = dma.hbm_to_vmem [thread:$0]  %s4344_s25, 16, %s229_s11, [#allocation26]  }
  0xd0   :  { %3155 = dma.done.wait [#allocation3], 128  }
  0xd1   :  { %3156 = vsyncadd [#allocation3], 4294967168 }
  0xd2   :  { %3157 = dma.done.wait [#allocation5], 32  }
  0xd3   :  { %3158 = vsyncadd [#allocation5], 4294967264 }
  0xd4   :  { %3159 = dma.done.wait [#allocation8], 32  }
  0xd5   :  { %3160 = vsyncadd [#allocation8], 4294967264 }
  0xd6   :  { %3161 = dma.done.wait [#allocation11], 32  }
  0xd7   :  { %3162 = vsyncadd [#allocation11], 4294967264 }
  0xd8   :  { %3163 = dma.done.wait [#allocation14], 32  }
  0xd9   :  { %3164 = vsyncadd [#allocation14], 4294967264 }
  0xda   :  { %3165 = dma.done.wait [#allocation17], 528  }
  0xdb   :  { %3166 = vsyncadd [#allocation17], 4294966768 }
  0xdc   :  { %3167 = dma.done.wait [#allocation20], 32  }
  0xdd   :  { %3168 = vsyncadd [#allocation20], 4294967264 }
  0xde   :  { %3169 = dma.done.wait [#allocation23], 32  }
  0xdf   :  { %3170 = vsyncadd [#allocation23], 4294967264 }
  0xe0   :  { %3171 = dma.done.wait [#allocation26], 32  }
  0xe1   :  { %3172 = vsyncadd [#allocation26], 4294967264  ;;  %vm344_vm0 = vcmask 261120   ;;  %v283_v0 = vld [vmem:[#allocation2] sm:$0xff]  ;;  %s4370_s4 = sld [smem:[#allocation41_spill]]  ;;  %v3192_v9 = vmov 0.0   ;;  %v668_v29 = vlaneseq }
  0xe2   :  { %v345_v1 = vsel %vm344_vm0, %v283_v0, 0.0  ;;  %s4371_s0 = sld [smem:[#allocation43_spill]]  ;;  %2491 = vmatprep.subr.mxu0 %v3192_v9  ;;  %2502 = vmatprep.subr.mxu1 %v3192_v9  ;;  %vm3193_vm1 = vmmov 0   ;;  %v2414_v20 = vld [vmem:[#allocation4] ss:$0 sm:$0xff]  ;;  %vm852_vm2 = vcmask 64512  }
  0xe3   :  { %346 = vadd.xlane.f32.xlu0 %v345_v1  ;;  %2499 = vmatprep.mubr.msk.f32.mxu0 %vm3193_vm1, %v3192_v9  ;;  %v2415_v22 = vld [vmem:[#allocation6] ss:$0 sm:$0xff]  ;;  %s4372_s3 = sld [smem:[#allocation45_spill]]  ;;  %v3473_v30 = vshrl.u32 %v668_v29, 7  ;;  %v2416_v31 = vld [vmem:[#allocation7] ss:$0 sm:$0xff] }
  0xe4   :  { %2510 = vmatprep.mubr.msk.f32.mxu1 %vm3193_vm1, %v3192_v9  ;;  %v2418_v55 = vld [vmem:[#allocation9] ss:$0 sm:$0xff]  ;;  %vm1382_vm3 = vcmask 130112   ;;  %vm1389_vm4 = vcmask 195712   ;;  %vm1396_vm5 = vcmask 261312   ;;  %vm1531_vm6 = vcmask 1041409  }
  0xe5   :  { %v689_v32 = vsub.s32 1, %v3473_v30  ;;  %v670_v33 = vsub.s32 0, %v3473_v30  ;;  %v727_v41 = vsub.s32 3, %v3473_v30  ;;  %v708_v45 = vsub.s32 2, %v3473_v30  ;;  %s3196_s13 = smov 125   ;;  %s3197_s9 = smov 4  }
  0xe6   :  { %v746_v47 = vsub.s32 4, %v3473_v30  ;;  %v765_v49 = vsub.s32 5, %v3473_v30  ;;  %v784_v51 = vsub.s32 6, %v3473_v30  ;;  %v803_v53 = vsub.s32 7, %v3473_v30  ;;  %s3198_s29 = smov 12   ;;  %s4374_s6 = sld [smem:[#allocation38_spill]] }
  0xe7   :  { %v290_v7 = vld [vmem:[%s4370_s4 + $0x18] sm:$0xff]  ;;  %v289_v10 = vld [vmem:[%s4370_s4 + $0x10] sm:$0xff]  ;;  %v288_v12 = vld [vmem:[%s4370_s4 + $0x8] sm:$0xff]  ;;  %vm1533_vm7 = vcmask 1042434   ;;  %vm1535_vm8 = vcmask 1043459   ;;  %vm1537_vm9 = vcmask 1044484  }
  0xe8   :  { %v295_v8 = vld [vmem:[%s4371_s0 + $0x18] sm:$0xff]  ;;  %v294_v11 = vld [vmem:[%s4371_s0 + $0x10] sm:$0xff]  ;;  %2492 = vmatpush3.msra.mxu0 %v290_v7  ;;  %v293_v13 = vld [vmem:[%s4371_s0 + $0x8] sm:$0xff]  ;;  %vm1539_vm10 = vcmask 1045509   ;;  %vm1541_vm11 = vcmask 1046534   ;;  %vm1543_vm12 = vcmask 1047559  }
  0xe9   :  { %2503 = vmatpush3.msra.mxu1 %v295_v8  ;;  %2493 = vmatprep.subr.mxu0 %v3192_v9  ;;  %v287_v14 = vld [vmem:[%s4370_s4] sm:$0xff]  ;;  %v300_v25 = vld [vmem:[%s4372_s3 + $0x18] sm:$0xff]  ;;  %v299_v26 = vld [vmem:[%s4372_s3 + $0x10] sm:$0xff]  ;;  %vm1739_vm13 = vcmask 523264   ;;  %s3199_s11 = smov 11   ;;  %s3200_s23 = smov 3  }
  0xea   :  { %2504 = vmatprep.subr.mxu1 %v3192_v9  ;;  %2494 = vmatpush3.msra.mxu0 %v289_v10  ;;  %v292_v15 = vld [vmem:[%s4371_s0] sm:$0xff]  ;;  %v298_v27 = vld [vmem:[%s4372_s3 + $0x8] sm:$0xff]  ;;  %s4373_s0 = sld [smem:[#allocation47_spill]]  ;;  %s3201_s15 = smov 6  }
  0xeb   :  { %2505 = vmatpush3.msra.mxu1 %v294_v11  ;;  %2495 = vmatprep.subr.mxu0 %v3192_v9  ;;  %v297_v28 = vld [vmem:[%s4372_s3] sm:$0xff]  ;;  %s3203_s14 = smov 10   ;;  %s3205_s2 = smov 122  }
  0xec   :  { %2506 = vmatprep.subr.mxu1 %v3192_v9  ;;  %2496 = vmatpush3.msra.mxu0 %v288_v12  ;;  %s3206_s3 = smov 119   ;;  %s3207_s19 = smov 124  }
  0xed   :  { %2507 = vmatpush3.msra.mxu1 %v293_v13  ;;  %2497 = vmatprep.subr.mxu0 %v3192_v9  ;;  %s3208_s7 = smov 116  }
  0xee   :  { %2508 = vmatprep.subr.mxu1 %v3192_v9  ;;  %2498 = vmatpush3.msra.mxu0 %v287_v14 }
  0xef   :  { %2509 = vmatpush3.msra.mxu1 %v292_v15  ;;  %2513 = vmatprep.subr.mxu0 %v3192_v9 }
  0xf0   :  { %2524 = vmatprep.subr.mxu1 %v3192_v9 }
 0x16c   :  { %v347_v2 = vpop.xlane.xlu0 %346 }
 0x16d   :  { %v349_v3 = vmul.f32 0.03125, %v347_v2 }
 0x16f   :  { %v350_v4 = vsub.f32 %v283_v0, %v349_v3 }
 0x171   :  { %v351_v5 = vmul.f32 %v350_v4, %v350_v4 }
 0x173   :  { %v352_v6 = vsel %vm344_vm0, %v351_v5, 0.0 }
 0x174   :  { %353 = vadd.xlane.f32.xlu0 %v352_v6 }
 0x1fd   :  { %v354_v16 = vpop.xlane.xlu0 %353 }
 0x1fe   :  { %v355_v17 = vmul.f32 0.03125, %v354_v16 }
 0x200   :  { %v356_v18 = vadd.f32 1e-05, %v355_v17 }
 0x202   :  { %2643 = vrsqrt.f32 %v356_v18 }
 0x20f   :  { %v2644_v19 = vpop.eup %2643 }
 0x210   :  { %v358_v21 = vmul.f32 %v2644_v19, %v350_v4 }
 0x212   :  { %v365_v23 = vmul.f32 %v2414_v20, %v358_v21 }
 0x214   :  { %v3442_v24 = vadd.f32 %v2415_v22, %v365_v23 }
 0x216   :  { %2500 = vmatmul.mubr.msk.f32.vlgmr.msra.gmra.mxu0 %vm344_vm0, %v3442_v24  ;;  %2511 = vmatmul.mubr.msk.f32.vlgmr.msra.gmra.mxu1 %vm344_vm0, %v3442_v24 }
 0x217   :  { %2514 = vmatpush3.msra.mxu0 %v300_v25  ;;  %2521 = vmatprep.mubr.msk.f32.mxu0 %vm3193_vm1, %v3192_v9 }
 0x218   :  { %2515 = vmatprep.subr.mxu0 %v3192_v9  ;;  %2532 = vmatprep.mubr.msk.f32.mxu1 %vm3193_vm1, %v3192_v9 }
 0x219   :  { %2516 = vmatpush3.msra.mxu0 %v299_v26 }
 0x21a   :  { %2517 = vmatprep.subr.mxu0 %v3192_v9 }
 0x21b   :  { %2518 = vmatpush3.msra.mxu0 %v298_v27 }
 0x21c   :  { %2519 = vmatprep.subr.mxu0 %v3192_v9 }
 0x21d   :  { %2520 = vmatpush3.msra.mxu0 %v297_v28 }
 0x21e   :  { %2522 = vmatmul.mubr.msk.f32.vlgmr.msra.gmra.mxu0 %vm344_vm0, %v3442_v24  ;;  %2535 = vmatprep.subr.mxu0 %v3192_v9 }
 0x21f   :  { %2543 = vmatprep.mubr.msk.f32.mxu0 %vm3193_vm1, %v3192_v9 }
 0x2d6   :  { %v448_v34 = vpop.f32.mrf.mxu0  ;;  %v524_v35 = vpop.f32.mrf.mxu1 }
 0x2d7   :  { %v449_v36 = vadd.f32 %v2416_v31, %v448_v34  ;;  %v525_v56 = vadd.f32 %v2418_v55, %v524_v35 }
 0x2d8   :  { %v2501_v37 = vpop.f32.mrf.mxu0  ;;  %v2512_v38 = vpop.f32.mrf.mxu1 }
 0x2d9   :  { %v690_v39 = vrot.slane %v449_v36, %v689_v32  ;;  %v671_v40 = vrot.slane %v449_v36, %v670_v33  ;;  %v728_v44 = vrot.slane %v449_v36, %v727_v41  ;;  %v709_v46 = vrot.slane %v449_v36, %v708_v45 }
 0x2da   :  { %v747_v48 = vrot.slane %v449_v36, %v746_v47  ;;  %v766_v50 = vrot.slane %v449_v36, %v765_v49  ;;  %v785_v52 = vrot.slane %v449_v36, %v784_v51  ;;  %v804_v54 = vrot.slane %v449_v36, %v803_v53 }
 0x2db   :  { %692 = vbcast.lane.b32.xlu0 %v690_v39, 256  ;;  %673 = vbcast.lane.b32.xlu1 %v671_v40, 256 }
 0x2de   :  { %v3478_v42 = vpop.f32.mrf.mxu0 }
 0x2df   :  { %704 = vbcast.lane.b32.xlu0 %v690_v39, 280  ;;  %677 = vbcast.lane.b32.xlu1 %v671_v40, 264 }
 0x2e0   :  { %v2523_v43 = vpop.f32.mrf.mxu0 }
 0x2e3   :  { %730 = vbcast.lane.b32.xlu0 %v728_v44, 256  ;;  %696 = vbcast.lane.b32.xlu1 %v690_v39, 264 }
 0x2e7   :  { %723 = vbcast.lane.b32.xlu0 %v709_v46, 280  ;;  %681 = vbcast.lane.b32.xlu1 %v671_v40, 272 }
 0x2eb   :  { %749 = vbcast.lane.b32.xlu0 %v747_v48, 256  ;;  %700 = vbcast.lane.b32.xlu1 %v690_v39, 272 }
 0x2ef   :  { %742 = vbcast.lane.b32.xlu0 %v728_v44, 280  ;;  %711 = vbcast.lane.b32.xlu1 %v709_v46, 256 }
 0x2f3   :  { %768 = vbcast.lane.b32.xlu0 %v766_v50, 256  ;;  %715 = vbcast.lane.b32.xlu1 %v709_v46, 264 }
 0x2f7   :  { %761 = vbcast.lane.b32.xlu0 %v747_v48, 280  ;;  %685 = vbcast.lane.b32.xlu1 %v671_v40, 280 }
 0x2fb   :  { %787 = vbcast.lane.b32.xlu0 %v785_v52, 256  ;;  %719 = vbcast.lane.b32.xlu1 %v709_v46, 272 }
 0x2ff   :  { %780 = vbcast.lane.b32.xlu0 %v766_v50, 280  ;;  %734 = vbcast.lane.b32.xlu1 %v728_v44, 264 }
 0x303   :  { %806 = vbcast.lane.b32.xlu0 %v804_v54, 256  ;;  %738 = vbcast.lane.b32.xlu1 %v728_v44, 272 }
 0x307   :  { %799 = vbcast.lane.b32.xlu0 %v785_v52, 280  ;;  %753 = vbcast.lane.b32.xlu1 %v747_v48, 264 }
 0x30b   :  { %818 = vbcast.lane.b32.xlu0 %v804_v54, 280  ;;  %757 = vbcast.lane.b32.xlu1 %v747_v48, 272 }
 0x30f   :  { %772 = vbcast.lane.b32.xlu1 %v766_v50, 264 }
 0x313   :  { %776 = vbcast.lane.b32.xlu1 %v766_v50, 272 }
 0x317   :  { %791 = vbcast.lane.b32.xlu1 %v785_v52, 264 }
 0x31b   :  { %795 = vbcast.lane.b32.xlu1 %v785_v52, 272 }
 0x31f   :  { %810 = vbcast.lane.b32.xlu1 %v804_v54, 264 }
 0x323   :  { %814 = vbcast.lane.b32.xlu1 %v804_v54, 272 }
 0x34c   :  { %604 = vxpose.xlu1.b32.start.end [1/1] (short) (narrow) %v525_v56, 32 }
 0x34d   :  { %v674_v57 = vpop.permute.xlu1 %673  ;;  %v693_v6 = vpop.permute.xlu0 %692 }
 0x351   :  { %v678_v58 = vpop.permute.xlu1 %677  ;;  %v705_v8 = vpop.permute.xlu0 %704 }
 0x355   :  { %v697_v59 = vpop.permute.xlu1 %696  ;;  %v3501_v11 = vpop.permute.xlu0 %730 }
 0x359   :  { %v682_v60 = vpop.permute.xlu1 %681  ;;  %v3505_v13 = vpop.permute.xlu0 %723 }
 0x35d   :  { %v701_v61 = vpop.permute.xlu1 %700  ;;  %v3509_v15 = vpop.permute.xlu0 %749 }
 0x361   :  { %v712_v62 = vpop.permute.xlu1 %711  ;;  %v743_v17 = vpop.permute.xlu0 %742 }
 0x365   :  { %v716_v63 = vpop.permute.xlu1 %715  ;;  %v769_v21 = vpop.permute.xlu0 %768 }
 0x369   :  { %v3485_v0 = vpop.permute.xlu1 %685  ;;  %v762_v28 = vpop.permute.xlu0 %761 }
 0x36d   :  { %v3487_v1 = vpop.permute.xlu1 %719  ;;  %v788_v38 = vpop.permute.xlu0 %787 }
 0x371   :  { %v3489_v2 = vpop.permute.xlu1 %734  ;;  %v781_v48 = vpop.permute.xlu0 %780 }
 0x375   :  { %v3491_v3 = vpop.permute.xlu1 %738  ;;  %v807_v53 = vpop.permute.xlu0 %806 }
 0x379   :  { %v3493_v4 = vpop.permute.xlu1 %753 }
 0x37d   :  { %v3495_v5 = vpop.permute.xlu1 %757 }
 0x381   :  { %v3497_v7 = vpop.permute.xlu1 %772 }
 0x385   :  { %v3499_v10 = vpop.permute.xlu1 %776 }
 0x389   :  { %v3503_v12 = vpop.permute.xlu1 %791 }
 0x38d   :  { %v3507_v14 = vpop.permute.xlu1 %795 }
 0x391   :  { %v3511_v16 = vpop.permute.xlu1 %810 }
 0x395   :  { %v3513_v18 = vpop.permute.xlu1 %814 }
 0x3c8   :  { %v3515_v19 = vpop.trf.xlu1 }
 0x3c9   :  { %v3518_v20 = vmul.f32 %v674_v57, %v3515_v19  ;;  %v3530_v27 = vmul.f32 %v693_v6, %v3515_v19  ;;  %v3554_v43 = vmul.f32 %v769_v21, %v3515_v19  ;;  %v3561_v46 = vmul.f32 %v712_v62, %v3515_v19  ;;  %v800_v62 = vpop.permute.xlu0 %799 }
 0x3ca   :  { %v3573_v52 = vmul.f32 %v788_v38, %v3515_v19 }
 0x3cb   :  { %v853_v22 = vsel %vm852_vm2, %v3518_v20, -inf  ;;  %v865_v33 = vsel %vm852_vm2, %v3530_v27, -inf  ;;  %v913_v45 = vsel %vm852_vm2, %v3554_v43, -inf  ;;  %v877_v49 = vsel %vm852_vm2, %v3561_v46, -inf }
 0x3cc   :  { %854 = vmax.xlane.f32.xlu0 %v853_v22  ;;  %v3522_v23 = vpop.trf.xlu1  ;;  %v925_v55 = vsel %vm852_vm2, %v3573_v52, -inf }
 0x3cd   :  { %v3525_v25 = vmul.f32 %v678_v58, %v3522_v23  ;;  %v3542_v35 = vmul.f32 %v697_v59, %v3522_v23  ;;  %v3570_v51 = vmul.f32 %v716_v63, %v3522_v23  ;;  %v819_v21 = vpop.permute.xlu0 %818 }
 0x3cf   :  { %v856_v26 = vsel %vm852_vm2, %v3525_v25, -inf  ;;  %v868_v39 = vsel %vm852_vm2, %v3542_v35, -inf  ;;  %v880_v54 = vsel %vm852_vm2, %v3570_v51, -inf }
 0x3d0   :  { %857 = vmax.xlane.f32.xlu0 %v856_v26  ;;  %v3532_v31 = vpop.trf.xlu1 }
 0x3d1   :  { %v3535_v32 = vmul.f32 %v682_v60, %v3532_v31  ;;  %v3551_v41 = vmul.f32 %v701_v61, %v3532_v31  ;;  %v3589_v60 = vmul.f32 %v807_v53, %v3515_v19  ;;  %v3678_v53 = vmul.f32 %v3511_v16, %v3522_v23 }
 0x3d3   :  { %v859_v34 = vsel %vm852_vm2, %v3535_v32, -inf  ;;  %v871_v44 = vsel %vm852_vm2, %v3551_v41, -inf  ;;  %v937_v63 = vsel %vm852_vm2, %v3589_v60, -inf }
 0x3d4   :  { %866 = vmax.xlane.f32.xlu0 %v865_v33  ;;  %860 = vmax.xlane.f32.xlu1 %v859_v34  ;;  %v623_v36 = vpop.trf.xlu1  ;;  %v3619_v34 = vmul.f32 %v3489_v2, %v3522_v23 }
 0x3d5   :  { %v3544_v37 = vmul.f32 %v743_v17, %v623_v36  ;;  %v3563_v47 = vmul.f32 %v762_v28, %v623_v36  ;;  %v3579_v56 = vmul.f32 %v781_v48, %v623_v36  ;;  %v3582_v57 = vmul.f32 %v3485_v0, %v623_v36 }
 0x3d6   :  { %v3591_v61 = vmul.f32 %v705_v8, %v623_v36  ;;  %v3597_v6 = vmul.f32 %v800_v62, %v623_v36  ;;  %v3601_v17 = vmul.f32 %v3487_v1, %v3532_v31  ;;  %v3607_v26 = vmul.f32 %v819_v21, %v623_v36 }
 0x3d7   :  { %v898_v40 = vsel %vm852_vm2, %v3544_v37, -inf  ;;  %v910_v50 = vsel %vm852_vm2, %v3563_v47, -inf  ;;  %v922_v58 = vsel %vm852_vm2, %v3579_v56, -inf  ;;  %v862_v59 = vsel %vm852_vm2, %v3582_v57, -inf }
 0x3d8   :  { %869 = vmax.xlane.f32.xlu0 %v868_v39  ;;  %899 = vmax.xlane.f32.xlu1 %v898_v40  ;;  %v874_v0 = vsel %vm852_vm2, %v3591_v61, -inf  ;;  %v934_v8 = vsel %vm852_vm2, %v3597_v6, -inf  ;;  %v883_v22 = vsel %vm852_vm2, %v3601_v17, -inf  ;;  %v3611_v28 = vmul.f32 %v3501_v11, %v3515_v19 }
 0x3d9   :  { %v946_v1 = vsel %vm852_vm2, %v3607_v26, -inf  ;;  %v892_v38 = vsel %vm852_vm2, %v3619_v34, -inf  ;;  %v3624_v11 = vmul.f32 %v3505_v13, %v623_v36  ;;  %v3630_v40 = vmul.f32 %v3491_v3, %v3532_v31 }
 0x3da   :  { %v889_v33 = vsel %vm852_vm2, %v3611_v28, -inf  ;;  %v3642_v36 = vmul.f32 %v3493_v4, %v3522_v23  ;;  %v3660_v48 = vmul.f32 %v3499_v10, %v3532_v31 }
 0x3db   :  { %v886_v39 = vsel %vm852_vm2, %v3624_v11, -inf  ;;  %v895_v2 = vsel %vm852_vm2, %v3630_v40, -inf }
 0x3dc   :  { %872 = vmax.xlane.f32.xlu0 %v871_v44  ;;  %914 = vmax.xlane.f32.xlu1 %v913_v45  ;;  %v3636_v44 = vmul.f32 %v3509_v15, %v3515_v19  ;;  %v904_v3 = vsel %vm852_vm2, %v3642_v36, -inf  ;;  %v3648_v45 = vmul.f32 %v3495_v5, %v3532_v31  ;;  %v3654_v19 = vmul.f32 %v3497_v7, %v3522_v23 }
 0x3dd   :  { %v919_v5 = vsel %vm852_vm2, %v3660_v48, -inf }
 0x3de   :  { %v901_v13 = vsel %vm852_vm2, %v3636_v44, -inf  ;;  %v907_v15 = vsel %vm852_vm2, %v3648_v45, -inf  ;;  %v916_v4 = vsel %vm852_vm2, %v3654_v19, -inf }
 0x3e0   :  { %878 = vmax.xlane.f32.xlu0 %v877_v49  ;;  %911 = vmax.xlane.f32.xlu1 %v910_v50  ;;  %v3666_v49 = vmul.f32 %v3503_v12, %v3522_v23  ;;  %v3672_v50 = vmul.f32 %v3507_v14, %v3532_v31  ;;  %v940_v12 = vsel %vm852_vm2, %v3678_v53, -inf }
 0x3e2   :  { %v928_v7 = vsel %vm852_vm2, %v3666_v49, -inf  ;;  %v931_v10 = vsel %vm852_vm2, %v3672_v50, -inf }
 0x3e4   :  { %881 = vmax.xlane.f32.xlu0 %v880_v54  ;;  %926 = vmax.xlane.f32.xlu1 %v925_v55  ;;  %v3684_v54 = vmul.f32 %v3513_v18, %v3532_v31 }
 0x3e6   :  { %v943_v14 = vsel %vm852_vm2, %v3684_v54, -inf }
 0x3e8   :  { %923 = vmax.xlane.f32.xlu1 %v922_v58  ;;  %863 = vmax.xlane.f32.xlu0 %v862_v59 }
 0x3ec   :  { %938 = vmax.xlane.f32.xlu1 %v937_v63  ;;  %875 = vmax.xlane.f32.xlu0 %v874_v0 }
 0x3f0   :  { %935 = vmax.xlane.f32.xlu1 %v934_v8  ;;  %884 = vmax.xlane.f32.xlu0 %v883_v22 }
 0x3f4   :  { %947 = vmax.xlane.f32.xlu1 %v946_v1  ;;  %890 = vmax.xlane.f32.xlu0 %v889_v33 }
 0x3f8   :  { %893 = vmax.xlane.f32.xlu0 %v892_v38 }
 0x3fc   :  { %887 = vmax.xlane.f32.xlu0 %v886_v39 }
 0x400   :  { %896 = vmax.xlane.f32.xlu0 %v895_v2 }
 0x404   :  { %902 = vmax.xlane.f32.xlu0 %v901_v13 }
 0x408   :  { %905 = vmax.xlane.f32.xlu0 %v904_v3 }
 0x40c   :  { %908 = vmax.xlane.f32.xlu0 %v907_v15 }
 0x410   :  { %917 = vmax.xlane.f32.xlu0 %v916_v4 }
 0x414   :  { %920 = vmax.xlane.f32.xlu0 %v919_v5 }
 0x418   :  { %929 = vmax.xlane.f32.xlu0 %v928_v7 }
 0x41c   :  { %932 = vmax.xlane.f32.xlu0 %v931_v10 }
 0x420   :  { %941 = vmax.xlane.f32.xlu0 %v940_v12 }
 0x424   :  { %944 = vmax.xlane.f32.xlu0 %v943_v14 }
 0x455   :  { %v855_v55 = vpop.xlane.xlu0 %854 }
 0x456   :  { %v949_v58 = vsub.f32 %v3518_v20, %v855_v55 }
 0x458   :  { %v981_v59 = vmul.f32 1.442695, %v949_v58 }
 0x459   :  { %v858_v62 = vpop.xlane.xlu0 %857 }
 0x45a   :  { %2645 = vpow2.f32 %v981_v59  ;;  %v950_v16 = vsub.f32 %v3525_v25, %v858_v62 }
 0x45c   :  { %v983_v23 = vmul.f32 1.442695, %v950_v16 }
 0x45d   :  { %v867_v63 = vpop.xlane.xlu0 %866  ;;  %v861_v0 = vpop.xlane.xlu1 %860 }
 0x45e   :  { %2647 = vpow2.f32 %v983_v23  ;;  %v953_v18 = vsub.f32 %v3530_v27, %v867_v63  ;;  %v951_v31 = vsub.f32 %v3535_v32, %v861_v0 }
 0x460   :  { %v989_v21 = vmul.f32 1.442695, %v953_v18  ;;  %v985_v8 = vmul.f32 1.442695, %v951_v31 }
 0x461   :  { %v870_v22 = vpop.xlane.xlu0 %869  ;;  %v900_v31 = vpop.xlane.xlu1 %899 }
 0x462   :  { %2649 = vpow2.f32 %v989_v21  ;;  %v954_v1 = vsub.f32 %v3542_v35, %v870_v22 }
 0x463   :  { %2651 = vpow2.f32 %v985_v8 }
 0x464   :  { %v991_v20 = vmul.f32 1.442695, %v954_v1 }
 0x465   :  { %v873_v33 = vpop.xlane.xlu0 %872 }
 0x466   :  { %2653 = vpow2.f32 %v991_v20  ;;  %v955_v25 = vsub.f32 %v3551_v41, %v873_v33 }
 0x467   :  { %v3694_v38 = vpop.eup %2645 }
 0x468   :  { %v993_v39 = vmul.f32 1.442695, %v955_v25  ;;  %v1045_v27 = vsel %vm852_vm2, %v3694_v38, 0.0  ;;  %v915_v25 = vpop.xlane.xlu1 %914 }
 0x469   :  { %v879_v2 = vpop.xlane.xlu0 %878  ;;  %1046 = vadd.xlane.f32.xlu0 %v1045_v27 }
 0x46a   :  { %2655 = vpow2.f32 %v993_v39  ;;  %v957_v32 = vsub.f32 %v3561_v46, %v879_v2 }
 0x46b   :  { %v3699_v13 = vpop.eup %2647 }
 0x46c   :  { %v997_v35 = vmul.f32 1.442695, %v957_v32  ;;  %v1048_v3 = vsel %vm852_vm2, %v3699_v13, 0.0 }
 0x46d   :  { %v882_v15 = vpop.xlane.xlu0 %881  ;;  %1049 = vadd.xlane.f32.xlu1 %v1048_v3 }
 0x46e   :  { %2657 = vpow2.f32 %v997_v35  ;;  %v958_v41 = vsub.f32 %v3570_v51, %v882_v15  ;;  %v912_v15 = vpop.xlane.xlu1 %911 }
 0x46f   :  { %v3704_v4 = vpop.eup %2649 }
 0x470   :  { %v999_v5 = vmul.f32 1.442695, %v958_v41  ;;  %v1057_v7 = vsel %vm852_vm2, %v3704_v4, 0.0  ;;  %v3708_v10 = vpop.eup %2651 }
 0x471   :  { %1058 = vadd.xlane.f32.xlu0 %v1057_v7  ;;  %v864_v46 = vpop.xlane.xlu0 %863  ;;  %v1051_v51 = vsel %vm852_vm2, %v3708_v10, 0.0 }
 0x472   :  { %2659 = vpow2.f32 %v999_v5  ;;  %v952_v12 = vsub.f32 %v3582_v57, %v864_v46 }
 0x473   :  { %v3711_v14 = vpop.eup %2653 }
 0x474   :  { %v987_v55 = vmul.f32 1.442695, %v952_v12  ;;  %v1060_v58 = vsel %vm852_vm2, %v3711_v14, 0.0  ;;  %v964_v12 = vsub.f32 %v3544_v37, %v900_v31 }
 0x475   :  { %1061 = vadd.xlane.f32.xlu1 %v1060_v58  ;;  %v876_v59 = vpop.xlane.xlu0 %875  ;;  %1052 = vadd.xlane.f32.xlu0 %v1051_v51  ;;  %v927_v58 = vpop.xlane.xlu1 %926 }
 0x476   :  { %2661 = vpow2.f32 %v987_v55  ;;  %v956_v62 = vsub.f32 %v3591_v61, %v876_v59 }
 0x477   :  { %v3718_v16 = vpop.eup %2655 }
 0x478   :  { %v995_v23 = vmul.f32 1.442695, %v956_v62  ;;  %v1063_v57 = vsel %vm852_vm2, %v3718_v16, 0.0 }
 0x479   :  { %1064 = vadd.xlane.f32.xlu1 %v1063_v57  ;;  %v885_v63 = vpop.xlane.xlu0 %884  ;;  %v969_v57 = vsub.f32 %v3554_v43, %v915_v25  ;;  %v973_v25 = vsub.f32 %v3573_v52, %v927_v58 }
 0x47a   :  { %2663 = vpow2.f32 %v995_v23  ;;  %v959_v0 = vsub.f32 %v3601_v17, %v885_v63  ;;  %v1011_v23 = vmul.f32 1.442695, %v964_v12 }
 0x47b   :  { %v3723_v18 = vpop.eup %2657 }
 0x47c   :  { %v1001_v21 = vmul.f32 1.442695, %v959_v0  ;;  %v1069_v8 = vsel %vm852_vm2, %v3723_v18, 0.0 }
 0x47d   :  { %v891_v22 = vpop.xlane.xlu0 %890  ;;  %1070 = vadd.xlane.f32.xlu0 %v1069_v8  ;;  %v924_v8 = vpop.xlane.xlu1 %923 }
 0x47e   :  { %2665 = vpow2.f32 %v1001_v21  ;;  %v961_v61 = vsub.f32 %v3611_v28, %v891_v22  ;;  %v1021_v21 = vmul.f32 1.442695, %v969_v57 }
 0x47f   :  { %v3728_v1 = vpop.eup %2659 }
 0x480   :  { %v1005_v20 = vmul.f32 1.442695, %v961_v61  ;;  %v1072_v33 = vsel %vm852_vm2, %v3728_v1, 0.0 }
 0x481   :  { %1073 = vadd.xlane.f32.xlu1 %v1072_v33  ;;  %v894_v17 = vpop.xlane.xlu0 %893 }
 0x482   :  { %2667 = vpow2.f32 %v1005_v20  ;;  %v962_v39 = vsub.f32 %v3619_v34, %v894_v17 }
 0x483   :  { %v3733_v27 = vpop.eup %2661 }
 0x484   :  { %v1007_v2 = vmul.f32 1.442695, %v962_v39  ;;  %v1054_v32 = vsel %vm852_vm2, %v3733_v27, 0.0  ;;  %v939_v39 = vpop.xlane.xlu1 %938 }
 0x485   :  { %v888_v35 = vpop.xlane.xlu0 %887  ;;  %1055 = vadd.xlane.f32.xlu0 %v1054_v32 }
 0x486   :  { %2669 = vpow2.f32 %v1007_v2  ;;  %v960_v28 = vsub.f32 %v3624_v11, %v888_v35 }
 0x487   :  { %v3738_v3 = vpop.eup %2663 }
 0x488   :  { %v1003_v41 = vmul.f32 1.442695, %v960_v28  ;;  %v1066_v5 = vsel %vm852_vm2, %v3738_v3, 0.0  ;;  %v972_v28 = vsub.f32 %v3579_v56, %v924_v8 }
 0x489   :  { %1067 = vadd.xlane.f32.xlu1 %v1066_v5  ;;  %v897_v34 = vpop.xlane.xlu0 %896 }
 0x48a   :  { %2671 = vpow2.f32 %v1003_v41  ;;  %v963_v7 = vsub.f32 %v3630_v40, %v897_v34 }
 0x48b   :  { %v3743_v46 = vpop.eup %2665 }
 0x48c   :  { %v1009_v55 = vmul.f32 1.442695, %v963_v7  ;;  %v1075_v11 = vsel %vm852_vm2, %v3743_v46, 0.0  ;;  %v977_v7 = vsub.f32 %v3589_v60, %v939_v39 }
 0x48d   :  { %v903_v51 = vpop.xlane.xlu0 %902  ;;  %1076 = vadd.xlane.f32.xlu0 %v1075_v11 }
 0x48e   :  { %2673 = vpow2.f32 %v1009_v55  ;;  %v965_v59 = vsub.f32 %v3636_v44, %v903_v51  ;;  %v968_v44 = vsub.f32 %v3563_v47, %v912_v15  ;;  %v1027_v55 = vmul.f32 1.442695, %v972_v28 }
 0x48f   :  { %v3749_v62 = vpop.eup %2667 }
 0x490   :  { %v1013_v40 = vmul.f32 1.442695, %v965_v59  ;;  %v1081_v63 = vsel %vm852_vm2, %v3749_v62, 0.0 }
 0x491   :  { %1082 = vadd.xlane.f32.xlu1 %v1081_v63  ;;  %v906_v37 = vpop.xlane.xlu0 %905 }
 0x492   :  { %2675 = vpow2.f32 %v1013_v40  ;;  %v966_v0 = vsub.f32 %v3642_v36, %v906_v37  ;;  %v1019_v36 = vmul.f32 1.442695, %v968_v44 }
 0x493   :  { %v3755_v31 = vpop.eup %2669  ;;  %2677 = vpow2.f32 %v1011_v23 }
 0x494   :  { %v1015_v22 = vmul.f32 1.442695, %v966_v0  ;;  %v1084_v43 = vsel %vm852_vm2, %v3755_v31, 0.0 }
 0x495   :  { %v909_v61 = vpop.xlane.xlu0 %908  ;;  %1085 = vadd.xlane.f32.xlu0 %v1084_v43 }
 0x496   :  { %2679 = vpow2.f32 %v1015_v22  ;;  %v967_v20 = vsub.f32 %v3648_v45, %v909_v61  ;;  %v1029_v45 = vmul.f32 1.442695, %v973_v25 }
 0x497   :  { %v3761_v33 = vpop.eup %2671  ;;  %2681 = vpow2.f32 %v1021_v21 }
 0x498   :  { %v1017_v17 = vmul.f32 1.442695, %v967_v20  ;;  %v1078_v47 = vsel %vm852_vm2, %v3761_v33, 0.0 }
 0x499   :  { %1079 = vadd.xlane.f32.xlu1 %v1078_v47  ;;  %v918_v2 = vpop.xlane.xlu0 %917 }
 0x49a   :  { %2683 = vpow2.f32 %v1017_v17  ;;  %v970_v32 = vsub.f32 %v3654_v19, %v918_v2  ;;  %v936_v19 = vpop.xlane.xlu1 %935 }
 0x49b   :  { %v3767_v35 = vpop.eup %2673  ;;  %2685 = vpow2.f32 %v1019_v36  ;;  %v976_v57 = vsub.f32 %v3597_v6, %v936_v19 }
 0x49c   :  { %v1023_v15 = vmul.f32 1.442695, %v970_v32  ;;  %v1087_v52 = vsel %vm852_vm2, %v3767_v35, 0.0 }
 0x49d   :  { %v921_v41 = vpop.xlane.xlu0 %920  ;;  %1088 = vadd.xlane.f32.xlu0 %v1087_v52  ;;  %v1035_v6 = vmul.f32 1.442695, %v976_v57 }
 0x49e   :  { %2687 = vpow2.f32 %v1023_v15  ;;  %v971_v5 = vsub.f32 %v3660_v48, %v921_v41  ;;  %v1037_v48 = vmul.f32 1.442695, %v977_v7  ;;  %v948_v37 = vpop.xlane.xlu1 %947 }
 0x49f   :  { %v3773_v34 = vpop.eup %2675  ;;  %2689 = vpow2.f32 %v1029_v45  ;;  %v980_v22 = vsub.f32 %v3607_v26, %v948_v37  ;;  %v2420_v37 = vld [vmem:[#allocation10] ss:$0 sm:$0xff] }
 0x4a0   :  { %v3776_v12 = vpop.eup %2677  ;;  %v1025_v11 = vmul.f32 1.442695, %v971_v5  ;;  %v1093_v56 = vsel %vm852_vm2, %v3773_v34, 0.0 }
 0x4a1   :  { %1094 = vadd.xlane.f32.xlu1 %v1093_v56  ;;  %v930_v58 = vpop.xlane.xlu0 %929  ;;  %v1090_v60 = vsel %vm852_vm2, %v3776_v12, 0.0  ;;  %v1043_v17 = vmul.f32 1.442695, %v980_v22 }
 0x4a2   :  { %2691 = vpow2.f32 %v1025_v11  ;;  %v974_v51 = vsub.f32 %v3666_v49, %v930_v58 }
 0x4a3   :  { %v3781_v59 = vpop.eup %2679  ;;  %2693 = vpow2.f32 %v1027_v55 }
 0x4a4   :  { %v3785_v23 = vpop.eup %2681  ;;  %v1031_v40 = vmul.f32 1.442695, %v974_v51  ;;  %v1096_v63 = vsel %vm852_vm2, %v3781_v59, 0.0 }
 0x4a5   :  { %v933_v0 = vpop.xlane.xlu0 %932  ;;  %1097 = vadd.xlane.f32.xlu0 %v1096_v63  ;;  %1091 = vadd.xlane.f32.xlu1 %v1090_v60  ;;  %v1105_v44 = vsel %vm852_vm2, %v3785_v23, 0.0 }
 0x4a6   :  { %2695 = vpow2.f32 %v1031_v40  ;;  %v975_v49 = vsub.f32 %v3672_v50, %v933_v0  ;;  %v601_v0 = vadd.f32 %v2420_v37, %v3478_v42 }
 0x4a7   :  { %v3791_v21 = vpop.eup %2683  ;;  %2697 = vpow2.f32 %v1037_v48 }
 0x4a8   :  { %v3795_v8 = vpop.eup %2685  ;;  %v1033_v43 = vmul.f32 1.442695, %v975_v49  ;;  %v1099_v61 = vsel %vm852_vm2, %v3791_v21, 0.0 }
 0x4a9   :  { %v942_v20 = vpop.xlane.xlu0 %941  ;;  %1100 = vadd.xlane.f32.xlu0 %v1099_v61  ;;  %1106 = vadd.xlane.f32.xlu1 %v1105_v44  ;;  %v1102_v25 = vsel %vm852_vm2, %v3795_v8, 0.0 }
 0x4aa   :  { %2699 = vpow2.f32 %v1033_v43  ;;  %v978_v50 = vsub.f32 %v3678_v53, %v942_v20 }
 0x4ab   :  { %v3801_v36 = vpop.eup %2687  ;;  %2701 = vpow2.f32 %v1035_v6 }
 0x4ac   :  { %v1039_v47 = vmul.f32 1.442695, %v978_v50  ;;  %v1108_v26 = vsel %vm852_vm2, %v3801_v36, 0.0  ;;  %v3807_v39 = vpop.eup %2689 }
 0x4ad   :  { %v945_v2 = vpop.xlane.xlu0 %944  ;;  %1109 = vadd.xlane.f32.xlu0 %v1108_v26  ;;  %1103 = vadd.xlane.f32.xlu1 %v1102_v25  ;;  %v1117_v15 = vsel %vm852_vm2, %v3807_v39, 0.0 }
 0x4ae   :  { %2703 = vpow2.f32 %v1039_v47  ;;  %v979_v32 = vsub.f32 %v3684_v54, %v945_v2 }
 0x4af   :  { %v3810_v53 = vpop.eup %2691  ;;  %2705 = vpow2.f32 %v1043_v17 }
 0x4b0   :  { %v1041_v45 = vmul.f32 1.442695, %v979_v32  ;;  %v1111_v28 = vsel %vm852_vm2, %v3810_v53, 0.0  ;;  %v3816_v52 = vpop.eup %2693 }
 0x4b1   :  { %1112 = vadd.xlane.f32.xlu0 %v1111_v28  ;;  %1118 = vadd.xlane.f32.xlu1 %v1117_v15  ;;  %v1114_v7 = vsel %vm852_vm2, %v3816_v52, 0.0 }
 0x4b2   :  { %2707 = vpow2.f32 %v1041_v45 }
 0x4b3   :  { %v3818_v41 = vpop.eup %2695 }
 0x4b4   :  { %v3820_v5 = vpop.eup %2697  ;;  %v1120_v54 = vsel %vm852_vm2, %v3818_v41, 0.0 }
 0x4b5   :  { %1121 = vadd.xlane.f32.xlu0 %v1120_v54  ;;  %1115 = vadd.xlane.f32.xlu1 %v1114_v7  ;;  %v1129_v11 = vsel %vm852_vm2, %v3820_v5, 0.0 }
 0x4b7   :  { %v3826_v19 = vpop.eup %2699 }
 0x4b8   :  { %v1123_v55 = vsel %vm852_vm2, %v3826_v19, 0.0  ;;  %v3832_v56 = vpop.eup %2701 }
 0x4b9   :  { %1124 = vadd.xlane.f32.xlu0 %v1123_v55  ;;  %1130 = vadd.xlane.f32.xlu1 %v1129_v11  ;;  %v1126_v48 = vsel %vm852_vm2, %v3832_v56, 0.0 }
 0x4bb   :  { %v3834_v58 = vpop.eup %2703 }
 0x4bc   :  { %v1132_v51 = vsel %vm852_vm2, %v3834_v58, 0.0  ;;  %v3840_v60 = vpop.eup %2705 }
 0x4bd   :  { %1133 = vadd.xlane.f32.xlu0 %v1132_v51  ;;  %1127 = vadd.xlane.f32.xlu1 %v1126_v48  ;;  %v1138_v63 = vsel %vm852_vm2, %v3840_v60, 0.0 }
 0x4bf   :  { %v3842_v57 = vpop.eup %2707 }
 0x4c0   :  { %v1135_v40 = vsel %vm852_vm2, %v3842_v57, 0.0 }
 0x4c1   :  { %1136 = vadd.xlane.f32.xlu0 %v1135_v40  ;;  %1139 = vadd.xlane.f32.xlu1 %v1138_v63 }
 0x4ee   :  { %636 = vxpose.xlu0.b32.start.end [1/1] (short) (narrow) %v601_v0, 32 }
 0x4f2   :  { %v1047_v49 = vpop.xlane.xlu0 %1046 }
 0x4f3   :  { %2709 = vrcp.f32 %v1047_v49 }
 0x4f6   :  { %v1050_v17 = vpop.xlane.xlu1 %1049 }
 0x4fa   :  { %v1059_v44 = vpop.xlane.xlu0 %1058 }
 0x4fe   :  { %v1053_v6 = vpop.xlane.xlu0 %1052  ;;  %v1062_v26 = vpop.xlane.xlu1 %1061 }
 0x500   :  { %v2710_v51 = vpop.eup %2709 }
 0x501   :  { %v1142_v37 = vmul.f32 %v2710_v51, %v3694_v38 }
 0x502   :  { %v1065_v2 = vpop.xlane.xlu1 %1064 }
 0x506   :  { %v1071_v22 = vpop.xlane.xlu0 %1070 }
 0x50a   :  { %v1074_v45 = vpop.xlane.xlu1 %1073 }
 0x50e   :  { %v3849_v43 = vpop.xlane.xlu0 %1055 }
 0x512   :  { %v3861_v28 = vpop.xlane.xlu1 %1067 }
 0x516   :  { %v3851_v61 = vpop.xlane.xlu0 %1076 }
 0x51a   :  { %v1083_v54 = vpop.xlane.xlu1 %1082 }
 0x51b   :  { %2711 = vrcp.f32 %v1083_v54 }
 0x51c   :  { %2713 = vrcp.f32 %v1050_v17 }
 0x51e   :  { %v3853_v20 = vpop.xlane.xlu0 %1085 }
 0x526   :  { %v3855_v50 = vpop.xlane.xlu0 %1088 }
 0x528   :  { %v2712_v48 = vpop.eup %2711 }
 0x529   :  { %v2714_v40 = vpop.eup %2713  ;;  %v1166_v63 = vmul.f32 %v2712_v48, %v3749_v62 }
 0x52a   :  { %v1144_v54 = vmul.f32 %v2714_v40, %v3699_v13 }
 0x52e   :  { %v3857_v25 = vpop.xlane.xlu0 %1097 }
 0x532   :  { %v3859_v47 = vpop.xlane.xlu0 %1100 }
 0x536   :  { %v1110_v42 = vpop.xlane.xlu0 %1109 }
 0x537   :  { %2715 = vrcp.f32 %v1110_v42 }
 0x53a   :  { %v1113_v32 = vpop.xlane.xlu0 %1112 }
 0x53e   :  { %v1122_v15 = vpop.xlane.xlu0 %1121 }
 0x53f   :  { %2717 = vrcp.f32 %v1122_v15 }
 0x540   :  { %2719 = vrcp.f32 %v1059_v44 }
 0x541   :  { %2721 = vrcp.f32 %v1062_v26 }
 0x542   :  { %v1125_v7 = vpop.xlane.xlu0 %1124 }
 0x543   :  { %2723 = vrcp.f32 %v1125_v7 }
 0x544   :  { %2725 = vrcp.f32 %v1113_v32  ;;  %v2716_v0 = vpop.eup %2715 }
 0x545   :  { %v1184_v7 = vmul.f32 %v2716_v0, %v3801_v36 }
 0x546   :  { %v1134_v55 = vpop.xlane.xlu0 %1133 }
 0x547   :  { %2727 = vrcp.f32 %v1134_v55 }
 0x548   :  { %2729 = vrcp.f32 %v1053_v6 }
 0x54a   :  { %v1137_v11 = vpop.xlane.xlu0 %1136 }
 0x54b   :  { %2731 = vrcp.f32 %v1137_v11 }
 0x54c   :  { %v2718_v17 = vpop.eup %2717  ;;  %2733 = vrcp.f32 %v1065_v2 }
 0x54d   :  { %v2720_v42 = vpop.eup %2719  ;;  %v1192_v2 = vmul.f32 %v2718_v17, %v3818_v41  ;;  %2735 = vrcp.f32 %v1071_v22 }
 0x54e   :  { %v2722_v32 = vpop.eup %2721  ;;  %v1150_v51 = vmul.f32 %v2720_v42, %v3704_v4  ;;  %2737 = vrcp.f32 %v1074_v45 }
 0x54f   :  { %v1152_v17 = vmul.f32 %v2722_v32, %v3711_v14  ;;  %2739 = vrcp.f32 %v3849_v43 }
 0x550   :  { %v2724_v62 = vpop.eup %2723  ;;  %2741 = vrcp.f32 %v3861_v28 }
 0x551   :  { %v2726_v55 = vpop.eup %2725  ;;  %v1194_v36 = vmul.f32 %v2724_v62, %v3826_v19  ;;  %2743 = vrcp.f32 %v3851_v61 }
 0x552   :  { %v1186_v22 = vmul.f32 %v2726_v55, %v3810_v53  ;;  %2745 = vrcp.f32 %v3853_v20 }
 0x554   :  { %v2728_v48 = vpop.eup %2727 }
 0x555   :  { %v2730_v0 = vpop.eup %2729 }
 0x56a   :  { %v3865_v49 = vpop.trf.xlu0 }
 0x56b   :  { %v1217_v44 = vmul.f32 %v1166_v63, %v3865_v49  ;;  %v1205_v26 = vmul.f32 %v1142_v37, %v3865_v49  ;;  %v1209_v37 = vmul.f32 %v1150_v51, %v3865_v49 }
 0x56d   :  { %v1273_v15 = vsel %vm852_vm2, %v1217_v44, 0.0  ;;  %v1237_v6 = vsel %vm852_vm2, %v1205_v26, 0.0  ;;  %v1200_v44 = vmul.f32 %v2728_v48, %v3834_v58  ;;  %v2732_v26 = vpop.eup %2731  ;;  %v1146_v58 = vmul.f32 %v2730_v0, %v3708_v10 }
 0x56e   :  { %1274 = vadd.xlane.f32.xlu0 %v1273_v15  ;;  %1238 = vadd.xlane.f32.xlu1 %v1237_v6  ;;  %v3872_v38 = vpop.trf.xlu0  ;;  %v1249_v15 = vsel %vm852_vm2, %v1209_v37, 0.0  ;;  %v1202_v14 = vmul.f32 %v2732_v26, %v3842_v57  ;;  %v2734_v45 = vpop.eup %2733 }
 0x56f   :  { %v1206_v11 = vmul.f32 %v1144_v54, %v3872_v38  ;;  %v3879_v63 = vmul.f32 %v1184_v7, %v3872_v38  ;;  %v3882_v13 = vmul.f32 %v1192_v2, %v3872_v38  ;;  %v1210_v6 = vmul.f32 %v1152_v17, %v3872_v38  ;;  %v2736_v43 = vpop.eup %2735  ;;  %v1080_v37 = vpop.xlane.xlu1 %1079 }
 0x570   :  { %v1234_v53 = vmul.f32 %v1200_v44, %v3872_v38  ;;  %v1154_v2 = vmul.f32 %v2734_v45, %v3718_v16  ;;  %v2738_v51 = vpop.eup %2737  ;;  %2747 = vrcp.f32 %v1080_v37 }
 0x571   :  { %v1240_v40 = vsel %vm852_vm2, %v1206_v11, 0.0  ;;  %v1252_v32 = vsel %vm852_vm2, %v1210_v6, 0.0  ;;  %v1158_v11 = vmul.f32 %v2736_v43, %v3723_v18  ;;  %v1160_v16 = vmul.f32 %v2738_v51, %v3728_v1 }
 0x572   :  { %1241 = vadd.xlane.f32.xlu1 %v1240_v40  ;;  %v3887_v41 = vpop.trf.xlu0  ;;  %v1324_v54 = vsel %vm852_vm2, %v1234_v53, 0.0  ;;  %v2740_v40 = vpop.eup %2739  ;;  %2749 = vrcp.f32 %v3855_v50 }
 0x573   :  { %v1231_v4 = vmul.f32 %v1194_v36, %v3887_v41  ;;  %v3894_v42 = vmul.f32 %v1186_v22, %v3887_v41  ;;  %v1235_v62 = vmul.f32 %v1202_v14, %v3887_v41  ;;  %v1207_v7 = vmul.f32 %v1146_v58, %v3887_v41  ;;  %v2742_v61 = vpop.eup %2741  ;;  %v1095_v44 = vpop.xlane.xlu1 %1094 }
 0x574   :  { %v1211_v55 = vmul.f32 %v1154_v2, %v3887_v41  ;;  %v1213_v28 = vmul.f32 %v1158_v11, %v3865_v49  ;;  %v1214_v22 = vmul.f32 %v1160_v16, %v3872_v38  ;;  %v1148_v18 = vmul.f32 %v2740_v40, %v3733_v27  ;;  %v2744_v20 = vpop.eup %2743 }
 0x575   :  { %v1315_v19 = vsel %vm852_vm2, %v1231_v4, 0.0  ;;  %v1327_v57 = vsel %vm852_vm2, %v1235_v62, 0.0  ;;  %v1243_v10 = vsel %vm852_vm2, %v1207_v7, 0.0  ;;  %v1156_v1 = vmul.f32 %v2742_v61, %v3738_v3 }
 0x576   :  { %1250 = vadd.xlane.f32.xlu1 %v1249_v15  ;;  %1316 = vadd.xlane.f32.xlu0 %v1315_v19  ;;  %v1255_v48 = vsel %vm852_vm2, %v1211_v55, 0.0  ;;  %v1261_v36 = vsel %vm852_vm2, %v1213_v28, 0.0  ;;  %v3920_v0 = vpop.trf.xlu0  ;;  %v1264_v4 = vsel %vm852_vm2, %v1214_v22, 0.0  ;;  %2751 = vrcp.f32 %v1095_v44  ;;  %v2746_v19 = vpop.eup %2745 }
 0x577   :  { %v1208_v17 = vmul.f32 %v1148_v18, %v3920_v0  ;;  %v1212_v15 = vmul.f32 %v1156_v1, %v3920_v0  ;;  %v1162_v27 = vmul.f32 %v2744_v20, %v3743_v46  ;;  %2753 = vrcp.f32 %v3857_v25  ;;  %v1092_v14 = vpop.xlane.xlu1 %1091 }
 0x578   :  { %v1168_v3 = vmul.f32 %v2746_v19, %v3755_v31  ;;  %2755 = vrcp.f32 %v1092_v14  ;;  %v1312_v14 = vsel %vm852_vm2, %v3882_v13, 0.0 }
 0x579   :  { %v1246_v26 = vsel %vm852_vm2, %v1208_v17, 0.0  ;;  %v1258_v6 = vsel %vm852_vm2, %v1212_v15, 0.0  ;;  %v1215_v53 = vmul.f32 %v1162_v27, %v3887_v41  ;;  %2757 = vrcp.f32 %v3859_v47 }
 0x57a   :  { %1253 = vadd.xlane.f32.xlu1 %v1252_v32  ;;  %1325 = vadd.xlane.f32.xlu0 %v1324_v54  ;;  %v1218_v45 = vmul.f32 %v1168_v3, %v3872_v38 }
 0x57b   :  { %v1267_v58 = vsel %vm852_vm2, %v1215_v53, 0.0  ;;  %v1107_v7 = vpop.xlane.xlu1 %1106 }
 0x57c   :  { %v1276_v54 = vsel %vm852_vm2, %v1218_v45, 0.0  ;;  %2759 = vrcp.f32 %v1107_v7 }
 0x57d   :  { %v2748_v50 = vpop.eup %2747 }
 0x57e   :  { %1328 = vadd.xlane.f32.xlu0 %v1327_v57  ;;  %1244 = vadd.xlane.f32.xlu1 %v1243_v10  ;;  %v1164_v46 = vmul.f32 %v2748_v50, %v3761_v33 }
 0x57f   :  { %v2750_v32 = vpop.eup %2749  ;;  %v1104_v11 = vpop.xlane.xlu1 %1103 }
 0x580   :  { %v1216_v62 = vmul.f32 %v1164_v46, %v3920_v0  ;;  %v1170_v31 = vmul.f32 %v2750_v32, %v3767_v35  ;;  %2761 = vrcp.f32 %v1104_v11 }
 0x582   :  { %1256 = vadd.xlane.f32.xlu1 %v1255_v48  ;;  %v1270_v2 = vsel %vm852_vm2, %v1216_v62, 0.0  ;;  %v1219_v43 = vmul.f32 %v1170_v31, %v3887_v41 }
 0x583   :  { %v2752_v25 = vpop.eup %2751 }
 0x584   :  { %v1174_v33 = vmul.f32 %v2752_v25, %v3773_v34  ;;  %v2754_v57 = vpop.eup %2753  ;;  %v1279_v10 = vsel %vm852_vm2, %v1219_v43, 0.0  ;;  %v1119_v34 = vpop.xlane.xlu1 %1118 }
 0x585   :  { %v1176_v47 = vmul.f32 %v2754_v57, %v3781_v59  ;;  %v2756_v35 = vpop.eup %2755  ;;  %2763 = vrcp.f32 %v1119_v34 }
 0x586   :  { %1262 = vadd.xlane.f32.xlu1 %v1261_v36  ;;  %v1221_v55 = vmul.f32 %v1174_v33, %v3865_v49  ;;  %v1172_v28 = vmul.f32 %v2756_v35, %v3776_v12  ;;  %v2758_v16 = vpop.eup %2757 }
 0x587   :  { %v1222_v48 = vmul.f32 %v1176_v47, %v3872_v38  ;;  %v1178_v36 = vmul.f32 %v2758_v16, %v3791_v21 }
 0x588   :  { %v1285_v51 = vsel %vm852_vm2, %v1221_v55, 0.0  ;;  %v1220_v37 = vmul.f32 %v1172_v28, %v3920_v0  ;;  %v1116_v61 = vpop.xlane.xlu1 %1115  ;;  %v1372_v55 = vand.u32 127, %v668_v29 }
 0x589   :  { %v1288_v40 = vsel %vm852_vm2, %v1222_v48, 0.0  ;;  %v2760_v22 = vpop.eup %2759  ;;  %v1223_v18 = vmul.f32 %v1178_v36, %v3887_v41  ;;  %2765 = vrcp.f32 %v1116_v61  ;;  %v1300_v41 = vsel %vm852_vm2, %v3879_v63, 0.0 }
 0x58a   :  { %1265 = vadd.xlane.f32.xlu1 %v1264_v4  ;;  %v1282_v59 = vsel %vm852_vm2, %v1220_v37, 0.0  ;;  %v1182_v38 = vmul.f32 %v2760_v22, %v3785_v23  ;;  %v1377_v11 = vadd.s32 4294967288, %v1372_v55  ;;  %v4001_v35 = vsub.s32 %v1372_v55, %v3473_v30 }
 0x58b   :  { %v1291_v12 = vsel %vm852_vm2, %v1223_v18, 0.0  ;;  %v1391_v48 = vadd.s32 4294967272, %v1372_v55  ;;  %v1384_v28 = vadd.s32 4294967280, %v1372_v55 }
 0x58c   :  { %v1225_v4 = vmul.f32 %v1182_v38, %v3865_v49  ;;  %v1131_v1 = vpop.xlane.xlu1 %1130 }
 0x58d   :  { %v2762_v17 = vpop.eup %2761  ;;  %2767 = vrcp.f32 %v1131_v1  ;;  %v4010_v29 = vsub.s32 %v1391_v48, %v3473_v30  ;;  %v4013_v36 = vsub.s32 %v1384_v28, %v3473_v30 }
 0x58e   :  { %1247 = vadd.xlane.f32.xlu1 %v1246_v26  ;;  %v1297_v20 = vsel %vm852_vm2, %v1225_v4, 0.0  ;;  %v1180_v21 = vmul.f32 %v2762_v17, %v3795_v8 }
 0x590   :  { %v1224_v44 = vmul.f32 %v1180_v21, %v3920_v0  ;;  %v1128_v26 = vpop.xlane.xlu1 %1127 }
 0x591   :  { %2769 = vrcp.f32 %v1128_v26 }
 0x592   :  { %1259 = vadd.xlane.f32.xlu1 %v1258_v6  ;;  %v2764_v23 = vpop.eup %2763  ;;  %v1294_v15 = vsel %vm852_vm2, %v1224_v44, 0.0  ;;  %v1303_v6 = vsel %vm852_vm2, %v3894_v42, 0.0 }
 0x593   :  { %v1190_v27 = vmul.f32 %v2764_v23, %v3807_v39 }
 0x594   :  { %v1140_v19 = vpop.xlane.xlu1 %1139 }
 0x595   :  { %v1229_v8 = vmul.f32 %v1190_v27, %v3865_v49  ;;  %2771 = vrcp.f32 %v1140_v19 }
 0x596   :  { %1268 = vadd.xlane.f32.xlu1 %v1267_v58  ;;  %v2766_v63 = vpop.eup %2765 }
 0x597   :  { %v1309_v53 = vsel %vm852_vm2, %v1229_v8, 0.0  ;;  %v1188_v3 = vmul.f32 %v2766_v63, %v3816_v52 }
 0x599   :  { %v1228_v39 = vmul.f32 %v1188_v3, %v3920_v0 }
 0x59a   :  { %1277 = vadd.xlane.f32.xlu1 %v1276_v54  ;;  %v2768_v50 = vpop.eup %2767 }
 0x59b   :  { %v1198_v58 = vmul.f32 %v2768_v50, %v3820_v5  ;;  %v1306_v45 = vsel %vm852_vm2, %v1228_v39, 0.0 }
 0x59d   :  { %v1233_v46 = vmul.f32 %v1198_v58, %v3865_v49  ;;  %v304_v49 = vld [vmem:[%s4373_s0 + $0x10] sm:$0xff] }
 0x59e   :  { %1271 = vadd.xlane.f32.xlu1 %v1270_v2  ;;  %v2770_v42 = vpop.eup %2769 }
 0x59f   :  { %v1196_v32 = vmul.f32 %v2770_v42, %v3832_v56  ;;  %v1321_v52 = vsel %vm852_vm2, %v1233_v46, 0.0  ;;  %v305_v56 = vld [vmem:[%s4373_s0 + $0x18] sm:$0xff] }
 0x5a0   :  { %2525 = vmatpush3.msra.mxu1 %v305_v56 }
 0x5a1   :  { %v1232_v62 = vmul.f32 %v1196_v32, %v3920_v0  ;;  %2526 = vmatprep.subr.mxu1 %v3192_v9 }
 0x5a2   :  { %1280 = vadd.xlane.f32.xlu1 %v1279_v10  ;;  %v2772_v54 = vpop.eup %2771  ;;  %2527 = vmatpush3.msra.mxu1 %v304_v49 }
 0x5a3   :  { %v1204_v13 = vmul.f32 %v2772_v54, %v3840_v60  ;;  %v1318_v31 = vsel %vm852_vm2, %v1232_v62, 0.0  ;;  %2528 = vmatprep.subr.mxu1 %v3192_v9  ;;  %v303_v60 = vld [vmem:[%s4373_s0 + $0x8] sm:$0xff] }
 0x5a4   :  { %2529 = vmatpush3.msra.mxu1 %v303_v60 }
 0x5a5   :  { %v1236_v5 = vmul.f32 %v1204_v13, %v3920_v0  ;;  %v302_v0 = vld [vmem:[%s4373_s0] sm:$0xff]  ;;  %2530 = vmatprep.subr.mxu1 %v3192_v9 }
 0x5a6   :  { %1286 = vadd.xlane.f32.xlu1 %v1285_v51  ;;  %2531 = vmatpush3.msra.mxu1 %v302_v0  ;;  %v4004_v51 = vsub.s32 %v1377_v11, %v3473_v30 }
 0x5a7   :  { %v1330_v25 = vsel %vm852_vm2, %v1236_v5, 0.0  ;;  %2546 = vmatprep.subr.mxu1 %v3192_v9 }
 0x5aa   :  { %1289 = vadd.xlane.f32.xlu1 %v1288_v40 }
 0x5ae   :  { %1283 = vadd.xlane.f32.xlu1 %v1282_v59 }
 0x5b2   :  { %1292 = vadd.xlane.f32.xlu1 %v1291_v12 }
 0x5b6   :  { %1298 = vadd.xlane.f32.xlu1 %v1297_v20 }
 0x5ba   :  { %1301 = vadd.xlane.f32.xlu1 %v1300_v41 }
 0x5be   :  { %1295 = vadd.xlane.f32.xlu1 %v1294_v15 }
 0x5c2   :  { %1304 = vadd.xlane.f32.xlu1 %v1303_v6 }
 0x5c6   :  { %1310 = vadd.xlane.f32.xlu1 %v1309_v53 }
 0x5ca   :  { %1313 = vadd.xlane.f32.xlu1 %v1312_v14 }
 0x5ce   :  { %1307 = vadd.xlane.f32.xlu1 %v1306_v45 }
 0x5d2   :  { %1322 = vadd.xlane.f32.xlu1 %v1321_v52 }
 0x5d6   :  { %1319 = vadd.xlane.f32.xlu1 %v1318_v31 }
 0x5da   :  { %1331 = vadd.xlane.f32.xlu1 %v1330_v25 }
 0x5f7   :  { %v1239_v7 = vpop.xlane.xlu1 %1238  ;;  %v1275_v13 = vpop.xlane.xlu0 %1274 }
 0x5f8   :  { %v1376_v12 = vrot.slane %v1239_v7, %v4001_v35  ;;  %v1439_v60 = vrot.slane %v1275_v13, %v4001_v35  ;;  %v310_v13 = vld [vmem:[#allocation16 + $0x8] sm:$0xff] }
 0x5fb   :  { %v1242_v2 = vpop.xlane.xlu1 %1241 }
 0x5fc   :  { %v1381_v59 = vrot.slane %v1242_v2, %v4004_v51 }
 0x5fe   :  { %v1383_v30 = vsel %vm1382_vm3, %v1381_v59, %v1376_v12 }
 0x5ff   :  { %v1251_v43 = vpop.xlane.xlu1 %1250  ;;  %v1317_v5 = vpop.xlane.xlu0 %1316 }
 0x600   :  { %v1401_v4 = vrot.slane %v1251_v43, %v4001_v35 }
 0x603   :  { %v1254_v33 = vpop.xlane.xlu1 %1253  ;;  %v1326_v56 = vpop.xlane.xlu0 %1325 }
 0x604   :  { %v1405_v18 = vrot.slane %v1254_v33, %v4004_v51  ;;  %v1505_v33 = vrot.slane %v1317_v5, %v4013_v36 }
 0x606   :  { %v1406_v20 = vsel %vm1382_vm3, %v1405_v18, %v1401_v4 }
 0x607   :  { %v1245_v57 = vpop.xlane.xlu1 %1244  ;;  %v1329_v12 = vpop.xlane.xlu0 %1328 }
 0x608   :  { %v1388_v61 = vrot.slane %v1245_v57, %v4013_v36 }
 0x60a   :  { %v1390_v41 = vsel %vm1389_vm4, %v1388_v61, %v1383_v30 }
 0x60b   :  { %v1257_v10 = vpop.xlane.xlu1 %1256 }
 0x60c   :  { %v1410_v38 = vrot.slane %v1257_v10, %v4013_v36 }
 0x60e   :  { %v1411_v44 = vsel %vm1389_vm4, %v1410_v38, %v1406_v20 }
 0x60f   :  { %v1263_v47 = vpop.xlane.xlu1 %1262 }
 0x610   :  { %v1420_v34 = vrot.slane %v1263_v47, %v4001_v35 }
 0x613   :  { %v1266_v16 = vpop.xlane.xlu1 %1265 }
 0x614   :  { %v1424_v40 = vrot.slane %v1266_v16, %v4004_v51 }
 0x616   :  { %v1425_v37 = vsel %vm1382_vm3, %v1424_v40, %v1420_v34 }
 0x617   :  { %v1248_v22 = vpop.xlane.xlu1 %1247 }
 0x618   :  { %v1395_v17 = vrot.slane %v1248_v22, %v4010_v29  ;;  %v1519_v22 = vrot.slane %v1326_v56, %v4004_v51 }
 0x61a   :  { %v1397_v26 = vsel %vm1396_vm5, %v1395_v17, %v1390_v41 }
 0x61b   :  { %v1260_v1 = vpop.xlane.xlu1 %1259 }
 0x61c   :  { %v1415_v21 = vrot.slane %v1260_v1, %v4010_v29 }
 0x61e   :  { %v1416_v23 = vsel %vm1396_vm5, %v1415_v21, %v1411_v44  ;;  %v1524_v44 = vrot.slane %v1329_v12, %v4013_v36 }
 0x61f   :  { %v1532_v15 = vsel %vm1531_vm6, %v1416_v23, %v1397_v26  ;;  %v1269_v27 = vpop.xlane.xlu1 %1268 }
 0x620   :  { %v1429_v6 = vrot.slane %v1269_v27, %v4013_v36 }
 0x622   :  { %v1430_v53 = vsel %vm1389_vm4, %v1429_v6, %v1425_v37 }
 0x623   :  { %v1278_v19 = vpop.xlane.xlu1 %1277 }
 0x624   :  { %v1443_v49 = vrot.slane %v1278_v19, %v4004_v51 }
 0x626   :  { %v1444_v16 = vsel %vm1382_vm3, %v1443_v49, %v1439_v60  ;;  %v2424_v49 = vld [vmem:[#allocation13] ss:$0 sm:$0xff] }
 0x627   :  { %v1272_v8 = vpop.xlane.xlu1 %1271 }
 0x628   :  { %v1434_v63 = vrot.slane %v1272_v8, %v4010_v29 }
 0x62a   :  { %v1435_v3 = vsel %vm1396_vm5, %v1434_v63, %v1430_v53 }
 0x62b   :  { %v1534_v50 = vsel %vm1533_vm7, %v1435_v3, %v1532_v15  ;;  %v1281_v14 = vpop.xlane.xlu1 %1280  ;;  %vm2336_vm7 = vcmask 7168  }
 0x62c   :  { %v1448_v0 = vrot.slane %v1281_v14, %v4013_v36 }
 0x62e   :  { %v1449_v59 = vsel %vm1389_vm4, %v1448_v0, %v1444_v16  ;;  %v2425_v0 = vld [vmem:[#allocation15] ss:$0 sm:$0xff] }
 0x62f   :  { %v1287_v39 = vpop.xlane.xlu1 %1286 }
 0x630   :  { %v1458_v11 = vrot.slane %v1287_v39, %v4001_v35 }
 0x633   :  { %v1290_v58 = vpop.xlane.xlu1 %1289 }
 0x634   :  { %v1462_v7 = vrot.slane %v1290_v58, %v4004_v51 }
 0x636   :  { %v1463_v18 = vsel %vm1382_vm3, %v1462_v7, %v1458_v11  ;;  %v316_v11 = vld [vmem:[%s4335_s16 + $0x10] sm:$0xff] }
 0x637   :  { %v1284_v42 = vpop.xlane.xlu1 %1283 }
 0x638   :  { %v1453_v57 = vrot.slane %v1284_v42, %v4010_v29 }
 0x63a   :  { %v1454_v4 = vsel %vm1396_vm5, %v1453_v57, %v1449_v59  ;;  %v319_v57 = vld [vmem:[%s4335_s16 + $0x28] sm:$0xff] }
 0x63b   :  { %v1293_v45 = vpop.xlane.xlu1 %1292  ;;  %v1536_v26 = vsel %vm1535_vm8, %v1454_v4, %v1534_v50  ;;  %vm2338_vm8 = vcmask 15360  }
 0x63c   :  { %v1467_v10 = vrot.slane %v1293_v45, %v4013_v36 }
 0x63e   :  { %v1468_v17 = vsel %vm1389_vm4, %v1467_v10, %v1463_v18  ;;  %v318_v10 = vld [vmem:[%s4335_s16 + $0x20] sm:$0xff] }
 0x63f   :  { %v1299_v46 = vpop.xlane.xlu1 %1298 }
 0x640   :  { %v1477_v34 = vrot.slane %v1299_v46, %v4001_v35 }
 0x643   :  { %v1302_v32 = vpop.xlane.xlu1 %1301 }
 0x644   :  { %v1481_v55 = vrot.slane %v1302_v32, %v4004_v51 }
 0x646   :  { %v1482_v1 = vsel %vm1382_vm3, %v1481_v55, %v1477_v34  ;;  %v317_v55 = vld [vmem:[%s4335_s16 + $0x18] sm:$0xff] }
 0x647   :  { %v1296_v54 = vpop.xlane.xlu1 %1295 }
 0x648   :  { %v1472_v47 = vrot.slane %v1296_v54, %v4010_v29 }
 0x64b   :  { %v1305_v52 = vpop.xlane.xlu1 %1304 }
 0x64c   :  { %v1486_v48 = vrot.slane %v1305_v52, %v4013_v36  ;;  %v2422_v36 = vld [vmem:[#allocation12] ss:$0 sm:$0xff] }
 0x64d   :  { %v312_v52 = vld [vmem:[#allocation16 + $0x18] sm:$0xff] }
 0x64e   :  { %2536 = vmatpush3.msra.mxu0 %v312_v52 }
 0x64f   :  { %v1311_v62 = vpop.xlane.xlu1 %1310  ;;  %2537 = vmatprep.subr.mxu0 %v3192_v9 }
 0x650   :  { %v1496_v28 = vrot.slane %v1311_v62, %v4001_v35  ;;  %v311_v62 = vld [vmem:[#allocation16 + $0x10] sm:$0xff] }
 0x651   :  { %2538 = vmatpush3.msra.mxu0 %v311_v62 }
 0x652   :  { %2539 = vmatprep.subr.mxu0 %v3192_v9 }
 0x653   :  { %v1314_v31 = vpop.xlane.xlu1 %1313  ;;  %2540 = vmatpush3.msra.mxu0 %v310_v13 }
 0x654   :  { %v1500_v2 = vrot.slane %v1314_v31, %v4004_v51  ;;  %v1487_v51 = vsel %vm1389_vm4, %v1486_v48, %v1482_v1  ;;  %2541 = vmatprep.subr.mxu0 %v3192_v9  ;;  %v314_v48 = vld [vmem:[%s4335_s16] sm:$0xff]  ;;  %v330_v1 = vld [vmem:[%s4337_s18 + $0x38] sm:$0xff] }
 0x656   :  { %v1501_v61 = vsel %vm1382_vm3, %v1500_v2, %v1496_v28  ;;  %v2426_v28 = vld [vmem:[#allocation18] ss:$0 sm:$0xff] }
 0x657   :  { %v1308_v25 = vpop.xlane.xlu1 %1307  ;;  %v1506_v41 = vsel %vm1389_vm4, %v1505_v33, %v1501_v61  ;;  %v320_v33 = vld [vmem:[%s4335_s16 + $0x30] sm:$0xff] }
 0x658   :  { %v1491_v40 = vrot.slane %v1308_v25, %v4010_v29 }
 0x65a   :  { %v1492_v20 = vsel %vm1396_vm5, %v1491_v40, %v1487_v51  ;;  %v327_v51 = vld [vmem:[%s4337_s18 + $0x20] sm:$0xff] }
 0x65b   :  { %v1323_v43 = vpop.xlane.xlu1 %1322 }
 0x65c   :  { %v1515_v37 = vrot.slane %v1323_v43, %v4001_v35  ;;  %v1473_v35 = vsel %vm1396_vm5, %v1472_v47, %v1468_v17  ;;  %v321_v43 = vld [vmem:[%s4335_s16 + $0x38] sm:$0xff]  ;;  %v315_v47 = vld [vmem:[%s4335_s16 + $0x8] sm:$0xff] }
 0x65d   :  { %v1538_v27 = vsel %vm1537_vm9, %v1473_v35, %v1536_v26  ;;  %v328_v35 = vld [vmem:[%s4337_s18 + $0x28] sm:$0xff]  ;;  %v2428_v26 = vld [vmem:[#allocation19] ss:$0 sm:$0xff]  ;;  %vm2340_vm9 = vcmask 23552  }
 0x65e   :  { %v1520_v21 = vsel %vm1382_vm3, %v1519_v22, %v1515_v37  ;;  %v1540_v6 = vsel %vm1539_vm10, %v1492_v20, %v1538_v27  ;;  %v326_v20 = vld [vmem:[%s4337_s18 + $0x18] sm:$0xff] }
 0x65f   :  { %v1320_v38 = vpop.xlane.xlu1 %1319  ;;  %v1525_v8 = vsel %vm1389_vm4, %v1524_v44, %v1520_v21  ;;  %v325_v21 = vld [vmem:[%s4337_s18 + $0x10] sm:$0xff]  ;;  %v323_v44 = vld [vmem:[%s4337_s18] sm:$0xff]  ;;  %vm2343_vm4 = vcmask 31744  }
 0x660   :  { %v1510_v30 = vrot.slane %v1320_v38, %v4010_v29 }
 0x662   :  { %v1511_v23 = vsel %vm1396_vm5, %v1510_v30, %v1506_v41  ;;  %v329_v30 = vld [vmem:[%s4337_s18 + $0x30] sm:$0xff]  ;;  %v324_v41 = vld [vmem:[%s4337_s18 + $0x8] sm:$0xff]  ;;  %s3204_s18 = smov 9  }
 0x663   :  { %v1332_v15 = vpop.xlane.xlu1 %1331  ;;  %v1542_v63 = vsel %vm1541_vm11, %v1511_v23, %v1540_v6 }
 0x664   :  { %v1529_v19 = vrot.slane %v1332_v15, %v4010_v29 }
 0x666   :  { %v1530_v53 = vsel %vm1396_vm5, %v1529_v19, %v1525_v8 }
 0x667   :  { %v1544_v3 = vsel %vm1543_vm12, %v1530_v53, %v1542_v63 }
 0x668   :  { %2533 = vmatmul.mubr.msk.f32.vlgmr.msra.gmra.mxu1 %vm344_vm0, %v1544_v3 }
 0x669   :  { %2562 = vmatprep.mubr.msk.f32.mxu1 %vm3193_vm1, %v3192_v9  ;;  %2547 = vmatpush3.msra.mxu1 %v321_v43 }
 0x66a   :  { %2548 = vmatprep.subr.mxu1 %v3192_v9 }
 0x66b   :  { %2549 = vmatpush3.msra.mxu1 %v320_v33 }
 0x66c   :  { %2550 = vmatprep.subr.mxu1 %v3192_v9 }
 0x66d   :  { %2551 = vmatpush3.msra.mxu1 %v319_v57  ;;  %v2432_v57 = vld [vmem:[#allocation22] ss:$0 sm:$0xff] }
 0x66e   :  { %2552 = vmatprep.subr.mxu1 %v3192_v9 }
 0x66f   :  { %2553 = vmatpush3.msra.mxu1 %v318_v10 }
 0x670   :  { %2554 = vmatprep.subr.mxu1 %v3192_v9 }
 0x671   :  { %2555 = vmatpush3.msra.mxu1 %v317_v55  ;;  %v2433_v55 = vld [vmem:[#allocation24] ss:$0 sm:$0xff] }
 0x672   :  { %2556 = vmatprep.subr.mxu1 %v3192_v9 }
 0x673   :  { %2557 = vmatpush3.msra.mxu1 %v316_v11 }
 0x674   :  { %2558 = vmatprep.subr.mxu1 %v3192_v9 }
 0x675   :  { %2559 = vmatpush3.msra.mxu1 %v315_v47 }
 0x676   :  { %2560 = vmatprep.subr.mxu1 %v3192_v9 }
 0x677   :  { %2561 = vmatpush3.msra.mxu1 %v314_v48  ;;  %v2436_v48 = vld [vmem:[#allocation27] ss:$0 sm:$0xff] }
 0x678   :  { %2584 = vmatprep.subr.mxu1 %v3192_v9 }
 0x728   :  { %v1613_v50 = vpop.f32.mrf.mxu1 }
 0x729   :  { %v1614_v14 = vadd.f32 %v2422_v36, %v1613_v50 }
 0x72a   :  { %v2534_v39 = vpop.f32.mrf.mxu1 }
 0x72b   :  { %v1617_v58 = vadd.f32 %v1614_v14, %v3442_v24  ;;  %v309_v24 = vld [vmem:[#allocation16] sm:$0xff] }
 0x72c   :  { %2542 = vmatpush3.msra.mxu0 %v309_v24  ;;  %v2430_v39 = vld [vmem:[#allocation21] ss:$0 sm:$0xff] }
 0x72d   :  { %v1618_v29 = vsel %vm344_vm0, %v1617_v58, 0.0  ;;  %2565 = vmatprep.subr.mxu0 %v3192_v9  ;;  %v337_v24 = vld [vmem:[%s4341_s22 + $0x18] sm:$0xff] }
 0x72e   :  { %1619 = vadd.xlane.f32.xlu0 %v1618_v29 }
 0x7b7   :  { %v1620_v42 = vpop.xlane.xlu0 %1619 }
 0x7b8   :  { %v1621_v45 = vmul.f32 0.03125, %v1620_v42 }
 0x7ba   :  { %v1622_v46 = vsub.f32 %v1617_v58, %v1621_v45 }
 0x7bc   :  { %v1623_v32 = vmul.f32 %v1622_v46, %v1622_v46 }
 0x7be   :  { %v1624_v54 = vsel %vm344_vm0, %v1623_v32, 0.0 }
 0x7bf   :  { %1625 = vadd.xlane.f32.xlu1 %v1624_v54 }
 0x848   :  { %v1626_v31 = vpop.xlane.xlu1 %1625 }
 0x849   :  { %v1627_v5 = vmul.f32 0.03125, %v1626_v31  ;;  %v342_v31 = vld [vmem:[%s4343_s24 + $0x18] sm:$0xff] }
 0x84b   :  { %v1628_v25 = vadd.f32 1e-05, %v1627_v5  ;;  %v336_v5 = vld [vmem:[%s4341_s22 + $0x10] sm:$0xff] }
 0x84d   :  { %2773 = vrsqrt.f32 %v1628_v25  ;;  %v341_v25 = vld [vmem:[%s4343_s24 + $0x10] sm:$0xff] }
 0x85a   :  { %v2774_v56 = vpop.eup %2773 }
 0x85b   :  { %v1630_v60 = vmul.f32 %v2774_v56, %v1622_v46  ;;  %v335_v56 = vld [vmem:[%s4341_s22 + $0x8] sm:$0xff] }
 0x85d   :  { %v1637_v7 = vmul.f32 %v2424_v49, %v1630_v60  ;;  %v340_v49 = vld [vmem:[%s4343_s24 + $0x8] sm:$0xff]  ;;  %v334_v60 = vld [vmem:[%s4341_s22] sm:$0xff]  ;;  %s3194_s22 = smov 126  }
 0x85f   :  { %v4079_v2 = vadd.f32 %v2425_v0, %v1637_v7  ;;  %v339_v0 = vld [vmem:[%s4343_s24] sm:$0xff]  ;;  %s3195_s24 = smov 127  }
 0x861   :  { %2544 = vmatmul.mubr.msk.f32.vlgmr.msra.gmra.mxu0 %vm344_vm0, %v4079_v2 }
 0x862   :  { %2581 = vmatprep.mubr.msk.f32.mxu0 %vm3193_vm1, %v3192_v9  ;;  %2566 = vmatpush3.msra.mxu0 %v330_v1 }
 0x863   :  { %2567 = vmatprep.subr.mxu0 %v3192_v9 }
 0x864   :  { %2568 = vmatpush3.msra.mxu0 %v329_v30 }
 0x865   :  { %2569 = vmatprep.subr.mxu0 %v3192_v9 }
 0x866   :  { %2570 = vmatpush3.msra.mxu0 %v328_v35 }
 0x867   :  { %2571 = vmatprep.subr.mxu0 %v3192_v9 }
 0x868   :  { %2572 = vmatpush3.msra.mxu0 %v327_v51 }
 0x869   :  { %2573 = vmatprep.subr.mxu0 %v3192_v9 }
 0x86a   :  { %2574 = vmatpush3.msra.mxu0 %v326_v20 }
 0x86b   :  { %2575 = vmatprep.subr.mxu0 %v3192_v9 }
 0x86c   :  { %2576 = vmatpush3.msra.mxu0 %v325_v21 }
 0x86d   :  { %2577 = vmatprep.subr.mxu0 %v3192_v9 }
 0x86e   :  { %2578 = vmatpush3.msra.mxu0 %v324_v41 }
 0x86f   :  { %2579 = vmatprep.subr.mxu0 %v3192_v9 }
 0x870   :  { %2580 = vmatpush3.msra.mxu0 %v323_v44 }
 0x871   :  { %2595 = vmatprep.subr.mxu0 %v3192_v9 }
 0x921   :  { %v1720_v16 = vpop.f32.mrf.mxu0 }
 0x922   :  { %v1721_v34 = vadd.f32 %v2426_v28, %v1720_v16 }
 0x923   :  { %v2545_v40 = vpop.f32.mrf.mxu0 }
 0x924   :  { %v1725_v37 = vmul.f32 0.044715, %v1721_v34  ;;  %v1724_v12 = vmul.f32 0.5, %v1721_v34 }
 0x926   :  { %v1726_v22 = vmul.f32 %v1725_v37, %v1721_v34 }
 0x928   :  { %v1727_v59 = vmul.f32 %v1726_v22, %v1721_v34 }
 0x92a   :  { %v1728_v18 = vadd.f32 %v1727_v59, %v1721_v34 }
 0x92c   :  { %v1729_v61 = vmul.f32 0.7978846, %v1728_v18 }
 0x92e   :  { %2775 = vtanh.f32 %v1729_v61 }
 0x93b   :  { %v2776_v38 = vpop.eup %2775 }
 0x93c   :  { %v1731_v4 = vadd.f32 1.0, %v2776_v38 }
 0x93e   :  { %v1732_v17 = vmul.f32 %v1731_v4, %v1724_v12 }
 0x940   :  { %2563 = vmatmul.mubr.msk.f32.vlgmr.msra.gmra.mxu1 %vm1739_vm13, %v1732_v17 }
 0x941   :  { %2592 = vmatprep.mubr.msk.f32.mxu1 %vm3193_vm1, %v3192_v9  ;;  %2585 = vmatpush3.msra.mxu1 %v337_v24 }
 0x942   :  { %2586 = vmatprep.subr.mxu1 %v3192_v9 }
 0x943   :  { %2587 = vmatpush3.msra.mxu1 %v336_v5 }
 0x944   :  { %2588 = vmatprep.subr.mxu1 %v3192_v9 }
 0x945   :  { %2589 = vmatpush3.msra.mxu1 %v335_v56 }
 0x946   :  { %2590 = vmatprep.subr.mxu1 %v3192_v9 }
 0x947   :  { %2591 = vmatpush3.msra.mxu1 %v334_v60 }
 0xa00   :  { %v1809_v23 = vpop.f32.mrf.mxu1 }
 0xa01   :  { %v1810_v15 = vadd.f32 %v2428_v26, %v1809_v23 }
 0xa02   :  { %v2564_v27 = vpop.f32.mrf.mxu1 }
 0xa03   :  { %v1814_v19 = vmul.f32 0.044715, %v1810_v15  ;;  %v1813_v36 = vmul.f32 0.5, %v1810_v15 }
 0xa05   :  { %v1815_v6 = vmul.f32 %v1814_v19, %v1810_v15 }
 0xa07   :  { %v1816_v8 = vmul.f32 %v1815_v6, %v1810_v15 }
 0xa09   :  { %v1817_v63 = vadd.f32 %v1816_v8, %v1810_v15 }
 0xa0b   :  { %v1818_v53 = vmul.f32 0.7978846, %v1817_v63 }
 0xa0d   :  { %2777 = vtanh.f32 %v1818_v53 }
 0xa1a   :  { %v2778_v3 = vpop.eup %2777 }
 0xa1b   :  { %v1820_v50 = vadd.f32 1.0, %v2778_v3 }
 0xa1d   :  { %v1821_v14 = vmul.f32 %v1820_v50, %v1813_v36 }
 0xa1f   :  { %2582 = vmatmul.mubr.msk.f32.vlgmr.msra.gmra.mxu0 %vm1739_vm13, %v1821_v14 }
 0xa20   :  { %2603 = vmatprep.mubr.msk.f32.mxu0 %vm3193_vm1, %v3192_v9  ;;  %2596 = vmatpush3.msra.mxu0 %v342_v31 }
 0xa21   :  { %2597 = vmatprep.subr.mxu0 %v3192_v9 }
 0xa22   :  { %2598 = vmatpush3.msra.mxu0 %v341_v25 }
 0xa23   :  { %2599 = vmatprep.subr.mxu0 %v3192_v9 }
 0xa24   :  { %2600 = vmatpush3.msra.mxu0 %v340_v49 }
 0xa25   :  { %2601 = vmatprep.subr.mxu0 %v3192_v9 }
 0xa26   :  { %2602 = vmatpush3.msra.mxu0 %v339_v0 }
 0xadf   :  { %v1897_v58 = vpop.f32.mrf.mxu0 }
 0xae0   :  { %v1898_v29 = vadd.f32 %v2430_v39, %v1897_v58 }
 0xae1   :  { %v2583_v42 = vpop.f32.mrf.mxu0 }
 0xae2   :  { %v1901_v45 = vadd.f32 %v1898_v29, %v4079_v2 }
 0xae4   :  { %v1902_v46 = vsel %vm344_vm0, %v1901_v45, 0.0 }
 0xae5   :  { %1903 = vadd.xlane.f32.xlu0 %v1902_v46 }
 0xb6e   :  { %v1904_v32 = vpop.xlane.xlu0 %1903 }
 0xb6f   :  { %v1905_v54 = vmul.f32 0.03125, %v1904_v32 }
 0xb71   :  { %v1906_v52 = vsub.f32 %v1901_v45, %v1905_v54 }
 0xb73   :  { %v1907_v62 = vmul.f32 %v1906_v52, %v1906_v52 }
 0xb75   :  { %v1908_v13 = vsel %vm344_vm0, %v1907_v62, 0.0 }
 0xb76   :  { %1909 = vadd.xlane.f32.xlu1 %v1908_v13 }
 0xbff   :  { %v1910_v7 = vpop.xlane.xlu1 %1909 }
 0xc00   :  { %v1911_v2 = vmul.f32 0.03125, %v1910_v7 }
 0xc02   :  { %v1912_v43 = vadd.f32 1e-05, %v1911_v2 }
 0xc04   :  { %2779 = vrsqrt.f32 %v1912_v43 }
 0xc11   :  { %v2780_v33 = vpop.eup %2779 }
 0xc12   :  { %v1914_v10 = vmul.f32 %v2780_v33, %v1906_v52 }
 0xc14   :  { %v1921_v11 = vmul.f32 %v2432_v57, %v1914_v10 }
 0xc16   :  { %v1928_v47 = vadd.f32 %v2433_v55, %v1921_v11 }
 0xc18   :  { %2593 = vmatmul.mubr.msk.f32.vlgmr.msra.gmra.mxu1 %vm344_vm0, %v1928_v47  ;;  %2604 = vmatmul.mubr.msk.f32.vlgmr.msra.gmra.mxu0 %vm344_vm0, %v1928_v47  ;;  %v4265_v47 = vld [vmem:[%s4374_s6] sm:$0xff] }
 0xcd8   :  { %v4190_v28 = vpop.f32.mrf.mxu1  ;;  %v2081_v9 = vpop.f32.mrf.mxu0 }
 0xcd9   :  { %v4192_v16 = vadd.f32 %v2436_v48, %v2081_v9 }
 0xcda   :  { %v2594_v34 = vpop.f32.mrf.mxu1  ;;  %v2605_v40 = vpop.f32.mrf.mxu0 }
 0xcdb   :  { %v2085_v37 = vmul.f32 %v4192_v16, %v4192_v16 }
 0xcdd   :  { %2091 = vrot.lane.b32.xlu1 %v2085_v37, %s3194_s22  ;;  %2087 = vrot.lane.b32.xlu0 %v2085_v37, %s3195_s24 }
 0xce1   :  { %2095 = vrot.lane.b32.xlu1 %v2085_v37, %s3196_s13  ;;  %2102 = vrot.lane.b32.xlu0 %v4192_v16, %s3197_s9 }
 0xd4f   :  { %v2092_v22 = vpop.permute.xlu1 %2091  ;;  %v2088_v59 = vpop.permute.xlu0 %2087 }
 0xd50   :  { %v2090_v18 = vadd.f32 %v2088_v59, %v2085_v37 }
 0xd52   :  { %v2094_v61 = vadd.f32 %v2092_v22, %v2090_v18 }
 0xd53   :  { %v2096_v38 = vpop.permute.xlu1 %2095  ;;  %v2103_v12 = vpop.permute.xlu0 %2102 }
 0xd54   :  { %v2098_v4 = vadd.f32 %v2096_v38, %v2094_v61  ;;  %v2105_v17 = vmul.f32 %v2103_v12, %v4192_v16 }
 0xd56   :  { %v2099_v1 = vmul.f32 0.001, %v2098_v4  ;;  %2107 = vrot.lane.b32.xlu0 %v2105_v17, %s3195_s24 }
 0xd58   :  { %v4203_v30 = vadd.f32 1e-05, %v2099_v1 }
 0xd5a   :  { %2115 = vrot.lane.b32.xlu0 %v2105_v17, %s3196_s13  ;;  %2781 = vrsqrt.f32 %v4203_v30  ;;  %vm2158_vm14 = vcmp.eq.f32.partialorder %v4203_v30, inf  ;;  %v2161_v20 = vand.u32 2147483648, %v4203_v30  ;;  %vm2160_vm15 = vcmp.eq.f32.partialorder %v4203_v30, 0.0 }
 0xd67   :  { %v2782_v35 = vpop.eup %2781 }
 0xd68   :  { %v2157_v51 = vmul.f32 %v2782_v35, %v4203_v30 }
 0xd6a   :  { %v2159_v21 = vsel %vm2158_vm14, %v4203_v30, %v2157_v51 }
 0xd6b   :  { %v4212_v41 = vsel %vm2160_vm15, %v2161_v20, %v2159_v21 }
 0xd6c   :  { %2164 = vrot.lane.b32.xlu1 %v4212_v41, %s3197_s9  ;;  %2178 = vrot.lane.b32.xlu0 %v4212_v41, %s3179_s8 }
 0xd70   :  { %2111 = vrot.lane.b32.xlu1 %v2105_v17, %s3194_s22 }
 0xd74   :  { %2120 = vrot.lane.b32.xlu1 %v4192_v16, %s3179_s8 }
 0xdc8   :  { %v2108_v44 = vpop.permute.xlu0 %2107 }
 0xdc9   :  { %v2110_v23 = vadd.f32 %v2108_v44, %v2105_v17 }
 0xdcc   :  { %v2116_v19 = vpop.permute.xlu0 %2115 }
 0xdde   :  { %v2165_v26 = vpop.permute.xlu1 %2164  ;;  %v2179_v46 = vpop.permute.xlu0 %2178 }
 0xddf   :  { %2783 = vrcp.f32 %v2165_v26 }
 0xde2   :  { %v2112_v15 = vpop.permute.xlu1 %2111 }
 0xde3   :  { %v2114_v27 = vadd.f32 %v2112_v15, %v2110_v23 }
 0xde5   :  { %v2118_v8 = vadd.f32 %v2116_v19, %v2114_v27 }
 0xde6   :  { %v2121_v6 = vpop.permute.xlu1 %2120 }
 0xde7   :  { %v2123_v63 = vmul.f32 %v2121_v6, %v4192_v16  ;;  %v4223_v53 = vmul.f32 0.001, %v2118_v8 }
 0xde9   :  { %2125 = vrot.lane.b32.xlu1 %v2123_v63, %s3195_s24 }
 0xdec   :  { %v2784_v3 = vpop.eup %2783 }
 0xded   :  { %2129 = vrot.lane.b32.xlu1 %v2123_v63, %s3194_s22  ;;  %v4227_v36 = vmul.f32 %v2784_v3, %v4223_v53 }
 0xdef   :  { %v2169_v50 = vmul.f32 %v4227_v36, %v4227_v36 }
 0xdf1   :  { %2184 = vrot.lane.b32.xlu1 %v4227_v36, %s3197_s9  ;;  %v2170_v14 = vsub.f32 %v4203_v30, %v2169_v50 }
 0xdf3   :  { %2785 = vrsqrt.f32 %v2170_v14  ;;  %vm2173_vm0 = vcmp.eq.f32.partialorder %v2170_v14, inf  ;;  %v2176_v29 = vand.u32 2147483648, %v2170_v14  ;;  %vm2175_vm1 = vcmp.eq.f32.partialorder %v2170_v14, 0.0 }
 0xdf4   :  { %2787 = vrcp.f32 %v2179_v46 }
 0xdf5   :  { %2206 = vrot.lane.b32.xlu1 %v4212_v41, %s3198_s29 }
 0xe00   :  { %v2786_v39 = vpop.eup %2785 }
 0xe01   :  { %v2172_v58 = vmul.f32 %v2786_v39, %v2170_v14  ;;  %v2788_v25 = vpop.eup %2787 }
 0xe03   :  { %v2174_v42 = vsel %vm2173_vm0, %v2170_v14, %v2172_v58 }
 0xe04   :  { %v4236_v45 = vsel %vm2175_vm1, %v2176_v29, %v2174_v42 }
 0xe05   :  { %2216 = vrot.lane.b32.xlu1 %v4236_v45, %s3179_s8  ;;  %2190 = vrot.lane.b32.xlu0 %v4236_v45, %s3197_s9 }
 0xe09   :  { %2133 = vrot.lane.b32.xlu0 %v2123_v63, %s3196_s13 }
 0xe0d   :  { %2138 = vrot.lane.b32.xlu0 %v4192_v16, %s3198_s29 }
 0xe5b   :  { %v2126_v32 = vpop.permute.xlu1 %2125 }
 0xe5c   :  { %v2128_v62 = vadd.f32 %v2126_v32, %v2123_v63 }
 0xe5f   :  { %v2130_v54 = vpop.permute.xlu1 %2129 }
 0xe60   :  { %v2132_v13 = vadd.f32 %v2130_v54, %v2128_v62 }
 0xe63   :  { %v2185_v0 = vpop.permute.xlu1 %2184 }
 0xe67   :  { %v2207_v37 = vpop.permute.xlu1 %2206 }
 0xe77   :  { %v2191_v52 = vpop.permute.xlu0 %2190  ;;  %v2217_v22 = vpop.permute.xlu1 %2216 }
 0xe78   :  { %2789 = vrcp.f32 %v2191_v52 }
 0xe7b   :  { %v2134_v24 = vpop.permute.xlu0 %2133 }
 0xe7c   :  { %v2136_v31 = vadd.f32 %v2134_v24, %v2132_v13 }
 0xe7e   :  { %v4245_v5 = vmul.f32 0.001, %v2136_v31 }
 0xe7f   :  { %v2139_v56 = vpop.permute.xlu0 %2138 }
 0xe80   :  { %v2182_v49 = vmul.f32 %v2788_v25, %v4245_v5  ;;  %v2141_v60 = vmul.f32 %v2139_v56, %v4192_v16 }
 0xe82   :  { %v2187_v7 = vmul.f32 %v2185_v0, %v2182_v49  ;;  %2151 = vrot.lane.b32.xlu1 %v2141_v60, %s3196_s13  ;;  %2143 = vrot.lane.b32.xlu0 %v2141_v60, %s3195_s24  ;;  %v2195_v43 = vmul.f32 %v2182_v49, %v2182_v49 }
 0xe84   :  { %v2188_v2 = vsub.f32 %v4223_v53, %v2187_v7  ;;  %v2196_v10 = vsub.f32 %v4203_v30, %v2195_v43 }
 0xe85   :  { %v2790_v33 = vpop.eup %2789 }
 0xe86   :  { %2211 = vrot.lane.b32.xlu1 %v4227_v36, %s3179_s8  ;;  %2147 = vrot.lane.b32.xlu0 %v2141_v60, %s3194_s22  ;;  %v4255_v57 = vmul.f32 %v2790_v33, %v2188_v2 }
 0xe88   :  { %v2197_v55 = vmul.f32 %v4255_v57, %v4255_v57 }
 0xe8a   :  { %2228 = vrot.lane.b32.xlu1 %v4255_v57, %s3197_s9  ;;  %v2198_v11 = vsub.f32 %v2196_v10, %v2197_v55 }
 0xe8c   :  { %2791 = vrsqrt.f32 %v2198_v11  ;;  %vm2201_vm2 = vcmp.eq.f32.partialorder %v2198_v11, inf  ;;  %v2204_v16 = vand.u32 2147483648, %v2198_v11  ;;  %vm2203_vm3 = vcmp.eq.f32.partialorder %v2198_v11, 0.0 }
 0xe8d   :  { %2793 = vrcp.f32 %v2207_v37 }
 0xe8e   :  { %2273 = vrot.lane.b32.xlu1 %v4265_v47, %s3179_s8  ;;  %s3202_s8 = smov 7   ;;  %2795 = vrcp.f32 %v2217_v22 }
 0xe92   :  { %2309 = vrot.lane.b32.xlu1 %v4265_v47, %s3199_s11 }
 0xe96   :  { %2264 = vrot.lane.b32.xlu1 %v4265_v47, %s3200_s23 }
 0xe99   :  { %v2792_v48 = vpop.eup %2791 }
 0xe9a   :  { %2291 = vrot.lane.b32.xlu1 %v4265_v47, %s3201_s15  ;;  %v2200_v9 = vmul.f32 %v2792_v48, %v2198_v11  ;;  %v2794_v51 = vpop.eup %2793 }
 0xe9b   :  { %v2796_v15 = vpop.eup %2795 }
 0xe9c   :  { %v2202_v34 = vsel %vm2201_vm2, %v2198_v11, %v2200_v9 }
 0xe9d   :  { %v4272_v40 = vsel %vm2203_vm3, %v2204_v16, %v2202_v34 }
 0xe9e   :  { %2234 = vrot.lane.b32.xlu0 %v4272_v40, %s3197_s9 }
 0xea2   :  { %2222 = vrot.lane.b32.xlu0 %v2182_v49, %s3197_s9 }
 0xea6   :  { %2300 = vrot.lane.b32.xlu0 %v4265_v47, %s3198_s29 }
 0xeaa   :  { %2255 = vrot.lane.b32.xlu0 %v4265_v47, %s3197_s9 }
 0xeae   :  { %2282 = vrot.lane.b32.xlu0 %v4265_v47, %s3202_s8 }
 0xeb2   :  { %2318 = vrot.lane.b32.xlu0 %v4265_v47, %s3203_s14 }
 0xeb6   :  { %2327 = vrot.lane.b32.xlu0 %v4265_v47, %s3204_s18 }
 0xef4   :  { %v2152_v59 = vpop.permute.xlu1 %2151  ;;  %v2144_v18 = vpop.permute.xlu0 %2143 }
 0xef5   :  { %v2146_v61 = vadd.f32 %v2144_v18, %v2141_v60 }
 0xef8   :  { %v2212_v38 = vpop.permute.xlu1 %2211  ;;  %v2148_v12 = vpop.permute.xlu0 %2147 }
 0xef9   :  { %v2150_v4 = vadd.f32 %v2148_v12, %v2146_v61 }
 0xefb   :  { %v2154_v17 = vadd.f32 %v2152_v59, %v2150_v4  ;;  %v2434_v59 = vld [vmem:[#allocation25] ss:$0 sm:$0xff] }
 0xefc   :  { %v2229_v1 = vpop.permute.xlu1 %2228  ;;  %v2005_v18 = vadd.f32 %v2434_v59, %v4190_v28 }
 0xefd   :  { %v2155_v35 = vmul.f32 0.001, %v2154_v17 }
 0xeff   :  { %v2210_v20 = vmul.f32 %v2794_v51, %v2155_v35 }
 0xf00   :  { %v2274_v21 = vpop.permute.xlu1 %2273 }
 0xf01   :  { %v2214_v44 = vmul.f32 %v2212_v38, %v2210_v20  ;;  %v2276_v26 = vmul.f32 %v2274_v21, %v2182_v49  ;;  %v2239_v54 = vmul.f32 %v2210_v20, %v2210_v20 }
 0xf03   :  { %v2215_v23 = vsub.f32 %v4245_v5, %v2214_v44  ;;  %2278 = vrot.lane.b32.xlu0 %v2276_v26, %s3205_s2  ;;  %v2240_v25 = vsub.f32 %v4203_v30, %v2239_v54  ;;  %v2252_v26 = vmul.f32 %v4212_v41, %v4265_v47 }
 0xf04   :  { %v2310_v27 = vpop.permute.xlu1 %2309 }
 0xf05   :  { %v2220_v19 = vmul.f32 %v2796_v15, %v2215_v23 }
 0xf07   :  { %v2312_v6 = vmul.f32 %v2310_v27, %v2220_v19  ;;  %v2231_v32 = vmul.f32 %v2229_v1, %v2220_v19  ;;  %v2241_v62 = vmul.f32 %v2220_v19, %v2220_v19 }
 0xf08   :  { %v2265_v8 = vpop.permute.xlu1 %2264 }
 0xf09   :  { %2314 = vrot.lane.b32.xlu0 %v2312_v6, %s3206_s3  ;;  %v2267_v63 = vmul.f32 %v2265_v8, %v4236_v45 }
 0xf0c   :  { %v2292_v3 = vpop.permute.xlu1 %2291 }
 0xf0d   :  { %2269 = vrot.lane.b32.xlu0 %v2267_v63, %s3196_s13  ;;  %v2294_v50 = vmul.f32 %v2292_v3, %v4272_v40 }
 0xf10   :  { %v2235_v14 = vpop.permute.xlu0 %2234 }
 0xf11   :  { %2296 = vrot.lane.b32.xlu0 %v2294_v50, %s3205_s2  ;;  %2797 = vrcp.f32 %v2235_v14 }
 0xf14   :  { %v2223_v39 = vpop.permute.xlu0 %2222 }
 0xf15   :  { %v2225_v58 = vmul.f32 %v2223_v39, %v2210_v20 }
 0xf17   :  { %v2226_v42 = vsub.f32 %v4223_v53, %v2225_v58  ;;  %v2242_v53 = vsub.f32 %v2240_v25, %v2241_v62 }
 0xf18   :  { %v2301_v29 = vpop.permute.xlu0 %2300 }
 0xf19   :  { %v2303_v46 = vmul.f32 %v2301_v29, %v2210_v20  ;;  %v2232_v24 = vsub.f32 %v2226_v42, %v2231_v32 }
 0xf1b   :  { %2305 = vrot.lane.b32.xlu1 %v2303_v46, %s3206_s3 }
 0xf1c   :  { %v2256_v52 = vpop.permute.xlu0 %2255 }
 0xf1d   :  { %v2258_v13 = vmul.f32 %v2256_v52, %v4227_v36  ;;  %v2342_v36 = vmul.f32 %v4265_v47, %v4265_v47 }
 0xf1e   :  { %v2798_v31 = vpop.eup %2797 }
 0xf1f   :  { %2260 = vrot.lane.b32.xlu1 %v2258_v13, %s3196_s13  ;;  %v2238_v5 = vmul.f32 %v2798_v31, %v2232_v24  ;;  %v2344_v43 = vsel %vm2343_vm4, %v2342_v36, 0.0 }
 0xf20   :  { %v2283_v56 = vpop.permute.xlu0 %2282 }
 0xf21   :  { %v2285_v49 = vmul.f32 %v2283_v56, %v4255_v57  ;;  %v2243_v60 = vmul.f32 %v2238_v5, %v2238_v5 }
 0xf23   :  { %2287 = vrot.lane.b32.xlu1 %v2285_v49, %s3205_s2  ;;  %v2244_v0 = vsub.f32 %v2242_v53, %v2243_v60 }
 0xf24   :  { %v2319_v7 = vpop.permute.xlu0 %2318 }
 0xf25   :  { %v2321_v2 = vmul.f32 %v2319_v7, %v2238_v5  ;;  %2799 = vrsqrt.f32 %v2244_v0  ;;  %vm2247_vm5 = vcmp.eq.f32.partialorder %v2244_v0, inf  ;;  %v2250_v57 = vand.u32 2147483648, %v2244_v0 }
 0xf26   :  { %2801 = vlog2.f32 %v4236_v45  ;;  %vm2249_vm6 = vcmp.eq.f32.partialorder %v2244_v0, 0.0 }
 0xf27   :  { %2323 = vrot.lane.b32.xlu1 %v2321_v2, %s3206_s3 }
 0xf28   :  { %v2328_v10 = vpop.permute.xlu0 %2327 }
 0xf30   :  { %2345 = vadd.xlane.f32.xlu0 %v2344_v43 }
 0xf32   :  { %v2800_v30 = vpop.eup %2799 }
 0xf33   :  { %v2246_v33 = vmul.f32 %v2800_v30, %v2244_v0  ;;  %v2802_v9 = vpop.eup %2801 }
 0xf34   :  { %v2351_v16 = vmul.f32 0.6931472, %v2802_v9 }
 0xf35   :  { %v2248_v55 = vsel %vm2247_vm5, %v2244_v0, %v2246_v33 }
 0xf36   :  { %v2251_v11 = vsel %vm2249_vm6, %v2250_v57, %v2248_v55  ;;  %v2352_v34 = vmul.f32 2.0, %v2351_v16 }
 0xf37   :  { %2803 = vlog2.f32 %v2251_v11  ;;  %v2330_v48 = vmul.f32 %v2328_v10, %v2251_v11 }
 0xf38   :  { %2805 = vtanh.f32 %v2005_v18 }
 0xf39   :  { %2332 = vrot.lane.b32.xlu1 %v2330_v48, %s3206_s3 }
 0xf44   :  { %v2804_v37 = vpop.eup %2803 }
 0xf45   :  { %v2367_v22 = vmul.f32 0.6931472, %v2804_v37  ;;  %v2806_v1 = vpop.eup %2805 }
 0xf46   :  { %2354 = vrot.lane.b32.xlu0 %v2352_v34, %s3207_s19  ;;  %v2253_v6 = vadd.f32 %v2806_v1, %v2252_v26 }
 0xf47   :  { %v2368_v45 = vmul.f32 2.0, %v2367_v22 }
 0xf4a   :  { %2370 = vrot.lane.b32.xlu0 %v2368_v45, %s3208_s7 }
 0xf75   :  { %v2279_v38 = vpop.permute.xlu0 %2278 }
 0xf76   :  { %v2281_v51 = vadd.f32 %v2806_v1, %v2279_v38 }
 0xf7b   :  { %v2315_v4 = vpop.permute.xlu0 %2314 }
 0xf7f   :  { %v2270_v35 = vpop.permute.xlu0 %2269 }
 0xf83   :  { %v2297_v15 = vpop.permute.xlu0 %2296 }
 0xf8d   :  { %v2306_v61 = vpop.permute.xlu1 %2305 }
 0xf8e   :  { %v2308_v20 = vadd.f32 %v2806_v1, %v2306_v61 }
 0xf90   :  { %v2317_v19 = vadd.f32 %v2315_v4, %v2308_v20 }
 0xf91   :  { %v2261_v12 = vpop.permute.xlu1 %2260 }
 0xf92   :  { %v2263_v21 = vadd.f32 %v2806_v1, %v2261_v12 }
 0xf94   :  { %v2272_v27 = vadd.f32 %v2270_v35, %v2263_v21 }
 0xf95   :  { %v2288_v17 = vpop.permute.xlu1 %2287 }
 0xf96   :  { %v2290_v44 = vadd.f32 %v2288_v17, %v2281_v51  ;;  %v2337_v3 = vsel %vm2336_vm7, %v2253_v6, %v2272_v27 }
 0xf98   :  { %v2299_v28 = vadd.f32 %v2297_v15, %v2290_v44 }
 0xf99   :  { %v2324_v23 = vpop.permute.xlu1 %2323 }
 0xf9a   :  { %v2326_v8 = vadd.f32 %v2324_v23, %v2317_v19  ;;  %v2339_v14 = vsel %vm2338_vm8, %v2337_v3, %v2299_v28 }
 0xfab   :  { %v2333_v63 = vpop.permute.xlu1 %2332 }
 0xfac   :  { %v2335_v50 = vadd.f32 %v2333_v63, %v2326_v8 }
 0xfae   :  { %v2341_v39 = vsel %vm2340_vm9, %v2339_v14, %v2335_v50 }
 0xfaf   :  { %v2379_v58 = vmul.f32 -2.0, %v2341_v39  ;;  %2396 = vst.msk [vmem:[%s4346_s27] sm:$0xff] %vm2343_vm4, %v2341_v39  ;;  %v2378_v13 = vsub.f32 0.6931472, %v2341_v39  ;;  %s3209_s27 = smov 120  }
 0xfb1   :  { %v2381_v47 = vand.u32 2147483647, %v2379_v58  ;;  %v2380_v52 = vmax.f32 %v2379_v58, 0.0 }
 0xfb3   :  { %v2382_v29 = vsub.f32 0.0, %v2381_v47 }
 0xfb5   :  { %v2383_v42 = vmul.f32 1.442695, %v2382_v29 }
 0xfb7   :  { %2807 = vpow2.f32 %v2383_v42 }
 0xfb9   :  { %v2346_v0 = vpop.xlane.xlu0 %2345 }
 0xfba   :  { %v2374_v33 = vadd.f32 7.351508, %v2346_v0 }
 0xfbc   :  { %v2375_v11 = vmul.f32 -0.5, %v2374_v33 }
 0xfbd   :  { %v2355_v2 = vpop.permute.xlu0 %2354 }
 0xfc1   :  { %v2371_v10 = vpop.permute.xlu0 %2370 }
 0xfc4   :  { %v2808_v46 = vpop.eup %2807 }
 0xfc5   :  { %v2385_v32 = vadd.f32 1.0, %v2808_v46 }
 0xfc7   :  { %2809 = vlog2.f32 %v2385_v32 }
 0xfc8   :  { %2811 = vlog2.f32 %v4272_v40 }
 0xfc9   :  { %2813 = vlog2.f32 %v4212_v41 }
 0xfd4   :  { %v2810_v54 = vpop.eup %2809 }
 0xfd5   :  { %v2387_v62 = vmul.f32 0.6931472, %v2810_v54  ;;  %v2812_v56 = vpop.eup %2811 }
 0xfd6   :  { %v2359_v49 = vmul.f32 0.6931472, %v2812_v56  ;;  %v2814_v60 = vpop.eup %2813 }
 0xfd7   :  { %v2388_v24 = vadd.f32 %v2387_v62, %v2380_v52  ;;  %v2348_v7 = vmul.f32 0.6931472, %v2814_v60 }
 0xfd8   :  { %v2360_v53 = vmul.f32 2.0, %v2359_v49 }
 0xfd9   :  { %v2389_v31 = vsub.f32 %v2378_v13, %v2388_v24  ;;  %v2349_v43 = vmul.f32 2.0, %v2348_v7 }
 0xfdb   :  { %v2390_v5 = vmul.f32 2.0, %v2389_v31  ;;  %v2357_v30 = vadd.f32 %v2355_v2, %v2349_v43 }
 0xfdd   :  { %v2391_v25 = vsel %vm2343_vm4, %v2390_v5, 0.0 }
 0xfde   :  { %2392 = vadd.xlane.f32.xlu1 %v2391_v25 }
 0xfef   :  { %2362 = vrot.lane.b32.xlu1 %v2360_v53, %s3209_s27 }
0x1067   :  { %v2393_v36 = vpop.xlane.xlu1 %2392 }
0x106b   :  { %v2363_v40 = vpop.permute.xlu1 %2362 }
0x106c   :  { %v2365_v57 = vadd.f32 %v2363_v40, %v2357_v30 }
0x106e   :  { %v2373_v55 = vadd.f32 %v2371_v10, %v2365_v57 }
0x1070   :  { %v2376_v48 = vmul.f32 0.5, %v2373_v55 }
0x1072   :  { %v2377_v9 = vsub.f32 %v2375_v11, %v2376_v48 }
0x1074   :  { %v2394_v16 = vsub.f32 %v2377_v9, %v2393_v36 }
0x1076   :  { %2395 = vst.msk [vmem:[%s4345_s26] sm:$0xff] %vm2336_vm7, %v2394_v16 }
0x1077   :  { %2405 = vsyncpa [#allocation3], 1 }
0x1078   :  { %2406 = vsyncpa [#allocation5], 1 }
0x1079   :  { %2407 = vsyncpa [#allocation8], 1 }
0x107a   :  { %2408 = vsyncpa [#allocation11], 1 }
0x107b   :  { %2409 = vsyncpa [#allocation14], 1 }
0x107c   :  { %2410 = vsyncpa [#allocation17], 1 }
0x107d   :  { %2411 = vsyncpa [#allocation20], 1 }
0x107e   :  { %2412 = vsyncpa [#allocation23], 1 }
0x107f   :  { %2413 = vsyncpa [#allocation26], 1 }

</bundles_post_ra>
